<compile_context>
chip_gen: v6e
topology: v6e:2x2x1
jax: 0.10.0
libtpu: 0.0.40
codegen_flags: <defaults>
</compile_context>

<pallas_src>
import functools

import jax
import jax.numpy as jnp
from jax import lax
from jax.experimental import pallas as pl
from jax.experimental.pallas import tpu as pltpu

EPS = float(jnp.finfo(jnp.float32).eps)  # == torch.finfo(torch.float).eps
LANE = 128


def _nmf_kernel(x_ref, d0_ref, c0_ref, d_out_ref, c_out_ref, *, T, normalize_D):
    """Runs the full T-iteration NMF loop in VMEM (bf16 MXU dots, f32 updates)."""
    f32 = jnp.float32
    bf16 = jnp.bfloat16

    def body(_, carry):
        D, C = carry  # master copies, f32: D (M, Kp), C (Kp, N)

        # ---- update D:  D * (X C^T) / (D (C C^T) + eps) ----
        # X stays bf16 in VMEM and is never transposed; contraction dims are
        # expressed via dot_general dimension numbers.
        Cb = C.astype(bf16)
        XCt = lax.dot_general(x_ref[...], Cb, (((1,), (1,)), ((), ())),
                              preferred_element_type=f32)              # (M, Kp)
        CCt = lax.dot_general(Cb, Cb, (((1,), (1,)), ((), ())),
                              preferred_element_type=f32)              # (Kp, Kp)
        DCCt = jnp.dot(D.astype(bf16), CCt.astype(bf16),
                       preferred_element_type=f32)                     # (M, Kp)
        D = D * XCt * pl.reciprocal(DCCt + EPS, approx=True)

        if normalize_D:
            # normalize_col: divide each column by its sum (L1 norm).
            # Exact divide here so normalization error does not compound.
            col_sum = jnp.sum(D, axis=0, keepdims=True)                # (1, Kp)
            D = D / (col_sum + EPS)

        # ---- update C:  C * (D^T X) / ((D^T D) C + eps) ----
        Db = D.astype(bf16)
        DtX = lax.dot_general(Db, x_ref[...], (((0,), (0,)), ((), ())),
                              preferred_element_type=f32)              # (Kp, N)
        DtD = lax.dot_general(Db, Db, (((0,), (0,)), ((), ())),
                              preferred_element_type=f32)              # (Kp, Kp)
        DtDC = jnp.dot(DtD.astype(bf16), Cb, preferred_element_type=f32)  # (Kp, N)
        C = C * DtX * pl.reciprocal(DtDC + EPS, approx=True)
        return D, C

    # Full unroll only for small T; iterations are serially data-dependent so
    # large unrolls only blow up IMEM / live ranges.
    unroll = True if T <= 8 else 2
    D, C = lax.fori_loop(0, T, body, (d0_ref[...], c0_ref[...]), unroll=unroll)
    d_out_ref[...] = D
    c_out_ref[...] = C


def _vmem_budget_bytes(M, N, Kp):
    """Explicit count of simultaneously-live kernel buffers (bytes)."""
    x_bf16 = 2 * M * N
    d_like = (4 + 2 + 4 + 4) * M * Kp        # D(f32) + D(bf16) + XCt + DCCt
    c_like = (4 + 2 + 4 + 4) * Kp * N        # C(f32) + C(bf16) + DtX + DtDC
    gram = 2 * (4 + 2) * Kp * Kp             # CCt, DtD (f32 + bf16 copies)
    mosaic_scratch = 2 << 20
    return x_bf16 + d_like + c_like + gram + mosaic_scratch


def base_nmf_forward(X, K, T, normalize_D=False, D=None, C=None, *, key=None):
    """JAX/Pallas equivalent of BaseNMF.forward (returns (D, C))."""
    X = X.astype(jnp.float32)
    M, N = X.shape

    # _init_random_scaled: rand(w, h) * sqrt(X.mean() / K)
    if D is None or C is None:
        if key is None:
            key = jax.random.PRNGKey(0)
        kd, kc = jax.random.split(key)
        scale = jnp.sqrt(jnp.mean(X) / K)
        if D is None:
            D = jax.random.uniform(kd, (M, K), dtype=jnp.float32) * scale
        if C is None:
            C = jax.random.uniform(kc, (K, N), dtype=jnp.float32) * scale

    # Pad K to lane width; zero-padded columns/rows stay exactly zero under the
    # multiplicative updates (0 * x / (y + eps) = 0), so results are unchanged.
    Kp = max(LANE, -(-K // LANE) * LANE)
    Dp = jnp.zeros((M, Kp), jnp.float32).at[:, :K].set(D.astype(jnp.float32))
    Cp = jnp.zeros((Kp, N), jnp.float32).at[:K, :].set(C.astype(jnp.float32))

    # X is fed to the MXU in bf16 (f32 accumulate); halves its VMEM footprint.
    Xb = X.astype(jnp.bfloat16)

    # Generation-aware VMEM limit with headroom for Mosaic internal scratch.
    needed = _vmem_budget_bytes(M, N, Kp)
    try:
        phys_vmem = int(pltpu.get_tpu_info().vmem_capacity_bytes)
    except Exception:
        phys_vmem = 64 << 20  # conservative (v7x-sized) fallback
    cap = int(phys_vmem * 0.8)
    vmem_limit = int(min(max(needed, 16 << 20), cap))
    # TODO(synk): if needed > cap, dispatch to the N-tiled streaming variant.

    vmem_spec = pl.BlockSpec(memory_space=pltpu.MemorySpace.VMEM)
    kernel = functools.partial(_nmf_kernel, T=int(T),
                               normalize_D=bool(normalize_D))
    d_out, c_out = pl.pallas_call(
        kernel,
        out_shape=(
            jax.ShapeDtypeStruct((M, Kp), jnp.float32),
            jax.ShapeDtypeStruct((Kp, N), jnp.float32),
        ),
        in_specs=[vmem_spec, vmem_spec, vmem_spec],
        out_specs=(vmem_spec, vmem_spec),
        input_output_aliases={1: 0, 2: 1},
        compiler_params=pltpu.CompilerParams(vmem_limit_bytes=vmem_limit),
    )(Xb, Dp, Cp)

    # Slice padded K back to the requested size.
    return d_out[:, :K], c_out[:K, :]


def reconstruction_err(X, D, C):
    """Frobenius norm of X - D @ C (glue; not the hot path)."""
    R = X - jnp.dot(D, C)
    return jnp.sqrt(jnp.sum(R * R))


if __name__ == "__main__":
    key = jax.random.PRNGKey(0)
    kx, kinit = jax.random.split(key)

    M, N, K, T = 32, 256, 8, 4
    # Nonnegative synthetic data matrix.
    X = jax.random.uniform(kx, (M, N), dtype=jnp.float32)

    D, C = base_nmf_forward(X, K=K, T=T, normalize_D=False, key=kinit)
    D = jax.block_until_ready(D)
    C = jax.block_until_ready(C)

    err = jax.block_until_ready(reconstruction_err(X, D, C))
    assert D.shape == (M, K) and C.shape == (K, N)
    assert bool(jnp.isfinite(err))
    assert bool(jnp.all(D >= 0)) and bool(jnp.all(C >= 0))

    # Exercise the normalize_D (normalize_col) branch as well.
    Dn, Cn = base_nmf_forward(X, K=K, T=T, normalize_D=True, key=kinit)
    Dn, Cn = jax.block_until_ready((Dn, Cn))
    assert Dn.shape == (M, K) and Cn.shape == (K, N)
    assert bool(jnp.all(Dn >= 0)) and bool(jnp.all(Cn >= 0))
    assert bool(jnp.all(jnp.isfinite(Dn))) and bool(jnp.all(jnp.isfinite(Cn)))
    # Normalized columns should sum to ~1 (tolerance: bf16 matmuls + approx recip).
    col_sums = jnp.sum(Dn, axis=0)
    assert bool(jnp.all(jnp.abs(col_sums - 1.0) < 1e-2))

    print("KERNEL_OK")
</pallas_src>

<mosaic_0001>
module attributes {stable_mosaic.version = 11 : i64} {
  func.func @_nmf_kernel(%arg0: memref<32x256xbf16, #tpu.memory_space<vmem>>, %arg1: memref<32x128xf32, #tpu.memory_space<vmem>>, %arg2: memref<128x256xf32, #tpu.memory_space<vmem>>, %arg3: memref<32x128xf32, #tpu.memory_space<vmem>>, %arg4: memref<128x256xf32, #tpu.memory_space<vmem>>) attributes {dimension_semantics = [], scalar_prefetch = 0 : i64, scratch_operands = 0 : i64, tpu.core_type = #tpu.core_type<tc>} {
    %c0 = arith.constant 0 : index
    %c0_0 = arith.constant 0 : index
    %0 = vector.load %arg1[%c0, %c0_0] : memref<32x128xf32, #tpu.memory_space<vmem>>, vector<32x128xf32>
    %c0_1 = arith.constant 0 : index
    %c0_2 = arith.constant 0 : index
    %1 = vector.load %arg2[%c0_1, %c0_2] : memref<128x256xf32, #tpu.memory_space<vmem>>, vector<128x256xf32>
    %c0_i32 = arith.constant 0 : i32
    %2 = arith.truncf %1 : vector<128x256xf32> to vector<128x256xbf16>
    %c0_3 = arith.constant 0 : index
    %c0_4 = arith.constant 0 : index
    %3 = vector.load %arg0[%c0_3, %c0_4] : memref<32x256xbf16, #tpu.memory_space<vmem>>, vector<32x256xbf16>
    %cst = arith.constant dense<0.000000e+00> : vector<32x128xf32>
    %4 = tpu.matmul %3, %2, %cst {dimension_numbers = #tpu.dot_dimension_numbers<[1], [1], [0], [0], [0, 0, 1, 0], [], []>} : vector<32x256xbf16>, vector<128x256xbf16>, vector<32x128xf32> -> vector<32x128xf32>
    %cst_5 = arith.constant dense<0.000000e+00> : vector<128x128xf32>
    %5 = tpu.matmul %2, %2, %cst_5 {dimension_numbers = #tpu.dot_dimension_numbers<[1], [1], [0], [0], [0, 0, 1, 0], [], []>} : vector<128x256xbf16>, vector<128x256xbf16>, vector<128x128xf32> -> vector<128x128xf32>
    %6 = arith.truncf %0 : vector<32x128xf32> to vector<32x128xbf16>
    %7 = arith.truncf %5 : vector<128x128xf32> to vector<128x128xbf16>
    %cst_6 = arith.constant dense<0.000000e+00> : vector<32x128xf32>
    %8 = tpu.matmul %6, %7, %cst_6 {dimension_numbers = #tpu.dot_dimension_numbers<[1], [0], [0], [1], [0, 0, 1, 1], [], []>} : vector<32x128xbf16>, vector<128x128xbf16>, vector<32x128xf32> -> vector<32x128xf32>
    %9 = arith.mulf %0, %4 : vector<32x128xf32>
    %cst_7 = arith.constant 1.1920929E-7 : f32
    %10 = vector.broadcast %cst_7 : f32 to vector<32x128xf32>
    %11 = arith.addf %8, %10 : vector<32x128xf32>
    %12 = tpu.reciprocal %11 {approx = true} : vector<32x128xf32> -> vector<32x128xf32>
    %13 = arith.mulf %9, %12 : vector<32x128xf32>
    %14 = arith.truncf %13 : vector<32x128xf32> to vector<32x128xbf16>
    %c0_8 = arith.constant 0 : index
    %c0_9 = arith.constant 0 : index
    %15 = vector.load %arg0[%c0_8, %c0_9] : memref<32x256xbf16, #tpu.memory_space<vmem>>, vector<32x256xbf16>
    %cst_10 = arith.constant dense<0.000000e+00> : vector<128x256xf32>
    %16 = tpu.matmul %14, %15, %cst_10 {dimension_numbers = #tpu.dot_dimension_numbers<[0], [0], [1], [1], [0, 1, 1, 1], [], []>} : vector<32x128xbf16>, vector<32x256xbf16>, vector<128x256xf32> -> vector<128x256xf32>
    %cst_11 = arith.constant dense<0.000000e+00> : vector<128x128xf32>
    %17 = tpu.matmul %14, %14, %cst_11 {dimension_numbers = #tpu.dot_dimension_numbers<[0], [0], [1], [1], [0, 1, 1, 1], [], []>} : vector<32x128xbf16>, vector<32x128xbf16>, vector<128x128xf32> -> vector<128x128xf32>
    %18 = arith.truncf %17 : vector<128x128xf32> to vector<128x128xbf16>
    %cst_12 = arith.constant dense<0.000000e+00> : vector<128x256xf32>
    %19 = tpu.matmul %18, %2, %cst_12 {dimension_numbers = #tpu.dot_dimension_numbers<[1], [0], [0], [1], [0, 0, 1, 1], [], []>} : vector<128x128xbf16>, vector<128x256xbf16>, vector<128x256xf32> -> vector<128x256xf32>
    %20 = arith.mulf %1, %16 : vector<128x256xf32>
    %cst_13 = arith.constant 1.1920929E-7 : f32
    %21 = vector.broadcast %cst_13 : f32 to vector<128x256xf32>
    %22 = arith.addf %19, %21 : vector<128x256xf32>
    %23 = tpu.reciprocal %22 {approx = true} : vector<128x256xf32> -> vector<128x256xf32>
    %24 = arith.mulf %20, %23 : vector<128x256xf32>
    %c1_i32 = arith.constant 1 : i32
    %25 = arith.truncf %24 : vector<128x256xf32> to vector<128x256xbf16>
    %c0_14 = arith.constant 0 : index
    %c0_15 = arith.constant 0 : index
    %26 = vector.load %arg0[%c0_14, %c0_15] : memref<32x256xbf16, #tpu.memory_space<vmem>>, vector<32x256xbf16>
    %cst_16 = arith.constant dense<0.000000e+00> : vector<32x128xf32>
    %27 = tpu.matmul %26, %25, %cst_16 {dimension_numbers = #tpu.dot_dimension_numbers<[1], [1], [0], [0], [0, 0, 1, 0], [], []>} : vector<32x256xbf16>, vector<128x256xbf16>, vector<32x128xf32> -> vector<32x128xf32>
    %cst_17 = arith.constant dense<0.000000e+00> : vector<128x128xf32>
    %28 = tpu.matmul %25, %25, %cst_17 {dimension_numbers = #tpu.dot_dimension_numbers<[1], [1], [0], [0], [0, 0, 1, 0], [], []>} : vector<128x256xbf16>, vector<128x256xbf16>, vector<128x128xf32> -> vector<128x128xf32>
    %29 = arith.truncf %13 : vector<32x128xf32> to vector<32x128xbf16>
    %30 = arith.truncf %28 : vector<128x128xf32> to vector<128x128xbf16>
    %cst_18 = arith.constant dense<0.000000e+00> : vector<32x128xf32>
    %31 = tpu.matmul %29, %30, %cst_18 {dimension_numbers = #tpu.dot_dimension_numbers<[1], [0], [0], [1], [0, 0, 1, 1], [], []>} : vector<32x128xbf16>, vector<128x128xbf16>, vector<32x128xf32> -> vector<32x128xf32>
    %32 = arith.mulf %13, %27 : vector<32x128xf32>
    %cst_19 = arith.constant 1.1920929E-7 : f32
    %33 = vector.broadcast %cst_19 : f32 to vector<32x128xf32>
    %34 = arith.addf %31, %33 : vector<32x128xf32>
    %35 = tpu.reciprocal %34 {approx = true} : vector<32x128xf32> -> vector<32x128xf32>
    %36 = arith.mulf %32, %35 : vector<32x128xf32>
    %37 = arith.truncf %36 : vector<32x128xf32> to vector<32x128xbf16>
    %c0_20 = arith.constant 0 : index
    %c0_21 = arith.constant 0 : index
    %38 = vector.load %arg0[%c0_20, %c0_21] : memref<32x256xbf16, #tpu.memory_space<vmem>>, vector<32x256xbf16>
    %cst_22 = arith.constant dense<0.000000e+00> : vector<128x256xf32>
    %39 = tpu.matmul %37, %38, %cst_22 {dimension_numbers = #tpu.dot_dimension_numbers<[0], [0], [1], [1], [0, 1, 1, 1], [], []>} : vector<32x128xbf16>, vector<32x256xbf16>, vector<128x256xf32> -> vector<128x256xf32>
    %cst_23 = arith.constant dense<0.000000e+00> : vector<128x128xf32>
    %40 = tpu.matmul %37, %37, %cst_23 {dimension_numbers = #tpu.dot_dimension_numbers<[0], [0], [1], [1], [0, 1, 1, 1], [], []>} : vector<32x128xbf16>, vector<32x128xbf16>, vector<128x128xf32> -> vector<128x128xf32>
    %41 = arith.truncf %40 : vector<128x128xf32> to vector<128x128xbf16>
    %cst_24 = arith.constant dense<0.000000e+00> : vector<128x256xf32>
    %42 = tpu.matmul %41, %25, %cst_24 {dimension_numbers = #tpu.dot_dimension_numbers<[1], [0], [0], [1], [0, 0, 1, 1], [], []>} : vector<128x128xbf16>, vector<128x256xbf16>, vector<128x256xf32> -> vector<128x256xf32>
    %43 = arith.mulf %24, %39 : vector<128x256xf32>
    %cst_25 = arith.constant 1.1920929E-7 : f32
    %44 = vector.broadcast %cst_25 : f32 to vector<128x256xf32>
    %45 = arith.addf %42, %44 : vector<128x256xf32>
    %46 = tpu.reciprocal %45 {approx = true} : vector<128x256xf32> -> vector<128x256xf32>
    %47 = arith.mulf %43, %46 : vector<128x256xf32>
    %c2_i32 = arith.constant 2 : i32
    %48 = arith.truncf %47 : vector<128x256xf32> to vector<128x256xbf16>
    %c0_26 = arith.constant 0 : index
    %c0_27 = arith.constant 0 : index
    %49 = vector.load %arg0[%c0_26, %c0_27] : memref<32x256xbf16, #tpu.memory_space<vmem>>, vector<32x256xbf16>
    %cst_28 = arith.constant dense<0.000000e+00> : vector<32x128xf32>
    %50 = tpu.matmul %49, %48, %cst_28 {dimension_numbers = #tpu.dot_dimension_numbers<[1], [1], [0], [0], [0, 0, 1, 0], [], []>} : vector<32x256xbf16>, vector<128x256xbf16>, vector<32x128xf32> -> vector<32x128xf32>
    %cst_29 = arith.constant dense<0.000000e+00> : vector<128x128xf32>
    %51 = tpu.matmul %48, %48, %cst_29 {dimension_numbers = #tpu.dot_dimension_numbers<[1], [1], [0], [0], [0, 0, 1, 0], [], []>} : vector<128x256xbf16>, vector<128x256xbf16>, vector<128x128xf32> -> vector<128x128xf32>
    %52 = arith.truncf %36 : vector<32x128xf32> to vector<32x128xbf16>
    %53 = arith.truncf %51 : vector<128x128xf32> to vector<128x128xbf16>
    %cst_30 = arith.constant dense<0.000000e+00> : vector<32x128xf32>
    %54 = tpu.matmul %52, %53, %cst_30 {dimension_numbers = #tpu.dot_dimension_numbers<[1], [0], [0], [1], [0, 0, 1, 1], [], []>} : vector<32x128xbf16>, vector<128x128xbf16>, vector<32x128xf32> -> vector<32x128xf32>
    %55 = arith.mulf %36, %50 : vector<32x128xf32>
    %cst_31 = arith.constant 1.1920929E-7 : f32
    %56 = vector.broadcast %cst_31 : f32 to vector<32x128xf32>
    %57 = arith.addf %54, %56 : vector<32x128xf32>
    %58 = tpu.reciprocal %57 {approx = true} : vector<32x128xf32> -> vector<32x128xf32>
    %59 = arith.mulf %55, %58 : vector<32x128xf32>
    %60 = arith.truncf %59 : vector<32x128xf32> to vector<32x128xbf16>
    %c0_32 = arith.constant 0 : index
    %c0_33 = arith.constant 0 : index
    %61 = vector.load %arg0[%c0_32, %c0_33] : memref<32x256xbf16, #tpu.memory_space<vmem>>, vector<32x256xbf16>
    %cst_34 = arith.constant dense<0.000000e+00> : vector<128x256xf32>
    %62 = tpu.matmul %60, %61, %cst_34 {dimension_numbers = #tpu.dot_dimension_numbers<[0], [0], [1], [1], [0, 1, 1, 1], [], []>} : vector<32x128xbf16>, vector<32x256xbf16>, vector<128x256xf32> -> vector<128x256xf32>
    %cst_35 = arith.constant dense<0.000000e+00> : vector<128x128xf32>
    %63 = tpu.matmul %60, %60, %cst_35 {dimension_numbers = #tpu.dot_dimension_numbers<[0], [0], [1], [1], [0, 1, 1, 1], [], []>} : vector<32x128xbf16>, vector<32x128xbf16>, vector<128x128xf32> -> vector<128x128xf32>
    %64 = arith.truncf %63 : vector<128x128xf32> to vector<128x128xbf16>
    %cst_36 = arith.constant dense<0.000000e+00> : vector<128x256xf32>
    %65 = tpu.matmul %64, %48, %cst_36 {dimension_numbers = #tpu.dot_dimension_numbers<[1], [0], [0], [1], [0, 0, 1, 1], [], []>} : vector<128x128xbf16>, vector<128x256xbf16>, vector<128x256xf32> -> vector<128x256xf32>
    %66 = arith.mulf %47, %62 : vector<128x256xf32>
    %cst_37 = arith.constant 1.1920929E-7 : f32
    %67 = vector.broadcast %cst_37 : f32 to vector<128x256xf32>
    %68 = arith.addf %65, %67 : vector<128x256xf32>
    %69 = tpu.reciprocal %68 {approx = true} : vector<128x256xf32> -> vector<128x256xf32>
    %70 = arith.mulf %66, %69 : vector<128x256xf32>
    %c3_i32 = arith.constant 3 : i32
    %71 = arith.truncf %70 : vector<128x256xf32> to vector<128x256xbf16>
    %c0_38 = arith.constant 0 : index
    %c0_39 = arith.constant 0 : index
    %72 = vector.load %arg0[%c0_38, %c0_39] : memref<32x256xbf16, #tpu.memory_space<vmem>>, vector<32x256xbf16>
    %cst_40 = arith.constant dense<0.000000e+00> : vector<32x128xf32>
    %73 = tpu.matmul %72, %71, %cst_40 {dimension_numbers = #tpu.dot_dimension_numbers<[1], [1], [0], [0], [0, 0, 1, 0], [], []>} : vector<32x256xbf16>, vector<128x256xbf16>, vector<32x128xf32> -> vector<32x128xf32>
    %cst_41 = arith.constant dense<0.000000e+00> : vector<128x128xf32>
    %74 = tpu.matmul %71, %71, %cst_41 {dimension_numbers = #tpu.dot_dimension_numbers<[1], [1], [0], [0], [0, 0, 1, 0], [], []>} : vector<128x256xbf16>, vector<128x256xbf16>, vector<128x128xf32> -> vector<128x128xf32>
    %75 = arith.truncf %59 : vector<32x128xf32> to vector<32x128xbf16>
    %76 = arith.truncf %74 : vector<128x128xf32> to vector<128x128xbf16>
    %cst_42 = arith.constant dense<0.000000e+00> : vector<32x128xf32>
    %77 = tpu.matmul %75, %76, %cst_42 {dimension_numbers = #tpu.dot_dimension_numbers<[1], [0], [0], [1], [0, 0, 1, 1], [], []>} : vector<32x128xbf16>, vector<128x128xbf16>, vector<32x128xf32> -> vector<32x128xf32>
    %78 = arith.mulf %59, %73 : vector<32x128xf32>
    %cst_43 = arith.constant 1.1920929E-7 : f32
    %79 = vector.broadcast %cst_43 : f32 to vector<32x128xf32>
    %80 = arith.addf %77, %79 : vector<32x128xf32>
    %81 = tpu.reciprocal %80 {approx = true} : vector<32x128xf32> -> vector<32x128xf32>
    %82 = arith.mulf %78, %81 : vector<32x128xf32>
    %83 = arith.truncf %82 : vector<32x128xf32> to vector<32x128xbf16>
    %c0_44 = arith.constant 0 : index
    %c0_45 = arith.constant 0 : index
    %84 = vector.load %arg0[%c0_44, %c0_45] : memref<32x256xbf16, #tpu.memory_space<vmem>>, vector<32x256xbf16>
    %cst_46 = arith.constant dense<0.000000e+00> : vector<128x256xf32>
    %85 = tpu.matmul %83, %84, %cst_46 {dimension_numbers = #tpu.dot_dimension_numbers<[0], [0], [1], [1], [0, 1, 1, 1], [], []>} : vector<32x128xbf16>, vector<32x256xbf16>, vector<128x256xf32> -> vector<128x256xf32>
    %cst_47 = arith.constant dense<0.000000e+00> : vector<128x128xf32>
    %86 = tpu.matmul %83, %83, %cst_47 {dimension_numbers = #tpu.dot_dimension_numbers<[0], [0], [1], [1], [0, 1, 1, 1], [], []>} : vector<32x128xbf16>, vector<32x128xbf16>, vector<128x128xf32> -> vector<128x128xf32>
    %87 = arith.truncf %86 : vector<128x128xf32> to vector<128x128xbf16>
    %cst_48 = arith.constant dense<0.000000e+00> : vector<128x256xf32>
    %88 = tpu.matmul %87, %71, %cst_48 {dimension_numbers = #tpu.dot_dimension_numbers<[1], [0], [0], [1], [0, 0, 1, 1], [], []>} : vector<128x128xbf16>, vector<128x256xbf16>, vector<128x256xf32> -> vector<128x256xf32>
    %89 = arith.mulf %70, %85 : vector<128x256xf32>
    %cst_49 = arith.constant 1.1920929E-7 : f32
    %90 = vector.broadcast %cst_49 : f32 to vector<128x256xf32>
    %91 = arith.addf %88, %90 : vector<128x256xf32>
    %92 = tpu.reciprocal %91 {approx = true} : vector<128x256xf32> -> vector<128x256xf32>
    %93 = arith.mulf %89, %92 : vector<128x256xf32>
    %c0_50 = arith.constant 0 : index
    %c0_51 = arith.constant 0 : index
    %94 = vector.load %arg3[%c0_50, %c0_51] : memref<32x128xf32, #tpu.memory_space<vmem>>, vector<32x128xf32>
    tpu.vector_store %arg3[%c0_50, %c0_51], %82 {strides = array<i32>} : memref<32x128xf32, #tpu.memory_space<vmem>>, vector<32x128xf32>,
    %c0_52 = arith.constant 0 : index
    %c0_53 = arith.constant 0 : index
    %95 = vector.load %arg4[%c0_52, %c0_53] : memref<128x256xf32, #tpu.memory_space<vmem>>, vector<128x256xf32>
    tpu.vector_store %arg4[%c0_52, %c0_53], %93 {strides = array<i32>} : memref<128x256xf32, #tpu.memory_space<vmem>>, vector<128x256xf32>,
    return
  }
}

</mosaic_0001>

<bundles_post_ra>
// kernel: tpu_custom_call.1
= control target key start
LH: loop header
LB: loop body
LE: loop exit
PB: predicated region body
PF: predicated region fallthrough
CT: control target
= control target key end

     0   :  { %10 = vsyncpa [#allocation3], 0  ;;  %s5345_s0 = inlined_call_operand.vmem [shape: bf16[32,256], index: 0, kind: input, shape index: {}]   ;;  %s5346_s1 = inlined_call_operand.hbm [shape: f32[32,128], index: 1, kind: input, shape index: {}, may-alias: {1,3}]   ;;  %s5347_s2 = inlined_call_operand.hbm [shape: f32[128,256], index: 2, kind: input, shape index: {}, may-alias: {2,4}]   ;;  %s5348_s3 = inlined_call_operand.hbm [shape: f32[32,128], index: 3, kind: output, shape index: {0}, may-alias: {1,3}]   ;;  %s5349_s4 = inlined_call_operand.hbm [shape: f32[128,256], index: 4, kind: output, shape index: {1}, may-alias: {2,4}]  }
   0x1   :  { %11 = vsyncpa [#allocation6], 0 }
   0x2   :  { %12 = vsyncpa [#allocation4], 0 }
   0x3   :  { %13 = vsyncpa [#allocation9], 0  ;;  %s3691_s15 = smov [#allocation2]  }
   0x4   :  { %s21_s16 = sshll.u32 %s3691_s15, 4  ;;  %s22_s16 = int_to_ptr.vmem [resolvable:$true] %s21_s16 }
   0x5   :  { %s3611_s17 = scalar_lea.vmem %s22_s16, 512  ;;  %p3616_p1 = scmp.lt.s32.totalorder %s22_s16, %s22_s16 }
   0x6   :  { %p3612_p0 = scmp.ne.s32.totalorder %s22_s16, %s3611_s17  ;;  %p3617_p2 = scmp.lt.s32.totalorder %s3611_s17, %s3611_s17 }
   0x8   :  { %p3618_p3 = por %p3617_p2, %p3616_p1 }
   0xa   :  { %p3619_p4 = pnand %p3618_p3, %p3612_p0 }
   0xc   :  { %3622 = shalt.err (!%p3619_p4)
}
   0xd   :  { %s3692_s18 = smov 128   ;;  %s3693_s19 = smov 8  }
   0xe   :  { %27 = dma.hbm_to_vmem [thread:$0]  %s5346_s1, 512, %s22_s16, [#allocation3], %s3692_s18, %s3692_s18, %s3693_s19  }
   0xf   :  { %s3694_s22 = smov [#allocation5]  }
  0x10   :  { %s33_s23 = sshll.u32 %s3694_s22, 4  ;;  %s34_s23 = int_to_ptr.vmem [resolvable:$true] %s33_s23 }
  0x11   :  { %s3631_s24 = scalar_lea.vmem %s34_s23, 4096  ;;  %p3636_p6 = scmp.lt.s32.totalorder %s34_s23, %s34_s23 }
  0x12   :  { %p3632_p5 = scmp.ne.s32.totalorder %s34_s23, %s3631_s24  ;;  %p3637_p7 = scmp.lt.s32.totalorder %s3631_s24, %s3631_s24 }
  0x14   :  { %p3638_p8 = por %p3637_p7, %p3636_p6 }
  0x16   :  { %p3639_p9 = pnand %p3638_p8, %p3632_p5 }
  0x18   :  { %3642 = shalt.err (!%p3639_p9)
}
  0x19   :  { %s3695_s25 = smov 256   ;;  %s3696_s26 = smov 16  }
  0x1a   :  { %39 = dma.hbm_to_vmem [thread:$0]  %s5347_s2, 4096, %s34_s23, [#allocation6], %s3695_s25, %s3695_s25, %s3696_s26  }
  0x1b   :  { %3683 = dma.done.wait [#allocation3], 512  }
  0x1c   :  { %3684 = vsyncadd [#allocation3], 4294966784 }
  0x1d   :  { %3685 = dma.done.wait [#allocation6], 4096  }
  0x1e   :  { %3686 = vsyncadd [#allocation6], 4294963200  ;;  %v3737_v0 = vld [vmem:[#allocation5 + $0xe8] sm:$0xff]  ;;  %v3739_v1 = vld [vmem:[#allocation5 + $0xf8] sm:$0xff]  ;;  %vm358_vm0 = vcmask 261120  }
  0x1f   :  { %v3741_v2 = vld [vmem:[#allocation5 + $0xe0] sm:$0xff]  ;;  %v3745_v3 = vpack.c.bf16 %v3739_v1, %v3737_v0  ;;  %v3747_v4 = vld [vmem:[#allocation5 + $0xf0] sm:$0xff]  ;;  %v3749_v5 = vld [vmem:[#allocation5 + $0xc8] sm:$0xff] }
  0x20   :  { %5443 = vst [vmem:[#allocation14_spill] sm:$0xff] %v3741_v2  ;;  %v3751_v6 = vld [vmem:[#allocation5 + $0xd8] sm:$0xff]  ;;  %v3755_v7 = vpack.c.bf16 %v3747_v4, %v3741_v2  ;;  %v3766_v9 = vld [vmem:[#allocation5 + $0xc0] sm:$0xff]  ;;  %v3768_v10 = vld [vmem:[#allocation5 + $0xd0] sm:$0xff] }
  0x21   :  { %v3759_v8 = vpack.c.bf16 %v3751_v6, %v3749_v5  ;;  %172 = vmatprep.subr.bf16.mxu1 %v3745_v3  ;;  %123 = vmatprep.subr.bf16.mxu0 %v3745_v3  ;;  %5444 = vst [vmem:[#allocation15_spill] sm:$0xff] %v3766_v9  ;;  %5445 = vst [vmem:[#allocation16_spill] sm:$0xff] %v3768_v10  ;;  %v3771_v11 = vld [vmem:[#allocation5 + $0xa8] sm:$0xff]  ;;  %v3773_v12 = vld [vmem:[#allocation5 + $0xb8] sm:$0xff]  ;;  %v3777_v13 = vpack.c.bf16 %v3768_v10, %v3766_v9 }
  0x22   :  { %173 = vmatpush1.bf16.xpose.msra.mxu1 %v3755_v7  ;;  %124 = vmatpush1.bf16.xpose.msra.mxu0 %v3755_v7  ;;  %5446 = vst [vmem:[#allocation17_spill] sm:$0xff] %v3771_v11  ;;  %5447 = vst [vmem:[#allocation18_spill] sm:$0xff] %v3773_v12  ;;  %v3781_v14 = vpack.c.bf16 %v3773_v12, %v3771_v11  ;;  %v3783_v15 = vld [vmem:[#allocation5 + $0x8] sm:$0xff]  ;;  %v3785_v16 = vld [vmem:[#allocation5 + $0x18] sm:$0xff] }
  0x23   :  { %174 = vmatprep.subr.bf16.mxu1 %v3759_v8  ;;  %125 = vmatprep.subr.bf16.mxu0 %v3759_v8  ;;  %v3789_v17 = vpack.c.bf16 %v3785_v16, %v3783_v15  ;;  %v3794_v18 = vld [vmem:[#allocation5 + $0xa0] sm:$0xff]  ;;  %v3796_v19 = vld [vmem:[#allocation5 + $0xb0] sm:$0xff]  ;;  %v3799_v20 = vld [vmem:[#allocation5 + $0x88] sm:$0xff] }
  0x24   :  { %5448 = vst [vmem:[#allocation19_spill] sm:$0xff] %v3794_v18  ;;  %5449 = vst [vmem:[#allocation20_spill] sm:$0xff] %v3796_v19  ;;  %v3801_v21 = vld [vmem:[#allocation5 + $0x98] sm:$0xff]  ;;  %v3806_v22 = vpack.c.bf16 %v3796_v19, %v3794_v18  ;;  %v3814_v24 = vld [vmem:[#allocation5 + $0x80] sm:$0xff] }
  0x25   :  { %204 = vmatprep.mubr.bf16.mxu1 %v3789_v17  ;;  %5450 = vst [vmem:[#allocation21_spill] sm:$0xff] %v3799_v20  ;;  %5451 = vst [vmem:[#allocation22_spill] sm:$0xff] %v3801_v21  ;;  %v3810_v23 = vpack.c.bf16 %v3801_v21, %v3799_v20  ;;  %v3816_v25 = vld [vmem:[#allocation5 + $0x90] sm:$0xff]  ;;  %v3819_v26 = vld [vmem:[#allocation5 + $0x68] sm:$0xff] }
  0x26   :  { %5452 = vst [vmem:[#allocation23_spill] sm:$0xff] %v3814_v24  ;;  %5453 = vst [vmem:[#allocation24_spill] sm:$0xff] %v3816_v25  ;;  %v3821_v27 = vld [vmem:[#allocation5 + $0x78] sm:$0xff]  ;;  %v3826_v28 = vpack.c.bf16 %v3816_v25, %v3814_v24  ;;  %v3834_v30 = vld [vmem:[#allocation5 + $0x60] sm:$0xff] }
  0x27   :  { %5454 = vst [vmem:[#allocation25_spill] sm:$0xff] %v3819_v26  ;;  %5455 = vst [vmem:[#allocation26_spill] sm:$0xff] %v3821_v27  ;;  %v3830_v29 = vpack.c.bf16 %v3821_v27, %v3819_v26  ;;  %v3836_v31 = vld [vmem:[#allocation5 + $0x70] sm:$0xff]  ;;  %v3839_v32 = vld [vmem:[#allocation5 + $0x48] sm:$0xff] }
  0x28   :  { %v3841_v33 = vld [vmem:[#allocation5 + $0x58] sm:$0xff]  ;;  %v3846_v34 = vpack.c.bf16 %v3836_v31, %v3834_v30  ;;  %v3854_v36 = vld [vmem:[#allocation5 + $0x40] sm:$0xff]  ;;  %v3856_v37 = vld [vmem:[#allocation5 + $0x50] sm:$0xff] }
  0x29   :  { %5456 = vst [vmem:[#allocation27_spill] sm:$0xff] %v3841_v33  ;;  %v3850_v35 = vpack.c.bf16 %v3841_v33, %v3839_v32  ;;  %v3859_v38 = vld [vmem:[#allocation5 + $0x28] sm:$0xff]  ;;  %v3861_v39 = vld [vmem:[#allocation5 + $0x38] sm:$0xff]  ;;  %v3866_v40 = vpack.c.bf16 %v3856_v37, %v3854_v36  ;;  %v3874_v42 = vld [vmem:[#allocation5 + $0x20] sm:$0xff] }
  0x2a   :  { %175 = vmatpush1.bf16.xpose.msra.mxu1 %v3777_v13  ;;  %126 = vmatpush1.bf16.xpose.msra.mxu0 %v3777_v13  ;;  %5457 = vst [vmem:[#allocation28_spill] sm:$0xff] %v3861_v39  ;;  %v3870_v41 = vpack.c.bf16 %v3861_v39, %v3859_v38  ;;  %v3876_v43 = vld [vmem:[#allocation5 + $0x30] sm:$0xff]  ;;  %v3886_v45 = vld [vmem:[#allocation5] sm:$0xff]  ;;  %v3939_v53 = vld [vmem:[#allocation2 + $0x8] sm:$0xff] }
  0x2b   :  { %176 = vmatprep.subr.bf16.mxu1 %v3781_v14  ;;  %127 = vmatprep.subr.bf16.mxu0 %v3781_v14  ;;  %v3882_v44 = vpack.c.bf16 %v3876_v43, %v3874_v42  ;;  %v3888_v46 = vld [vmem:[#allocation5 + $0x10] sm:$0xff]  ;;  %v3916_v48 = vld [vmem:[%s5345_s0 + $0x4] ss:$8 sps:$4 sm:$0xff]   ;;  %v3921_v49 = vld [vmem:[%s5345_s0] ss:$8 sps:$4 sm:$0xff]  }
  0x2c   :  { %v3894_v47 = vpack.c.bf16 %v3888_v46, %v3886_v45  ;;  %155 = vmatprep.mubr.bf16.mxu0 %v3916_v48  ;;  %v3928_v50 = vld [vmem:[%s5345_s0 + $0x14] ss:$8 sps:$4 sm:$0xff]   ;;  %v3934_v51 = vld [vmem:[%s5345_s0 + $0x10] ss:$8 sps:$4 sm:$0xff]   ;;  %v3937_v52 = vld [vmem:[#allocation2] sm:$0xff] }
  0x2d   :  { %5458 = vst [vmem:[#allocation29_spill] sm:$0xff] %v3928_v50  ;;  %5459 = vst [vmem:[#allocation30_spill] sm:$0xff] %v3934_v51  ;;  %v269_v54 = vpack.c.bf16 %v3939_v53, %v3937_v52 }
  0x32   :  { %177 = vmatpush1.bf16.xpose.msra.mxu1 %v3806_v22  ;;  %128 = vmatpush1.bf16.xpose.msra.mxu0 %v3806_v22 }
  0x33   :  { %178 = vmatprep.subr.bf16.mxu1 %v3810_v23  ;;  %129 = vmatprep.subr.bf16.mxu0 %v3810_v23 }
  0x3a   :  { %179 = vmatpush1.bf16.xpose.msra.mxu1 %v3826_v28  ;;  %130 = vmatpush1.bf16.xpose.msra.mxu0 %v3826_v28 }
  0x3b   :  { %180 = vmatprep.subr.bf16.mxu1 %v3830_v29  ;;  %131 = vmatprep.subr.bf16.mxu0 %v3830_v29 }
  0x42   :  { %181 = vmatpush1.bf16.xpose.msra.mxu1 %v3846_v34  ;;  %132 = vmatpush1.bf16.xpose.msra.mxu0 %v3846_v34 }
  0x43   :  { %182 = vmatprep.subr.bf16.mxu1 %v3850_v35  ;;  %133 = vmatprep.subr.bf16.mxu0 %v3850_v35 }
  0x4a   :  { %183 = vmatpush1.bf16.xpose.msra.mxu1 %v3866_v40  ;;  %134 = vmatpush1.bf16.xpose.msra.mxu0 %v3866_v40 }
  0x4b   :  { %184 = vmatprep.subr.bf16.mxu1 %v3870_v41  ;;  %135 = vmatprep.subr.bf16.mxu0 %v3870_v41 }
  0x52   :  { %185 = vmatpush1.bf16.xpose.msra.mxu1 %v3882_v44  ;;  %136 = vmatpush1.bf16.xpose.msra.mxu0 %v3882_v44 }
  0x53   :  { %186 = vmatprep.subr.bf16.mxu1 %v3789_v17  ;;  %137 = vmatprep.subr.bf16.mxu0 %v3789_v17 }
  0x5a   :  { %187 = vmatpush1.bf16.xpose.msra.mxu1 %v3894_v47  ;;  %138 = vmatpush1.bf16.xpose.msra.mxu0 %v3894_v47 }
  0x61   :  { %205 = vmatmul.mubr.bf16.vlgmr.msra.gmra.mxu1 %v3894_v47  ;;  %156 = vmatmul.mubr.bf16.vlgmr.msra.gmra.mxu0 %v3921_v49 }
  0x62   :  { %212 = vmatprep.mubr.bf16.mxu1 %v3870_v41  ;;  %163 = vmatprep.mubr.bf16.mxu0 %v3928_v50 }
  0x69   :  { %213 = vmatmul.mubr.bf16.gmra.mxu1 %v3882_v44  ;;  %164 = vmatmul.mubr.bf16.gmra.mxu0 %v3934_v51 }
  0x6a   :  { %220 = vmatprep.mubr.bf16.mxu1 %v3850_v35  ;;  %3144 = vmatprep.mubr.bf16.mxu0 %v269_v54 }
  0x71   :  { %221 = vmatmul.mubr.bf16.gmra.mxu1 %v3866_v40 }
  0x72   :  { %228 = vmatprep.mubr.bf16.mxu1 %v3830_v29 }
  0x79   :  { %229 = vmatmul.mubr.bf16.gmra.mxu1 %v3846_v34 }
  0x7a   :  { %236 = vmatprep.mubr.bf16.mxu1 %v3810_v23 }
  0x81   :  { %237 = vmatmul.mubr.bf16.gmra.mxu1 %v3826_v28 }
  0x82   :  { %244 = vmatprep.mubr.bf16.mxu1 %v3781_v14 }
  0x89   :  { %245 = vmatmul.mubr.bf16.gmra.mxu1 %v3806_v22 }
  0x8a   :  { %252 = vmatprep.mubr.bf16.mxu1 %v3759_v8 }
  0x91   :  { %253 = vmatmul.mubr.bf16.gmra.mxu1 %v3777_v13 }
  0x92   :  { %260 = vmatprep.mubr.bf16.mxu1 %v3745_v3 }
  0x99   :  { %261 = vmatmul.mubr.bf16.gmra.mxu1 %v3755_v7 }
 0x121   :  { %v206_v55 = vpop.f32.mrf.mxu1 }
 0x123   :  { %v208_v56 = vpop.f32.mrf.mxu1 }
 0x125   :  { %v209_v57 = vpop.f32.mrf.mxu1 }
 0x126   :  { %v271_v58 = vpack.c.bf16 %v209_v57, %v206_v55 }
 0x127   :  { %v211_v59 = vpop.f32.mrf.mxu1 }
 0x129   :  { %v214_v60 = vpop.f32.mrf.mxu1 }
 0x12b   :  { %v216_v61 = vpop.f32.mrf.mxu1 }
 0x12d   :  { %v217_v62 = vpop.f32.mrf.mxu1 }
 0x12e   :  { %v272_v63 = vpack.c.bf16 %v217_v62, %v214_v60 }
 0x12f   :  { %v219_v39 = vpop.f32.mrf.mxu1 }
 0x131   :  { %v222_v33 = vpop.f32.mrf.mxu1 }
 0x133   :  { %v224_v26 = vpop.f32.mrf.mxu1 }
 0x135   :  { %v225_v24 = vpop.f32.mrf.mxu1 }
 0x137   :  { %v227_v27 = vpop.f32.mrf.mxu1 }
 0x139   :  { %v230_v25 = vpop.f32.mrf.mxu1 }
 0x13b   :  { %v232_v20 = vpop.f32.mrf.mxu1 }
 0x13d   :  { %v233_v18 = vpop.f32.mrf.mxu1 }
 0x13f   :  { %v235_v21 = vpop.f32.mrf.mxu1 }
 0x141   :  { %v238_v19 = vpop.f32.mrf.mxu1 }
 0x143   :  { %v240_v54 = vpop.f32.mrf.mxu1 }
 0x145   :  { %v241_v11 = vpop.f32.mrf.mxu1 }
 0x146   :  { %v275_v54 = vpack.c.bf16 %v241_v11, %v238_v19 }
 0x147   :  { %v243_v56 = vpop.f32.mrf.mxu1 }
 0x148   :  { %v274_v56 = vpack.c.bf16 %v233_v18, %v230_v25 }
 0x149   :  { %v246_v9 = vpop.f32.mrf.mxu1 }
 0x14b   :  { %v248_v55 = vpop.f32.mrf.mxu1 }
 0x14d   :  { %v249_v57 = vpop.f32.mrf.mxu1 }
 0x14e   :  { %v276_v21 = vpack.c.bf16 %v249_v57, %v246_v9  ;;  %v157_v9 = vpop.f32.mrf.mxu0  ;;  %v5365_v57 = vmov 0  }
 0x14f   :  { %v251_v59 = vpop.f32.mrf.mxu1 }
 0x150   :  { %v159_v11 = vpop.f32.mrf.mxu0 }
 0x151   :  { %v254_v61 = vpop.f32.mrf.mxu1 }
 0x152   :  { %v160_v18 = vpop.f32.mrf.mxu0 }
 0x153   :  { %v256_v12 = vpop.f32.mrf.mxu1  ;;  %v280_v11 = vmul.f32 %v160_v18, %v3939_v53 }
 0x154   :  { %v273_v12 = vpack.c.bf16 %v225_v24, %v222_v33  ;;  %v162_v19 = vpop.f32.mrf.mxu0 }
 0x155   :  { %v257_v60 = vpop.f32.mrf.mxu1 }
 0x156   :  { %v277_v20 = vpack.c.bf16 %v257_v60, %v254_v61  ;;  %v165_v24 = vpop.f32.mrf.mxu0 }
 0x157   :  { %v259_v39 = vpop.f32.mrf.mxu1 }
 0x158   :  { %v167_v25 = vpop.f32.mrf.mxu0 }
 0x159   :  { %v262_v62 = vpop.f32.mrf.mxu1 }
 0x15a   :  { %v168_v33 = vpop.f32.mrf.mxu0 }
 0x15b   :  { %v264_v26 = vpop.f32.mrf.mxu1 }
 0x15d   :  { %v265_v10 = vpop.f32.mrf.mxu1 }
 0x15e   :  { %v278_v27 = vpack.c.bf16 %v265_v10, %v262_v62  ;;  %v50_v10 = vld [vmem:[#allocation2 + $0x18] sm:$0xff] }
 0x15f   :  { %v267_v2 = vpop.f32.mrf.mxu1 }
 0x160   :  { %3128 = vmatprep.subr.bf16.mxu0 %v278_v27  ;;  %v49_v2 = vld [vmem:[#allocation2 + $0x10] sm:$0xff] }
 0x161   :  { %3129 = vmatpush3.bf16.msra.mxu0 %v278_v27  ;;  %v270_v55 = vpack.c.bf16 %v50_v10, %v49_v2 }
 0x162   :  { %3130 = vmatprep.subr.bf16.mxu0 %v277_v20 }
 0x165   :  { %3131 = vmatpush3.bf16.msra.mxu0 %v277_v20 }
 0x166   :  { %3132 = vmatprep.subr.bf16.mxu0 %v276_v21 }
 0x169   :  { %3133 = vmatpush3.bf16.msra.mxu0 %v276_v21 }
 0x16a   :  { %3134 = vmatprep.subr.bf16.mxu0 %v275_v54 }
 0x16d   :  { %3135 = vmatpush3.bf16.msra.mxu0 %v275_v54  ;;  %v281_v54 = vmul.f32 %v165_v24, %v49_v2 }
 0x16e   :  { %3136 = vmatprep.subr.bf16.mxu0 %v274_v56 }
 0x171   :  { %3137 = vmatpush3.bf16.msra.mxu0 %v274_v56  ;;  %v282_v56 = vmul.f32 %v168_v33, %v50_v10 }
 0x172   :  { %3138 = vmatprep.subr.bf16.mxu0 %v273_v12 }
 0x175   :  { %3139 = vmatpush3.bf16.msra.mxu0 %v273_v12 }
 0x176   :  { %3140 = vmatprep.subr.bf16.mxu0 %v272_v63 }
 0x179   :  { %3141 = vmatpush3.bf16.msra.mxu0 %v272_v63  ;;  %v170_v63 = vpop.f32.mrf.mxu0 }
 0x17a   :  { %3142 = vmatprep.subr.bf16.mxu0 %v271_v58 }
 0x17d   :  { %3143 = vmatpush3.bf16.msra.mxu0 %v271_v58 }
 0x17e   :  { %395 = vmatprep.subr.bf16.mxu0 %v3928_v50 }
 0x180   :  { %3145 = vmatmul.mubr.bf16.vlgmr.msra.gmra.mxu0 %v270_v55  ;;  %v279_v55 = vmul.f32 %v157_v9, %v3937_v52 }
 0x181   :  { %396 = vmatpush1.bf16.msra.mxu0 %v3934_v51  ;;  %415 = vmatprep.mubr.bf16.mxu0 %v5365_v57 }
 0x182   :  { %397 = vmatprep.subr.bf16.mxu0 %v3916_v48 }
 0x185   :  { %398 = vmatpush1.bf16.msra.mxu0 %v3921_v49 }
 0x240   :  { %v3146_v58 = vpop.f32.mrf.mxu0 }
 0x241   :  { %v326_v59 = vadd.f32 1.1920929e-07, %v3146_v58 }
 0x242   :  { %v317_v61 = vpop.f32.mrf.mxu0 }
 0x243   :  { %v318_v60 = vadd.f32 1.1920929e-07, %v317_v61  ;;  %3307 = vrcp.f32 %v326_v59 }
 0x244   :  { %v3147_v39 = vpop.f32.mrf.mxu0 }
 0x245   :  { %v329_v62 = vadd.f32 1.1920929e-07, %v3147_v39  ;;  %3309 = vrcp.f32 %v318_v60 }
 0x246   :  { %v320_v26 = vpop.f32.mrf.mxu0 }
 0x247   :  { %3311 = vrcp.f32 %v329_v62  ;;  %v321_v27 = vadd.f32 1.1920929e-07, %v320_v26 }
 0x249   :  { %3313 = vrcp.f32 %v321_v27 }
 0x250   :  { %v3308_v20 = vpop.eup %3307 }
 0x251   :  { %v3950_v19 = vmul.f32 %v3308_v20, %v281_v54 }
 0x252   :  { %v3310_v21 = vpop.eup %3309 }
 0x253   :  { %5460 = vst [vmem:[#allocation31_spill] sm:$0xff] %v3950_v19  ;;  %v3958_v59 = vmul.f32 %v3310_v21, %v279_v55 }
 0x254   :  { %v3312_v12 = vpop.eup %3311 }
 0x255   :  { %v3952_v25 = vmul.f32 %v3312_v12, %v282_v56  ;;  %5463 = vst [vmem:[#allocation34_spill] sm:$0xff] %v3958_v59 }
 0x256   :  { %v3314_v63 = vpop.eup %3313 }
 0x257   :  { %5461 = vst [vmem:[#allocation32_spill] sm:$0xff] %v3952_v25  ;;  %v3956_v58 = vpack.c.bf16 %v3952_v25, %v3950_v19  ;;  %v3960_v61 = vmul.f32 %v3314_v63, %v280_v11 }
 0x259   :  { %5462 = vst [vmem:[#allocation33_spill] sm:$0xff] %v3956_v58  ;;  %5464 = vst [vmem:[#allocation35_spill] sm:$0xff] %v3960_v61  ;;  %3148 = vmatprep.subr.bf16.mxu1 %v3956_v58  ;;  %v3965_v52 = vpack.c.bf16 %v3960_v61, %v3958_v59 }
 0x25a   :  { %3149 = vmatpush3.bf16.msra.mxu1 %v3956_v58 }
 0x25b   :  { %5465 = vst [vmem:[#allocation36_spill] sm:$0xff] %v3965_v52  ;;  %342 = vxpose.xlu0.c.b16.start [1/2] (short) %v3965_v52, 128  ;;  %3150 = vmatprep.subr.bf16.mxu1 %v3965_v52 }
 0x25e   :  { %3151 = vmatpush3.bf16.msra.mxu1 %v3965_v52 }
 0x25f   :  { %343 = vxpose.xlu0.c.b16.end [2/2] (short) %v3956_v58, 128  ;;  %633 = vmatprep.subr.bf16.mxu1 %v3745_v3 }
 0x2bd   :  { %v350_v53 = vpop.trf.xlu0 }
 0x2be   :  { %2984 = vmatmul.mubr.msk.bf16.vlgmr.msra.gmra.mxu0 %vm358_vm0, %v350_v53  ;;  %3152 = vmatprep.mubr.msk.bf16.mxu1 %vm358_vm0, %v350_v53 }
 0x2bf   :  { %425 = vmatprep.mubr.bf16.mxu0 %v5365_v57 }
 0x2c1   :  { %v351_v2 = vpop.trf.xlu0 }
 0x2c2   :  { %3153 = vmatmul.mubr.msk.bf16.vlgmr.msra.gmra.mxu1 %vm358_vm0, %v351_v2 }
 0x2c3   :  { %634 = vmatpush1.bf16.msra.mxu1 %v3755_v7 }
 0x2c4   :  { %635 = vmatprep.subr.bf16.mxu1 %v3759_v8 }
 0x2c5   :  { %v352_v10 = vpop.trf.xlu0 }
 0x2c6   :  { %2985 = vmatmul.mubr.msk.bf16.gmra.mxu0 %vm358_vm0, %v351_v2  ;;  %3156 = vmatprep.mubr.msk.bf16.mxu1 %vm358_vm0, %v352_v10 }
 0x2c7   :  { %435 = vmatprep.mubr.bf16.mxu0 %v5365_v57  ;;  %636 = vmatpush1.bf16.msra.mxu1 %v3777_v13 }
 0x2c8   :  { %637 = vmatprep.subr.bf16.mxu1 %v3781_v14 }
 0x2c9   :  { %v353_v3 = vpop.trf.xlu0 }
 0x2ca   :  { %3157 = vmatmul.mubr.msk.bf16.gmra.mxu1 %vm358_vm0, %v353_v3 }
 0x2cb   :  { %638 = vmatpush1.bf16.msra.mxu1 %v3806_v22 }
 0x2cc   :  { %639 = vmatprep.subr.bf16.mxu1 %v3810_v23 }
 0x2cd   :  { %v354_v7 = vpop.trf.xlu0 }
 0x2ce   :  { %2986 = vmatmul.mubr.msk.bf16.gmra.mxu0 %vm358_vm0, %v352_v10  ;;  %3160 = vmatprep.mubr.msk.bf16.mxu1 %vm358_vm0, %v354_v7 }
 0x2cf   :  { %445 = vmatprep.mubr.bf16.mxu0 %v5365_v57  ;;  %640 = vmatpush1.bf16.msra.mxu1 %v3826_v28 }
 0x2d0   :  { %641 = vmatprep.subr.bf16.mxu1 %v3830_v29 }
 0x2d1   :  { %v355_v8 = vpop.trf.xlu0 }
 0x2d2   :  { %3161 = vmatmul.mubr.msk.bf16.gmra.mxu1 %vm358_vm0, %v355_v8 }
 0x2d3   :  { %642 = vmatpush1.bf16.msra.mxu1 %v3846_v34 }
 0x2d4   :  { %643 = vmatprep.subr.bf16.mxu1 %v3850_v35 }
 0x2d5   :  { %v356_v13 = vpop.trf.xlu0 }
 0x2d6   :  { %2987 = vmatmul.mubr.msk.bf16.gmra.mxu0 %vm358_vm0, %v353_v3  ;;  %3164 = vmatprep.mubr.msk.bf16.mxu1 %vm358_vm0, %v356_v13 }
 0x2d7   :  { %455 = vmatprep.mubr.bf16.mxu0 %v5365_v57  ;;  %644 = vmatpush1.bf16.msra.mxu1 %v3866_v40 }
 0x2d8   :  { %645 = vmatprep.subr.bf16.mxu1 %v3870_v41 }
 0x2d9   :  { %v357_v14 = vpop.trf.xlu0 }
 0x2da   :  { %3165 = vmatmul.mubr.msk.bf16.gmra.mxu1 %vm358_vm0, %v357_v14 }
 0x2db   :  { %646 = vmatpush1.bf16.msra.mxu1 %v3882_v44  ;;  %665 = vmatprep.mubr.bf16.mxu1 %v5365_v57 }
 0x2dc   :  { %647 = vmatprep.subr.bf16.mxu1 %v3789_v17 }
 0x2de   :  { %2988 = vmatmul.mubr.msk.bf16.gmra.mxu0 %vm358_vm0, %v354_v7 }
 0x2df   :  { %465 = vmatprep.mubr.bf16.mxu0 %v5365_v57  ;;  %648 = vmatpush1.bf16.msra.mxu1 %v3894_v47 }
 0x2e6   :  { %2989 = vmatmul.mubr.msk.bf16.gmra.mxu0 %vm358_vm0, %v355_v8 }
 0x2e7   :  { %475 = vmatprep.mubr.bf16.mxu0 %v5365_v57 }
 0x2ee   :  { %2990 = vmatmul.mubr.msk.bf16.gmra.mxu0 %vm358_vm0, %v356_v13 }
 0x2ef   :  { %485 = vmatprep.mubr.bf16.mxu0 %v5365_v57 }
 0x2f6   :  { %2991 = vmatmul.mubr.msk.bf16.gmra.mxu0 %vm358_vm0, %v357_v14 }
 0x2f7   :  { %858 = vmatprep.mubr.bf16.mxu0 %v3916_v48 }
 0x37e   :  { %v417_v56 = vpop.f32.mrf.mxu0 }
 0x380   :  { %v419_v12 = vpop.f32.mrf.mxu0 }
 0x382   :  { %v3154_v22 = vpop.f32.mrf.mxu1  ;;  %v421_v55 = vpop.f32.mrf.mxu0 }
 0x384   :  { %v530_v17 = vpop.f32.mrf.mxu1  ;;  %v423_v11 = vpop.f32.mrf.mxu0 }
 0x386   :  { %v3155_v23 = vpop.f32.mrf.mxu1  ;;  %v427_v63 = vpop.f32.mrf.mxu0 }
 0x387   :  { %v594_v40 = vpack.c.bf16 %v3155_v23, %v3154_v22 }
 0x388   :  { %v533_v28 = vpop.f32.mrf.mxu1  ;;  %v429_v53 = vpop.f32.mrf.mxu0 }
 0x389   :  { %v593_v29 = vpack.c.bf16 %v533_v28, %v530_v17 }
 0x38a   :  { %v3158_v34 = vpop.f32.mrf.mxu1  ;;  %v4020_v2 = vpop.f32.mrf.mxu0 }
 0x38b   :  { %666 = vmatmul.mubr.bf16.vlgmr.msra.gmra.mxu1 %v593_v29 }
 0x38c   :  { %675 = vmatprep.mubr.bf16.mxu1 %v5365_v57  ;;  %v546_v35 = vpop.f32.mrf.mxu1  ;;  %v4022_v10 = vpop.f32.mrf.mxu0 }
 0x38e   :  { %v3159_v41 = vpop.f32.mrf.mxu1  ;;  %v4024_v3 = vpop.f32.mrf.mxu0 }
 0x38f   :  { %v596_v18 = vpack.c.bf16 %v3159_v41, %v3158_v34 }
 0x390   :  { %v549_v44 = vpop.f32.mrf.mxu1  ;;  %v4026_v7 = vpop.f32.mrf.mxu0 }
 0x391   :  { %v595_v47 = vpack.c.bf16 %v549_v44, %v546_v35 }
 0x392   :  { %v3162_v9 = vpop.f32.mrf.mxu1  ;;  %v4028_v8 = vpop.f32.mrf.mxu0 }
 0x393   :  { %676 = vmatmul.mubr.bf16.gmra.mxu1 %v594_v40 }
 0x394   :  { %685 = vmatprep.mubr.bf16.mxu1 %v5365_v57  ;;  %v562_v48 = vpop.f32.mrf.mxu1  ;;  %v4030_v13 = vpop.f32.mrf.mxu0 }
 0x396   :  { %v3163_v24 = vpop.f32.mrf.mxu1  ;;  %v4032_v14 = vpop.f32.mrf.mxu0 }
 0x397   :  { %v598_v26 = vpack.c.bf16 %v3163_v24, %v3162_v9 }
 0x398   :  { %v565_v33 = vpop.f32.mrf.mxu1  ;;  %v4034_v23 = vpop.f32.mrf.mxu0 }
 0x399   :  { %v597_v60 = vpack.c.bf16 %v565_v33, %v562_v48 }
 0x39a   :  { %v3166_v39 = vpop.f32.mrf.mxu1  ;;  %v4036_v40 = vpop.f32.mrf.mxu0 }
 0x39b   :  { %686 = vmatmul.mubr.bf16.gmra.mxu1 %v595_v47 }
 0x39c   :  { %695 = vmatprep.mubr.bf16.mxu1 %v5365_v57  ;;  %v578_v62 = vpop.f32.mrf.mxu1  ;;  %v4038_v48 = vpop.f32.mrf.mxu0 }
 0x39e   :  { %v3167_v27 = vpop.f32.mrf.mxu1 }
 0x39f   :  { %v600_v54 = vpack.c.bf16 %v3167_v27, %v3166_v39  ;;  %v4040_v39 = vpop.f32.mrf.mxu0 }
 0x3a0   :  { %v581_v20 = vpop.f32.mrf.mxu1 }
 0x3a1   :  { %v599_v21 = vpack.c.bf16 %v581_v20, %v578_v62 }
 0x3a3   :  { %696 = vmatmul.mubr.bf16.gmra.mxu1 %v596_v18 }
 0x3a4   :  { %705 = vmatprep.mubr.bf16.mxu1 %v5365_v57 }
 0x3ab   :  { %706 = vmatmul.mubr.bf16.gmra.mxu1 %v597_v60 }
 0x3ac   :  { %715 = vmatprep.mubr.bf16.mxu1 %v5365_v57 }
 0x3b3   :  { %716 = vmatmul.mubr.bf16.gmra.mxu1 %v598_v26  ;;  %v601_v26 = vmul.f32 %v417_v56, %v3886_v45  ;;  %v604_v45 = vmul.f32 %v423_v11, %v3785_v16  ;;  %v606_v16 = vmul.f32 %v429_v53, %v3859_v38 }
 0x3b4   :  { %725 = vmatprep.mubr.bf16.mxu1 %v5365_v57 }
 0x3bb   :  { %726 = vmatmul.mubr.bf16.gmra.mxu1 %v599_v21 }
 0x3bc   :  { %735 = vmatprep.mubr.bf16.mxu1 %v5365_v57 }
 0x3c3   :  { %736 = vmatmul.mubr.bf16.gmra.mxu1 %v600_v54 }
 0x44b   :  { %v667_v22 = vpop.f32.mrf.mxu1 }
 0x44c   :  { %v668_v17 = vadd.f32 1.1920929e-07, %v667_v22  ;;  %v4047_v22 = vpop.f32.mrf.mxu0 }
 0x44d   :  { %v669_v28 = vpop.f32.mrf.mxu1 }
 0x44e   :  { %3315 = vrcp.f32 %v668_v17  ;;  %v670_v29 = vadd.f32 1.1920929e-07, %v669_v28 }
 0x44f   :  { %v671_v34 = vpop.f32.mrf.mxu1 }
 0x450   :  { %v672_v35 = vadd.f32 1.1920929e-07, %v671_v34  ;;  %3317 = vrcp.f32 %v670_v29  ;;  %v603_v29 = vmul.f32 %v421_v55, %v3888_v46 }
 0x451   :  { %v673_v41 = vpop.f32.mrf.mxu1 }
 0x452   :  { %3319 = vrcp.f32 %v672_v35  ;;  %v674_v44 = vadd.f32 1.1920929e-07, %v673_v41  ;;  %v602_v41 = vmul.f32 %v419_v12, %v3783_v15 }
 0x453   :  { %v677_v47 = vpop.f32.mrf.mxu1 }
 0x454   :  { %3321 = vrcp.f32 %v674_v44  ;;  %v678_v9 = vadd.f32 1.1920929e-07, %v677_v47 }
 0x455   :  { %v679_v18 = vpop.f32.mrf.mxu1 }
 0x456   :  { %3323 = vrcp.f32 %v678_v9  ;;  %v680_v24 = vadd.f32 1.1920929e-07, %v679_v18  ;;  %v4054_v18 = vpop.f32.mrf.mxu0 }
 0x457   :  { %v681_v33 = vpop.f32.mrf.mxu1 }
 0x458   :  { %3325 = vrcp.f32 %v680_v24  ;;  %v682_v60 = vadd.f32 1.1920929e-07, %v681_v33  ;;  %v605_v33 = vmul.f32 %v427_v63, %v3874_v42  ;;  %v607_v63 = vmul.f32 %v4020_v2, %v3876_v43 }
 0x459   :  { %v4042_v62 = vpop.f32.mrf.mxu1  ;;  %v610_v2 = vmul.f32 %v4026_v7, %v3839_v32  ;;  %v613_v7 = vmul.f32 %v4032_v14, %v3834_v30 }
 0x45a   :  { %3327 = vrcp.f32 %v682_v60 }
 0x45b   :  { %v3316_v27 = vpop.eup %3315  ;;  %v687_v20 = vpop.f32.mrf.mxu1 }
 0x45c   :  { %v688_v21 = vadd.f32 1.1920929e-07, %v687_v20  ;;  %v4045_v54 = vmul.f32 %v3316_v27, %v601_v26  ;;  %v4070_v20 = vpop.f32.mrf.mxu0 }
 0x45d   :  { %v689_v17 = vpop.f32.mrf.mxu1  ;;  %v3318_v28 = vpop.eup %3317 }
 0x45e   :  { %3329 = vrcp.f32 %v688_v21  ;;  %v690_v34 = vadd.f32 1.1920929e-07, %v689_v17  ;;  %v4059_v46 = vmul.f32 %v3318_v28, %v602_v41 }
 0x45f   :  { %v3320_v35 = vpop.eup %3319  ;;  %v691_v44 = vpop.f32.mrf.mxu1 }
 0x460   :  { %3331 = vrcp.f32 %v690_v34  ;;  %v692_v56 = vadd.f32 1.1920929e-07, %v691_v44  ;;  %v4052_v47 = vmul.f32 %v3320_v35, %v603_v29  ;;  %5466 = vst [vmem:[#allocation37_spill] sm:$0xff] %v4059_v46  ;;  %v4081_v29 = vpop.f32.mrf.mxu0  ;;  %v609_v35 = vmul.f32 %v4024_v3, %v3854_v36 }
 0x461   :  { %v3322_v9 = vpop.eup %3321  ;;  %v4056_v24 = vpop.f32.mrf.mxu1 }
 0x462   :  { %3333 = vrcp.f32 %v692_v56  ;;  %v4061_v55 = vmul.f32 %v3322_v9, %v604_v45  ;;  %v4093_v56 = vpop.f32.mrf.mxu0 }
 0x463   :  { %v3324_v15 = vpop.eup %3323  ;;  %v697_v12 = vpop.f32.mrf.mxu1 }
 0x464   :  { %5467 = vst [vmem:[#allocation38_spill] sm:$0xff] %v4061_v55  ;;  %v698_v11 = vadd.f32 1.1920929e-07, %v697_v12  ;;  %v4066_v60 = vpack.c.bf16 %v4061_v55, %v4059_v46  ;;  %v4068_v26 = vmul.f32 %v3324_v15, %v605_v33  ;;  %v611_v33 = vmul.f32 %v4028_v8, %v3856_v37 }
 0x465   :  { %v3326_v27 = vpop.eup %3325  ;;  %v4072_v42 = vpop.f32.mrf.mxu1  ;;  %v615_v8 = vmul.f32 %v4036_v40, %v3836_v31 }
 0x466   :  { %3335 = vrcp.f32 %v698_v11  ;;  %907 = vmatprep.mubr.bf16.mxu1 %v4066_v60  ;;  %v4077_v21 = vmul.f32 %v3326_v27, %v606_v16  ;;  %v4105_v16 = vpop.f32.mrf.mxu0 }
 0x467   :  { %v3328_v38 = vpop.eup %3327  ;;  %v701_v53 = vpop.f32.mrf.mxu1 }
 0x468   :  { %v702_v17 = vadd.f32 1.1920929e-07, %v701_v53  ;;  %v4079_v28 = vmul.f32 %v3328_v38, %v607_v63  ;;  %v4111_v38 = vpop.f32.mrf.mxu0 }
 0x469   :  { %v4083_v34 = vpop.f32.mrf.mxu1 }
 0x46a   :  { %3337 = vrcp.f32 %v702_v17 }
 0x46b   :  { %v3330_v41 = vpop.eup %3329  ;;  %v4087_v43 = vpop.f32.mrf.mxu1 }
 0x46c   :  { %v4091_v44 = vmul.f32 %v3330_v41, %v609_v35  ;;  %v4117_v41 = vpop.f32.mrf.mxu0 }
 0x46d   :  { %v3332_v45 = vpop.eup %3331  ;;  %v4095_v9 = vpop.f32.mrf.mxu1 }
 0x46e   :  { %v4099_v15 = vmul.f32 %v3332_v45, %v610_v2 }
 0x46f   :  { %v3334_v36 = vpop.eup %3333  ;;  %v4101_v3 = vpop.f32.mrf.mxu1 }
 0x470   :  { %v4103_v12 = vmul.f32 %v3334_v36, %v611_v33  ;;  %v479_v33 = vpop.f32.mrf.mxu0 }
 0x471   :  { %v713_v32 = vpop.f32.mrf.mxu1 }
 0x472   :  { %v4119_v36 = vpop.f32.mrf.mxu0 }
 0x473   :  { %v3336_v11 = vpop.eup %3335  ;;  %v717_v27 = vpop.f32.mrf.mxu1 }
 0x474   :  { %v4109_v63 = vmul.f32 %v3336_v11, %v613_v7  ;;  %v483_v46 = vpop.f32.mrf.mxu0 }
 0x475   :  { %v719_v37 = vpop.f32.mrf.mxu1 }
 0x476   :  { %v487_v59 = vpop.f32.mrf.mxu0 }
 0x477   :  { %v3338_v53 = vpop.eup %3337  ;;  %v721_v17 = vpop.f32.mrf.mxu1 }
 0x478   :  { %v4115_v35 = vmul.f32 %v3338_v53, %v615_v8  ;;  %v489_v58 = vpop.f32.mrf.mxu0 }
 0x479   :  { %v723_v2 = vpop.f32.mrf.mxu1 }
 0x47a   :  { %v491_v50 = vpop.f32.mrf.mxu0 }
 0x47b   :  { %v727_v45 = vpop.f32.mrf.mxu1 }
 0x47c   :  { %v728_v51 = vadd.f32 1.1920929e-07, %v727_v45 }
 0x47d   :  { %v729_v30 = vpop.f32.mrf.mxu1 }
 0x47e   :  { %v730_v11 = vadd.f32 1.1920929e-07, %v729_v30  ;;  %v724_v30 = vadd.f32 1.1920929e-07, %v723_v2  ;;  %v628_v2 = vmul.f32 %v483_v46, %v3751_v6 }
 0x47f   :  { %v731_v14 = vpop.f32.mrf.mxu1 }
 0x480   :  { %3339 = vrcp.f32 %v730_v11  ;;  %v732_v52 = vadd.f32 1.1920929e-07, %v731_v14  ;;  %v722_v11 = vadd.f32 1.1920929e-07, %v721_v17  ;;  %v626_v14 = vmul.f32 %v479_v33, %v3749_v5 }
 0x481   :  { %v733_v7 = vpop.f32.mrf.mxu1 }
 0x482   :  { %v734_v55 = vadd.f32 1.1920929e-07, %v733_v7  ;;  %v720_v7 = vadd.f32 1.1920929e-07, %v719_v37  ;;  %v630_v37 = vmul.f32 %v489_v58, %v3737_v0  ;;  %v712_v58 = vadd.f32 1.1920929e-07, %v4101_v3 }
 0x483   :  { %v737_v57 = vpop.f32.mrf.mxu1  ;;  %v708_v3 = vadd.f32 1.1920929e-07, %v4087_v43 }
 0x484   :  { %v738_v40 = vadd.f32 1.1920929e-07, %v737_v57  ;;  %3341 = vrcp.f32 %v734_v55  ;;  %v493_v55 = vpop.f32.mrf.mxu0 }
 0x485   :  { %v739_v61 = vpop.f32.mrf.mxu1 }
 0x486   :  { %v740_v31 = vadd.f32 1.1920929e-07, %v739_v61 }
 0x487   :  { %v741_v8 = vpop.f32.mrf.mxu1 }
 0x488   :  { %v742_v53 = vadd.f32 1.1920929e-07, %v741_v8  ;;  %3343 = vrcp.f32 %v740_v31  ;;  %v714_v8 = vadd.f32 1.1920929e-07, %v713_v32 }
 0x489   :  { %v743_v25 = vpop.f32.mrf.mxu1 }
 0x48a   :  { %3345 = vrcp.f32 %v742_v53  ;;  %v744_v19 = vadd.f32 1.1920929e-07, %v743_v25  ;;  %v631_v25 = vmul.f32 %v491_v50, %v3747_v4 }
 0x48b   :  { %3347 = vrcp.f32 %v738_v40 }
 0x48c   :  { %3349 = vrcp.f32 %v744_v19  ;;  %v718_v19 = vadd.f32 1.1920929e-07, %v717_v27 }
 0x48d   :  { %3351 = vrcp.f32 %v732_v52  ;;  %v3340_v57 = vpop.eup %3339  ;;  %v632_v52 = vmul.f32 %v493_v55, %v3739_v1 }
 0x48e   :  { %3353 = vrcp.f32 %v724_v30  ;;  %v5468_v30 = vld [vmem:[#allocation14_spill] sm:$0xff]  ;;  %v4142_v5 = vmul.f32 %v3340_v57, %v626_v14 }
 0x48f   :  { %3355 = vrcp.f32 %v728_v51  ;;  %v710_v51 = vadd.f32 1.1920929e-07, %v4095_v9  ;;  %v629_v17 = vmul.f32 %v487_v59, %v5468_v30  ;;  %v704_v9 = vadd.f32 1.1920929e-07, %v4083_v34  ;;  %v5470_v34 = vld [vmem:[#allocation18_spill] sm:$0xff] }
 0x490   :  { %3357 = vrcp.f32 %v720_v7  ;;  %v5469_v7 = vld [vmem:[#allocation16_spill] sm:$0xff]  ;;  %v624_v55 = vmul.f32 %v4111_v38, %v5470_v34  ;;  %v5474_v14 = vld [vmem:[#allocation22_spill] sm:$0xff] }
 0x491   :  { %v3342_v61 = vpop.eup %3341  ;;  %3359 = vrcp.f32 %v722_v11  ;;  %v627_v57 = vmul.f32 %v4119_v36, %v5469_v7  ;;  %v700_v11 = vadd.f32 1.1920929e-07, %v4072_v42  ;;  %v620_v30 = vmul.f32 %v4070_v20, %v5474_v14 }
 0x492   :  { %3361 = vrcp.f32 %v714_v8  ;;  %v4134_v6 = vmul.f32 %v3342_v61, %v628_v2  ;;  %v5471_v8 = vld [vmem:[#allocation15_spill] sm:$0xff]  ;;  %v694_v2 = vadd.f32 1.1920929e-07, %v4056_v24 }
 0x493   :  { %3363 = vrcp.f32 %v718_v19  ;;  %v625_v36 = vmul.f32 %v4117_v41, %v5471_v8 }
 0x494   :  { %3365 = vrcp.f32 %v710_v51  ;;  %v4154_v27 = vpack.c.bf16 %v4134_v6, %v4142_v5 }
 0x495   :  { %v3344_v31 = vpop.eup %3343  ;;  %3367 = vrcp.f32 %v712_v58 }
 0x496   :  { %v4130_v4 = vmul.f32 %v3344_v31, %v630_v37  ;;  %3369 = vrcp.f32 %v704_v9  ;;  %v5476_v9 = vld [vmem:[#allocation21_spill] sm:$0xff] }
 0x497   :  { %v3346_v53 = vpop.eup %3345  ;;  %3371 = vrcp.f32 %v708_v3 }
 0x498   :  { %v3348_v40 = vpop.eup %3347  ;;  %v4128_v32 = vmul.f32 %v3346_v53, %v631_v25  ;;  %v5472_v53 = vld [vmem:[#allocation17_spill] sm:$0xff]  ;;  %3373 = vrcp.f32 %v700_v11 }
 0x499   :  { %v3350_v45 = vpop.eup %3349  ;;  %v4136_v0 = vmul.f32 %v3348_v40, %v629_v17  ;;  %v622_v25 = vmul.f32 %v4093_v56, %v5472_v53  ;;  %v5475_v17 = vld [vmem:[#allocation19_spill] sm:$0xff]  ;;  %3375 = vrcp.f32 %v694_v2 }
 0x49a   :  { %v4132_v50 = vmul.f32 %v3350_v45, %v632_v52  ;;  %v3352_v46 = vpop.eup %3351  ;;  %v5473_v52 = vld [vmem:[#allocation20_spill] sm:$0xff]  ;;  %v621_v58 = vmul.f32 %v4081_v29, %v5475_v17 }
 0x49b   :  { %v4147_v59 = vpack.c.bf16 %v4128_v32, %v4136_v0  ;;  %v3354_v33 = vpop.eup %3353  ;;  %v4168_v43 = vmul.f32 %v3352_v46, %v627_v57  ;;  %v623_v51 = vmul.f32 %v4105_v16, %v5473_v52  ;;  %v618_v16 = vmul.f32 %v4047_v22, %v5476_v9  ;;  %v5478_v22 = vld [vmem:[#allocation24_spill] sm:$0xff] }
 0x49c   :  { %v4140_v1 = vpack.c.bf16 %v4132_v50, %v4130_v4  ;;  %v3356_v61 = vpop.eup %3355  ;;  %v4172_v19 = vmul.f32 %v3354_v33, %v624_v55  ;;  %v619_v55 = vmul.f32 %v4054_v18, %v5478_v22  ;;  %v5491_v22 = vld [vmem:[#allocation30_spill] sm:$0xff] }
 0x49d   :  { %v3358_v31 = vpop.eup %3357  ;;  %v4174_v38 = vmul.f32 %v3356_v61, %v625_v36  ;;  %v684_v61 = vadd.f32 1.1920929e-07, %v4042_v62  ;;  %v5480_v36 = vld [vmem:[#allocation23_spill] sm:$0xff] }
 0x49e   :  { %826 = vmatprep.subr.bf16.mxu0 %v4140_v1  ;;  %875 = vmatprep.subr.bf16.mxu1 %v4140_v1  ;;  %v4176_v42 = vmul.f32 %v3358_v31, %v622_v25  ;;  %v3360_v41 = vpop.eup %3359  ;;  %v5479_v31 = vld [vmem:[#allocation26_spill] sm:$0xff]  ;;  %v617_v53 = vmul.f32 %v4040_v39, %v5480_v36  ;;  %v5486_v39 = vld [vmem:[#allocation27_spill] sm:$0xff] }
 0x49f   :  { %827 = vmatpush1.bf16.xpose.msra.mxu0 %v4147_v59  ;;  %876 = vmatpush1.bf16.xpose.msra.mxu1 %v4147_v59  ;;  %v4180_v40 = vpack.c.bf16 %v4168_v43, %v4174_v38  ;;  %v3362_v56 = vpop.eup %3361  ;;  %v4197_v46 = vmul.f32 %v3360_v41, %v623_v51  ;;  %v616_v8 = vmul.f32 %v4038_v48, %v5479_v31  ;;  %v5482_v41 = vld [vmem:[#allocation25_spill] sm:$0xff]  ;;  %3377 = vrcp.f32 %v684_v61 }
 0x4a0   :  { %828 = vmatprep.subr.bf16.mxu0 %v4154_v27  ;;  %877 = vmatprep.subr.bf16.mxu1 %v4154_v27  ;;  %v4185_v37 = vpack.c.bf16 %v4172_v19, %v4176_v42  ;;  %v3364_v45 = vpop.eup %3363  ;;  %v4201_v33 = vmul.f32 %v3362_v56, %v620_v30  ;;  %v614_v18 = vmul.f32 %v4034_v23, %v5482_v41 }
 0x4a1   :  { %v3366_v24 = vpop.eup %3365  ;;  %v4203_v7 = vmul.f32 %v3364_v45, %v621_v58  ;;  %v612_v14 = vmul.f32 %v4030_v13, %v5486_v39  ;;  %v816_v30 = vpack.c.bf16 %v4115_v35, %v4109_v63  ;;  %v5488_v58 = vld [vmem:[#allocation28_spill] sm:$0xff]  ;;  %v814_v13 = vpack.c.bf16 %v4103_v12, %v4091_v44 }
 0x4a2   :  { %v4205_v57 = vmul.f32 %v3366_v24, %v618_v16  ;;  %v3368_v3 = vpop.eup %3367  ;;  %v608_v9 = vmul.f32 %v4022_v10, %v5488_v58  ;;  %v812_v61 = vpack.c.bf16 %v4079_v28, %v4068_v26  ;;  %v810_v10 = vpack.c.bf16 %v4052_v47, %v4045_v54 }
 0x4a3   :  { %v4209_v20 = vpack.c.bf16 %v4197_v46, %v4203_v7  ;;  %v3370_v34 = vpop.eup %3369  ;;  %v4226_v25 = vmul.f32 %v3368_v3, %v619_v55  ;;  %v5492_v55 = vld [vmem:[#allocation36_spill] sm:$0xff] }
 0x4a4   :  { %5477 = vst [vmem:[#allocation14_spill] sm:$0xff] %v4205_v57  ;;  %v4214_v29 = vpack.c.bf16 %v4201_v33, %v4205_v57  ;;  %v3372_v11 = vpop.eup %3371  ;;  %v4230_v2 = vmul.f32 %v3370_v34, %v616_v8  ;;  %v5490_v34 = vld [vmem:[#allocation29_spill] sm:$0xff] }
 0x4a5   :  { %v3374_v62 = vpop.eup %3373  ;;  %5481 = vst [vmem:[#allocation16_spill] sm:$0xff] %v4226_v25  ;;  %v4232_v56 = vmul.f32 %v3372_v11, %v617_v53 }
 0x4a6   :  { %5483 = vst [vmem:[#allocation18_spill] sm:$0xff] %v4230_v2  ;;  %v4234_v52 = vmul.f32 %v3374_v62, %v614_v18  ;;  %v3376_v45 = vpop.eup %3375 }
 0x4a7   :  { %829 = vmatpush1.bf16.xpose.msra.mxu0 %v4180_v40  ;;  %878 = vmatpush1.bf16.xpose.msra.mxu1 %v4180_v40  ;;  %5484 = vst [vmem:[#allocation15_spill] sm:$0xff] %v4232_v56  ;;  %v818_v48 = vpack.c.bf16 %v4226_v25, %v4232_v56  ;;  %v4242_v23 = vmul.f32 %v3376_v45, %v612_v14 }
 0x4a8   :  { %830 = vmatprep.subr.bf16.mxu0 %v4185_v37  ;;  %879 = vmatprep.subr.bf16.mxu1 %v4185_v37  ;;  %5485 = vst [vmem:[#allocation17_spill] sm:$0xff] %v4234_v52  ;;  %v817_v51 = vpack.c.bf16 %v4230_v2, %v4234_v52 }
 0x4a9   :  { %5487 = vst [vmem:[#allocation20_spill] sm:$0xff] %v4242_v23  ;;  %v815_v24 = vpack.c.bf16 %v4242_v23, %v4099_v15 }
 0x4ac   :  { %v3378_v17 = vpop.eup %3377 }
 0x4ad   :  { %v4250_v16 = vmul.f32 %v3378_v17, %v608_v9 }
 0x4af   :  { %831 = vmatpush1.bf16.xpose.msra.mxu0 %v4209_v20  ;;  %880 = vmatpush1.bf16.xpose.msra.mxu1 %v4209_v20  ;;  %5489 = vst [vmem:[#allocation22_spill] sm:$0xff] %v4250_v16  ;;  %v813_v3 = vpack.c.bf16 %v4250_v16, %v4077_v21 }
 0x4b0   :  { %832 = vmatprep.subr.bf16.mxu0 %v4214_v29  ;;  %881 = vmatprep.subr.bf16.mxu1 %v4214_v29 }
 0x4b7   :  { %833 = vmatpush1.bf16.xpose.msra.mxu0 %v818_v48  ;;  %882 = vmatpush1.bf16.xpose.msra.mxu1 %v818_v48 }
 0x4b8   :  { %834 = vmatprep.subr.bf16.mxu0 %v817_v51  ;;  %883 = vmatprep.subr.bf16.mxu1 %v817_v51 }
 0x4bf   :  { %835 = vmatpush1.bf16.xpose.msra.mxu0 %v816_v30  ;;  %884 = vmatpush1.bf16.xpose.msra.mxu1 %v816_v30 }
 0x4c0   :  { %836 = vmatprep.subr.bf16.mxu0 %v815_v24  ;;  %885 = vmatprep.subr.bf16.mxu1 %v815_v24 }
 0x4c7   :  { %837 = vmatpush1.bf16.xpose.msra.mxu0 %v814_v13  ;;  %886 = vmatpush1.bf16.xpose.msra.mxu1 %v814_v13 }
 0x4c8   :  { %838 = vmatprep.subr.bf16.mxu0 %v813_v3  ;;  %887 = vmatprep.subr.bf16.mxu1 %v813_v3 }
 0x4cf   :  { %839 = vmatpush1.bf16.xpose.msra.mxu0 %v812_v61  ;;  %888 = vmatpush1.bf16.xpose.msra.mxu1 %v812_v61 }
 0x4d0   :  { %840 = vmatprep.subr.bf16.mxu0 %v4066_v60  ;;  %889 = vmatprep.subr.bf16.mxu1 %v4066_v60 }
 0x4d7   :  { %841 = vmatpush1.bf16.xpose.msra.mxu0 %v810_v10  ;;  %890 = vmatpush1.bf16.xpose.msra.mxu1 %v810_v10 }
 0x4d8   :  { %1333 = vmatprep.subr.bf16.mxu1 %v4140_v1 }
 0x4de   :  { %859 = vmatmul.mubr.bf16.vlgmr.msra.gmra.mxu0 %v3921_v49  ;;  %908 = vmatmul.mubr.bf16.vlgmr.msra.gmra.mxu1 %v810_v10  ;;  %v5493_v49 = vmov 0  }
 0x4df   :  { %915 = vmatprep.mubr.bf16.mxu1 %v813_v3  ;;  %1334 = vmatpush1.bf16.msra.mxu1 %v4147_v59 }
 0x4e0   :  { %1335 = vmatprep.subr.bf16.mxu1 %v4154_v27  ;;  %866 = vmatprep.mubr.bf16.mxu0 %v5490_v34 }
 0x4e3   :  { %1336 = vmatpush1.bf16.msra.mxu1 %v4180_v40 }
 0x4e4   :  { %1337 = vmatprep.subr.bf16.mxu1 %v4185_v37 }
 0x4e6   :  { %867 = vmatmul.mubr.bf16.gmra.mxu0 %v5491_v22  ;;  %916 = vmatmul.mubr.bf16.gmra.mxu1 %v812_v61 }
 0x4e7   :  { %923 = vmatprep.mubr.bf16.mxu1 %v815_v24  ;;  %3184 = vmatprep.mubr.bf16.mxu0 %v5492_v55 }
 0x4e8   :  { %1338 = vmatpush1.bf16.msra.mxu1 %v4209_v20 }
 0x4e9   :  { %1339 = vmatprep.subr.bf16.mxu1 %v4214_v29 }
 0x4ec   :  { %1340 = vmatpush1.bf16.msra.mxu1 %v818_v48 }
 0x4ed   :  { %1341 = vmatprep.subr.bf16.mxu1 %v817_v51 }
 0x4ee   :  { %924 = vmatmul.mubr.bf16.gmra.mxu1 %v814_v13 }
 0x4ef   :  { %931 = vmatprep.mubr.bf16.mxu1 %v817_v51 }
 0x4f0   :  { %1342 = vmatpush1.bf16.msra.mxu1 %v816_v30 }
 0x4f1   :  { %1343 = vmatprep.subr.bf16.mxu1 %v815_v24 }
 0x4f4   :  { %1344 = vmatpush1.bf16.msra.mxu1 %v814_v13 }
 0x4f5   :  { %1345 = vmatprep.subr.bf16.mxu1 %v813_v3 }
 0x4f6   :  { %932 = vmatmul.mubr.bf16.gmra.mxu1 %v816_v30 }
 0x4f7   :  { %939 = vmatprep.mubr.bf16.mxu1 %v4214_v29 }
 0x4f8   :  { %1346 = vmatpush1.bf16.msra.mxu1 %v812_v61 }
 0x4f9   :  { %1347 = vmatprep.subr.bf16.mxu1 %v4066_v60 }
 0x4fc   :  { %1348 = vmatpush1.bf16.msra.mxu1 %v810_v10 }
 0x4fe   :  { %940 = vmatmul.mubr.bf16.gmra.mxu1 %v818_v48 }
 0x4ff   :  { %947 = vmatprep.mubr.bf16.mxu1 %v4185_v37 }
 0x506   :  { %948 = vmatmul.mubr.bf16.gmra.mxu1 %v4209_v20 }
 0x507   :  { %955 = vmatprep.mubr.bf16.mxu1 %v4154_v27 }
 0x50e   :  { %956 = vmatmul.mubr.bf16.gmra.mxu1 %v4180_v40 }
 0x50f   :  { %963 = vmatprep.mubr.bf16.mxu1 %v4140_v1 }
 0x516   :  { %964 = vmatmul.mubr.bf16.gmra.mxu1 %v4147_v59 }
 0x517   :  { %1365 = vmatprep.mubr.bf16.mxu1 %v5493_v49 }
 0x59e   :  { %v4282_v29 = vpop.f32.mrf.mxu0  ;;  %v909_v11 = vpop.f32.mrf.mxu1 }
 0x5a0   :  { %v862_v60 = vpop.f32.mrf.mxu0  ;;  %v911_v31 = vpop.f32.mrf.mxu1 }
 0x5a2   :  { %v4284_v8 = vpop.f32.mrf.mxu0  ;;  %v912_v37 = vpop.f32.mrf.mxu1 }
 0x5a3   :  { %v972_v62 = vpack.c.bf16 %v912_v37, %v909_v11 }
 0x5a4   :  { %v865_v20 = vpop.f32.mrf.mxu0  ;;  %v914_v36 = vpop.f32.mrf.mxu1 }
 0x5a6   :  { %v4286_v27 = vpop.f32.mrf.mxu0  ;;  %v917_v40 = vpop.f32.mrf.mxu1 }
 0x5a8   :  { %v870_v53 = vpop.f32.mrf.mxu0  ;;  %v919_v1 = vpop.f32.mrf.mxu1 }
 0x5aa   :  { %v4288_v41 = vpop.f32.mrf.mxu0  ;;  %v920_v59 = vpop.f32.mrf.mxu1 }
 0x5ab   :  { %v973_v18 = vpack.c.bf16 %v920_v59, %v917_v40 }
 0x5ac   :  { %v922_v48 = vpop.f32.mrf.mxu1  ;;  %v873_v51 = vpop.f32.mrf.mxu0 }
 0x5ae   :  { %v925_v45 = vpop.f32.mrf.mxu1 }
 0x5b0   :  { %v927_v39 = vpop.f32.mrf.mxu1 }
 0x5b2   :  { %v928_v14 = vpop.f32.mrf.mxu1 }
 0x5b4   :  { %v930_v30 = vpop.f32.mrf.mxu1 }
 0x5b6   :  { %v933_v24 = vpop.f32.mrf.mxu1 }
 0x5b8   :  { %v935_v17 = vpop.f32.mrf.mxu1 }
 0x5b9   :  { %v974_v17 = vpack.c.bf16 %v928_v14, %v925_v45  ;;  %v4300_v45 = vld [vmem:[%s5345_s0 + $0x10] ss:$8 sps:$4 sm:$0xff]  }
 0x5ba   :  { %v936_v58 = vpop.f32.mrf.mxu1  ;;  %5496 = vst [vmem:[#allocation21_spill] sm:$0xff] %v4300_v45 }
 0x5bb   :  { %v975_v30 = vpack.c.bf16 %v936_v58, %v933_v24 }
 0x5bc   :  { %v938_v9 = vpop.f32.mrf.mxu1 }
 0x5bd   :  { %v4293_v9 = vld [vmem:[%s5345_s0 + $0x14] ss:$8 sps:$4 sm:$0xff]  }
 0x5be   :  { %v941_v13 = vpop.f32.mrf.mxu1  ;;  %5494 = vst [vmem:[#allocation19_spill] sm:$0xff] %v4293_v9 }
 0x5c0   :  { %v943_v3 = vpop.f32.mrf.mxu1 }
 0x5c2   :  { %v944_v61 = vpop.f32.mrf.mxu1 }
 0x5c3   :  { %v976_v39 = vpack.c.bf16 %v944_v61, %v941_v13  ;;  %v5495_v13 = vld [vmem:[#allocation33_spill] sm:$0xff] }
 0x5c4   :  { %v946_v10 = vpop.f32.mrf.mxu1 }
 0x5c6   :  { %v949_v34 = vpop.f32.mrf.mxu1 }
 0x5c8   :  { %v951_v22 = vpop.f32.mrf.mxu1 }
 0x5ca   :  { %v952_v55 = vpop.f32.mrf.mxu1 }
 0x5cb   :  { %v977_v51 = vpack.c.bf16 %v952_v55, %v949_v34 }
 0x5cc   :  { %v954_v11 = vpop.f32.mrf.mxu1 }
 0x5ce   :  { %v957_v60 = vpop.f32.mrf.mxu1 }
 0x5d0   :  { %v959_v31 = vpop.f32.mrf.mxu1 }
 0x5d2   :  { %v960_v37 = vpop.f32.mrf.mxu1 }
 0x5d3   :  { %v978_v48 = vpack.c.bf16 %v960_v37, %v957_v60  ;;  %v5499_v60 = vld [vmem:[#allocation31_spill] sm:$0xff]  ;;  %v5500_v37 = vld [vmem:[#allocation32_spill] sm:$0xff] }
 0x5d4   :  { %v962_v20 = vpop.f32.mrf.mxu1  ;;  %v982_v31 = vmul.f32 %v4286_v27, %v5499_v60 }
 0x5d5   :  { %v983_v20 = vmul.f32 %v4288_v41, %v5500_v37 }
 0x5d6   :  { %v965_v36 = vpop.f32.mrf.mxu1 }
 0x5d8   :  { %v967_v40 = vpop.f32.mrf.mxu1 }
 0x5d9   :  { %v5501_v40 = vld [vmem:[#allocation34_spill] sm:$0xff] }
 0x5da   :  { %v968_v53 = vpop.f32.mrf.mxu1 }
 0x5db   :  { %v979_v1 = vpack.c.bf16 %v968_v53, %v965_v36  ;;  %v980_v53 = vmul.f32 %v4282_v29, %v5501_v40 }
 0x5dc   :  { %v970_v59 = vpop.f32.mrf.mxu1 }
 0x5dd   :  { %3168 = vmatprep.subr.bf16.mxu0 %v979_v1 }
 0x5de   :  { %3169 = vmatpush3.bf16.msra.mxu0 %v979_v1  ;;  %v5502_v1 = vld [vmem:[#allocation35_spill] sm:$0xff] }
 0x5df   :  { %3170 = vmatprep.subr.bf16.mxu0 %v978_v48  ;;  %v981_v59 = vmul.f32 %v4284_v8, %v5502_v1 }
 0x5e2   :  { %3171 = vmatpush3.bf16.msra.mxu0 %v978_v48 }
 0x5e3   :  { %3172 = vmatprep.subr.bf16.mxu0 %v977_v51 }
 0x5e6   :  { %3173 = vmatpush3.bf16.msra.mxu0 %v977_v51 }
 0x5e7   :  { %3174 = vmatprep.subr.bf16.mxu0 %v976_v39 }
 0x5ea   :  { %3175 = vmatpush3.bf16.msra.mxu0 %v976_v39 }
 0x5eb   :  { %3176 = vmatprep.subr.bf16.mxu0 %v975_v30 }
 0x5ee   :  { %3177 = vmatpush3.bf16.msra.mxu0 %v975_v30 }
 0x5ef   :  { %3178 = vmatprep.subr.bf16.mxu0 %v974_v17 }
 0x5f2   :  { %3179 = vmatpush3.bf16.msra.mxu0 %v974_v17 }
 0x5f3   :  { %3180 = vmatprep.subr.bf16.mxu0 %v973_v18 }
 0x5f6   :  { %3181 = vmatpush3.bf16.msra.mxu0 %v973_v18  ;;  %v4313_v18 = vld [vmem:[%s5345_s0] ss:$8 sps:$4 sm:$0xff]  }
 0x5f7   :  { %3182 = vmatprep.subr.bf16.mxu0 %v972_v62  ;;  %5498 = vst [vmem:[#allocation26_spill] sm:$0xff] %v4313_v18 }
 0x5fa   :  { %3183 = vmatpush3.bf16.msra.mxu0 %v972_v62  ;;  %v4307_v62 = vld [vmem:[%s5345_s0 + $0x4] ss:$8 sps:$4 sm:$0xff]  }
 0x5fb   :  { %1095 = vmatprep.subr.bf16.mxu0 %v4293_v9  ;;  %5497 = vst [vmem:[#allocation24_spill] sm:$0xff] %v4307_v62 }
 0x5fd   :  { %3185 = vmatmul.mubr.bf16.vlgmr.msra.gmra.mxu0 %v5495_v13 }
 0x5fe   :  { %1096 = vmatpush1.bf16.msra.mxu0 %v4300_v45  ;;  %1115 = vmatprep.mubr.bf16.mxu0 %v5493_v49 }
 0x5ff   :  { %1097 = vmatprep.subr.bf16.mxu0 %v4307_v62 }
 0x602   :  { %1098 = vmatpush1.bf16.msra.mxu0 %v4313_v18 }
 0x6bd   :  { %v3186_v14 = vpop.f32.mrf.mxu0 }
 0x6be   :  { %v1027_v24 = vadd.f32 1.1920929e-07, %v3186_v14 }
 0x6bf   :  { %v1018_v58 = vpop.f32.mrf.mxu0 }
 0x6c0   :  { %v1019_v3 = vadd.f32 1.1920929e-07, %v1018_v58  ;;  %3379 = vrcp.f32 %v1027_v24 }
 0x6c1   :  { %v3187_v61 = vpop.f32.mrf.mxu0 }
 0x6c2   :  { %v1030_v10 = vadd.f32 1.1920929e-07, %v3187_v61  ;;  %3381 = vrcp.f32 %v1019_v3 }
 0x6c3   :  { %v1021_v34 = vpop.f32.mrf.mxu0 }
 0x6c4   :  { %3383 = vrcp.f32 %v1030_v10  ;;  %v1022_v22 = vadd.f32 1.1920929e-07, %v1021_v34 }
 0x6c6   :  { %3385 = vrcp.f32 %v1022_v22 }
 0x6cd   :  { %v3380_v55 = vpop.eup %3379 }
 0x6ce   :  { %v4324_v48 = vmul.f32 %v3380_v55, %v982_v31 }
 0x6cf   :  { %v3382_v11 = vpop.eup %3381 }
 0x6d0   :  { %5503 = vst [vmem:[#allocation23_spill] sm:$0xff] %v4324_v48  ;;  %v4332_v27 = vmul.f32 %v3382_v11, %v980_v53 }
 0x6d1   :  { %v3384_v36 = vpop.eup %3383 }
 0x6d2   :  { %v4326_v51 = vmul.f32 %v3384_v36, %v983_v20  ;;  %5506 = vst [vmem:[#allocation28_spill] sm:$0xff] %v4332_v27 }
 0x6d3   :  { %v3386_v39 = vpop.eup %3385 }
 0x6d4   :  { %5504 = vst [vmem:[#allocation25_spill] sm:$0xff] %v4326_v51  ;;  %v4330_v30 = vpack.c.bf16 %v4326_v51, %v4324_v48  ;;  %v4334_v17 = vmul.f32 %v3386_v39, %v981_v59 }
 0x6d6   :  { %5505 = vst [vmem:[#allocation27_spill] sm:$0xff] %v4330_v30  ;;  %5507 = vst [vmem:[#allocation29_spill] sm:$0xff] %v4334_v17  ;;  %3188 = vmatprep.subr.bf16.mxu0 %v4330_v30  ;;  %v4339_v29 = vpack.c.bf16 %v4334_v17, %v4332_v27 }
 0x6d8   :  { %5508 = vst [vmem:[#allocation30_spill] sm:$0xff] %v4339_v29  ;;  %1043 = vxpose.xlu1.c.b16.start [1/2] (short) %v4339_v29, 128 }
 0x6dc   :  { %1044 = vxpose.xlu1.c.b16.end [2/2] (short) %v4330_v30, 128 }
 0x73a   :  { %v1051_v8 = vpop.trf.xlu1 }
 0x73b   :  { %3000 = vmatmul.mubr.msk.bf16.vlgmr.msra.gmra.mxu0 %vm358_vm0, %v1051_v8 }
 0x73c   :  { %3189 = vmatpush3.bf16.msra.mxu0 %v4330_v30  ;;  %1125 = vmatprep.mubr.bf16.mxu0 %v5493_v49 }
 0x73d   :  { %3190 = vmatprep.subr.bf16.mxu0 %v4339_v29 }
 0x73e   :  { %v1052_v41 = vpop.trf.xlu1 }
 0x740   :  { %3191 = vmatpush3.bf16.msra.mxu0 %v4339_v29 }
 0x742   :  { %v1053_v13 = vpop.trf.xlu1 }
 0x743   :  { %3001 = vmatmul.mubr.msk.bf16.gmra.mxu0 %vm358_vm0, %v1052_v41 }
 0x744   :  { %1135 = vmatprep.mubr.bf16.mxu0 %v5493_v49 }
 0x746   :  { %v1054_v14 = vpop.trf.xlu1 }
 0x74a   :  { %v1055_v24 = vpop.trf.xlu1 }
 0x74b   :  { %3002 = vmatmul.mubr.msk.bf16.gmra.mxu0 %vm358_vm0, %v1053_v13 }
 0x74c   :  { %1145 = vmatprep.mubr.bf16.mxu0 %v5493_v49 }
 0x74e   :  { %v1056_v58 = vpop.trf.xlu1 }
 0x752   :  { %v1057_v3 = vpop.trf.xlu1 }
 0x753   :  { %3003 = vmatmul.mubr.msk.bf16.gmra.mxu0 %vm358_vm0, %v1054_v14 }
 0x754   :  { %1155 = vmatprep.mubr.bf16.mxu0 %v5493_v49 }
 0x756   :  { %v1058_v61 = vpop.trf.xlu1 }
 0x75b   :  { %3004 = vmatmul.mubr.msk.bf16.gmra.mxu0 %vm358_vm0, %v1055_v24 }
 0x75c   :  { %1165 = vmatprep.mubr.bf16.mxu0 %v5493_v49 }
 0x763   :  { %3005 = vmatmul.mubr.msk.bf16.gmra.mxu0 %vm358_vm0, %v1056_v58 }
 0x764   :  { %1175 = vmatprep.mubr.bf16.mxu0 %v5493_v49 }
 0x76b   :  { %3006 = vmatmul.mubr.msk.bf16.gmra.mxu0 %vm358_vm0, %v1057_v3 }
 0x76c   :  { %1185 = vmatprep.mubr.bf16.mxu0 %v5493_v49 }
 0x773   :  { %3007 = vmatmul.mubr.msk.bf16.gmra.mxu0 %vm358_vm0, %v1058_v61 }
 0x774   :  { %3192 = vmatprep.mubr.msk.bf16.mxu0 %vm358_vm0, %v1051_v8 }
 0x77b   :  { %3193 = vmatmul.mubr.msk.bf16.vlgmr.msra.gmra.mxu0 %vm358_vm0, %v1052_v41 }
 0x77c   :  { %3196 = vmatprep.mubr.msk.bf16.mxu0 %vm358_vm0, %v1053_v13 }
 0x783   :  { %3197 = vmatmul.mubr.msk.bf16.gmra.mxu0 %vm358_vm0, %v1054_v14 }
 0x784   :  { %3200 = vmatprep.mubr.msk.bf16.mxu0 %vm358_vm0, %v1055_v24 }
 0x78b   :  { %3201 = vmatmul.mubr.msk.bf16.gmra.mxu0 %vm358_vm0, %v1056_v58 }
 0x78c   :  { %3204 = vmatprep.mubr.msk.bf16.mxu0 %vm358_vm0, %v1057_v3 }
 0x793   :  { %3205 = vmatmul.mubr.msk.bf16.gmra.mxu0 %vm358_vm0, %v1058_v61 }
 0x794   :  { %1558 = vmatprep.mubr.bf16.mxu0 %v4307_v62 }
 0x7fb   :  { %v4370_v10 = vpop.f32.mrf.mxu0 }
 0x7fd   :  { %v4372_v34 = vpop.f32.mrf.mxu0 }
 0x7ff   :  { %v4374_v22 = vpop.f32.mrf.mxu0 }
 0x801   :  { %v4376_v55 = vpop.f32.mrf.mxu0 }
 0x803   :  { %v4378_v11 = vpop.f32.mrf.mxu0 }
 0x805   :  { %v4380_v60 = vpop.f32.mrf.mxu0 }
 0x807   :  { %v4382_v31 = vpop.f32.mrf.mxu0 }
 0x809   :  { %v4384_v37 = vpop.f32.mrf.mxu0 }
 0x80a   :  { %5509 = vst [vmem:[#allocation36_spill] sm:$0xff] %v4384_v37 }
 0x80b   :  { %v4386_v20 = vpop.f32.mrf.mxu0 }
 0x80d   :  { %v4388_v36 = vpop.f32.mrf.mxu0 }
 0x80f   :  { %v4390_v40 = vpop.f32.mrf.mxu0 }
 0x811   :  { %v4392_v53 = vpop.f32.mrf.mxu0 }
 0x812   :  { %5510 = vst [vmem:[#allocation33_spill] sm:$0xff] %v4392_v53 }
 0x813   :  { %v4394_v1 = vpop.f32.mrf.mxu0 }
 0x815   :  { %v4396_v59 = vpop.f32.mrf.mxu0 }
 0x816   :  { %5511 = vst [vmem:[#allocation31_spill] sm:$0xff] %v4396_v59 }
 0x817   :  { %v4398_v39 = vpop.f32.mrf.mxu0 }
 0x819   :  { %v4400_v8 = vpop.f32.mrf.mxu0 }
 0x81a   :  { %5512 = vst [vmem:[#allocation32_spill] sm:$0xff] %v4400_v8 }
 0x81b   :  { %v4402_v41 = vpop.f32.mrf.mxu0 }
 0x81c   :  { %5513 = vst [vmem:[#allocation34_spill] sm:$0xff] %v4402_v41 }
 0x81d   :  { %v4404_v13 = vpop.f32.mrf.mxu0 }
 0x81e   :  { %5514 = vst [vmem:[#allocation35_spill] sm:$0xff] %v4404_v13 }
 0x81f   :  { %v4406_v14 = vpop.f32.mrf.mxu0 }
 0x820   :  { %5515 = vst [vmem:[#allocation39_spill] sm:$0xff] %v4406_v14 }
 0x821   :  { %v4408_v24 = vpop.f32.mrf.mxu0 }
 0x823   :  { %v4410_v58 = vpop.f32.mrf.mxu0 }
 0x824   :  { %5516 = vst [vmem:[#allocation40_spill] sm:$0xff] %v4410_v58 }
 0x825   :  { %v4412_v3 = vpop.f32.mrf.mxu0 }
 0x827   :  { %v4414_v61 = vpop.f32.mrf.mxu0 }
 0x829   :  { %v4416_v17 = vpop.f32.mrf.mxu0 }
 0x82b   :  { %v4418_v27 = vpop.f32.mrf.mxu0 }
 0x82d   :  { %v4420_v51 = vpop.f32.mrf.mxu0 }
 0x82f   :  { %v4422_v48 = vpop.f32.mrf.mxu0 }
 0x831   :  { %v4424_v62 = vpop.f32.mrf.mxu0 }
 0x833   :  { %v4426_v30 = vpop.f32.mrf.mxu0 }
 0x835   :  { %v4428_v29 = vpop.f32.mrf.mxu0 }
 0x837   :  { %v4430_v45 = vpop.f32.mrf.mxu0 }
 0x839   :  { %v4432_v9 = vpop.f32.mrf.mxu0 }
 0x83b   :  { %v3194_v18 = vpop.f32.mrf.mxu0 }
 0x83d   :  { %v1230_v37 = vpop.f32.mrf.mxu0 }
 0x83f   :  { %v3195_v16 = vpop.f32.mrf.mxu0 }
 0x840   :  { %v1294_v41 = vpack.c.bf16 %v3195_v16, %v3194_v18 }
 0x841   :  { %v1233_v53 = vpop.f32.mrf.mxu0 }
 0x842   :  { %v1293_v23 = vpack.c.bf16 %v1233_v53, %v1230_v37 }
 0x843   :  { %v3198_v59 = vpop.f32.mrf.mxu0 }
 0x844   :  { %1366 = vmatmul.mubr.bf16.vlgmr.msra.gmra.mxu1 %v1293_v23 }
 0x845   :  { %1375 = vmatprep.mubr.bf16.mxu1 %v5493_v49  ;;  %v1246_v52 = vpop.f32.mrf.mxu0 }
 0x847   :  { %v3199_v56 = vpop.f32.mrf.mxu0 }
 0x848   :  { %v1296_v13 = vpack.c.bf16 %v3199_v56, %v3198_v59 }
 0x849   :  { %v1249_v8 = vpop.f32.mrf.mxu0 }
 0x84a   :  { %v1295_v2 = vpack.c.bf16 %v1249_v8, %v1246_v52 }
 0x84b   :  { %v3202_v14 = vpop.f32.mrf.mxu0 }
 0x84c   :  { %1376 = vmatmul.mubr.bf16.gmra.mxu1 %v1294_v41 }
 0x84d   :  { %1385 = vmatprep.mubr.bf16.mxu1 %v5493_v49  ;;  %v1262_v25 = vpop.f32.mrf.mxu0 }
 0x84f   :  { %v3203_v57 = vpop.f32.mrf.mxu0 }
 0x850   :  { %v1298_v18 = vpack.c.bf16 %v3203_v57, %v3202_v14 }
 0x851   :  { %v1265_v23 = vpop.f32.mrf.mxu0 }
 0x852   :  { %v1297_v37 = vpack.c.bf16 %v1265_v23, %v1262_v25 }
 0x853   :  { %v3206_v53 = vpop.f32.mrf.mxu0 }
 0x854   :  { %1386 = vmatmul.mubr.bf16.gmra.mxu1 %v1295_v2 }
 0x855   :  { %1395 = vmatprep.mubr.bf16.mxu1 %v5493_v49  ;;  %v1278_v16 = vpop.f32.mrf.mxu0 }
 0x857   :  { %v3207_v41 = vpop.f32.mrf.mxu0 }
 0x858   :  { %v1300_v56 = vpack.c.bf16 %v3207_v41, %v3206_v53 }
 0x859   :  { %v1281_v2 = vpop.f32.mrf.mxu0 }
 0x85a   :  { %v1299_v52 = vpack.c.bf16 %v1281_v2, %v1278_v16 }
 0x85c   :  { %1396 = vmatmul.mubr.bf16.gmra.mxu1 %v1296_v13 }
 0x85d   :  { %1405 = vmatprep.mubr.bf16.mxu1 %v5493_v49 }
 0x864   :  { %1406 = vmatmul.mubr.bf16.gmra.mxu1 %v1297_v37 }
 0x865   :  { %1415 = vmatprep.mubr.bf16.mxu1 %v5493_v49 }
 0x86c   :  { %1416 = vmatmul.mubr.bf16.gmra.mxu1 %v1298_v18 }
 0x86d   :  { %1425 = vmatprep.mubr.bf16.mxu1 %v5493_v49 }
 0x874   :  { %1426 = vmatmul.mubr.bf16.gmra.mxu1 %v1299_v52 }
 0x875   :  { %1435 = vmatprep.mubr.bf16.mxu1 %v5493_v49 }
 0x87c   :  { %1436 = vmatmul.mubr.bf16.gmra.mxu1 %v1300_v56  ;;  %v1301_v56 = vmul.f32 %v4370_v10, %v4045_v54 }
 0x904   :  { %v1367_v59 = vpop.f32.mrf.mxu1 }
 0x905   :  { %v1368_v8 = vadd.f32 1.1920929e-07, %v1367_v59 }
 0x906   :  { %v1369_v25 = vpop.f32.mrf.mxu1 }
 0x907   :  { %3387 = vrcp.f32 %v1368_v8  ;;  %v1370_v13 = vadd.f32 1.1920929e-07, %v1369_v25 }
 0x908   :  { %v1371_v23 = vpop.f32.mrf.mxu1 }
 0x909   :  { %v1372_v37 = vadd.f32 1.1920929e-07, %v1371_v23  ;;  %3389 = vrcp.f32 %v1370_v13 }
 0x90a   :  { %v1373_v57 = vpop.f32.mrf.mxu1 }
 0x90b   :  { %3391 = vrcp.f32 %v1372_v37  ;;  %v1374_v14 = vadd.f32 1.1920929e-07, %v1373_v57 }
 0x90c   :  { %v1377_v18 = vpop.f32.mrf.mxu1 }
 0x90d   :  { %3393 = vrcp.f32 %v1374_v14  ;;  %v1378_v58 = vadd.f32 1.1920929e-07, %v1377_v18  ;;  %v5518_v18 = vld [vmem:[#allocation37_spill] sm:$0xff] }
 0x90e   :  { %v1379_v16 = vpop.f32.mrf.mxu1 }
 0x90f   :  { %3395 = vrcp.f32 %v1378_v58  ;;  %v1380_v2 = vadd.f32 1.1920929e-07, %v1379_v16  ;;  %v1303_v58 = vmul.f32 %v4374_v22, %v4052_v47  ;;  %v1302_v16 = vmul.f32 %v4372_v34, %v5518_v18 }
 0x910   :  { %v1381_v52 = vpop.f32.mrf.mxu1  ;;  %v1305_v47 = vmul.f32 %v4378_v11, %v4068_v26  ;;  %v1307_v26 = vmul.f32 %v4382_v31, %v4079_v28  ;;  %v1310_v28 = vmul.f32 %v4388_v36, %v4099_v15 }
 0x911   :  { %3397 = vrcp.f32 %v1380_v2  ;;  %v1382_v53 = vadd.f32 1.1920929e-07, %v1381_v52  ;;  %v5519_v52 = vld [vmem:[#allocation38_spill] sm:$0xff] }
 0x912   :  { %v4441_v41 = vpop.f32.mrf.mxu1  ;;  %v1304_v54 = vmul.f32 %v4376_v55, %v5519_v52  ;;  %v1306_v55 = vmul.f32 %v4380_v60, %v4077_v21  ;;  %v1309_v52 = vmul.f32 %v4386_v20, %v4091_v44 }
 0x913   :  { %3399 = vrcp.f32 %v1382_v53 }
 0x914   :  { %v3388_v59 = vpop.eup %3387  ;;  %v1387_v8 = vpop.f32.mrf.mxu1 }
 0x915   :  { %v1388_v25 = vadd.f32 1.1920929e-07, %v1387_v8  ;;  %v4445_v13 = vmul.f32 %v3388_v59, %v1301_v56 }
 0x916   :  { %v1389_v23 = vpop.f32.mrf.mxu1  ;;  %v3390_v37 = vpop.eup %3389 }
 0x917   :  { %5517 = vst [vmem:[#allocation41_spill] sm:$0xff] %v4445_v13  ;;  %3401 = vrcp.f32 %v1388_v25  ;;  %v1390_v57 = vadd.f32 1.1920929e-07, %v1389_v23  ;;  %v4459_v22 = vmul.f32 %v3390_v37, %v1302_v16 }
 0x918   :  { %v3392_v14 = vpop.eup %3391  ;;  %v1391_v2 = vpop.f32.mrf.mxu1 }
 0x919   :  { %3403 = vrcp.f32 %v1390_v57  ;;  %v1392_v10 = vadd.f32 1.1920929e-07, %v1391_v2  ;;  %v4453_v53 = vmul.f32 %v3392_v14, %v1303_v58  ;;  %5521 = vst [vmem:[#allocation38_spill] sm:$0xff] %v4459_v22 }
 0x91a   :  { %v3394_v56 = vpop.eup %3393  ;;  %v4455_v59 = vpop.f32.mrf.mxu1 }
 0x91b   :  { %5520 = vst [vmem:[#allocation37_spill] sm:$0xff] %v4453_v53  ;;  %3405 = vrcp.f32 %v1392_v10  ;;  %v4461_v8 = vmul.f32 %v3394_v56, %v1304_v54 }
 0x91c   :  { %v3396_v34 = vpop.eup %3395  ;;  %v1397_v25 = vpop.f32.mrf.mxu1 }
 0x91d   :  { %5522 = vst [vmem:[#allocation42_spill] sm:$0xff] %v4461_v8  ;;  %v1398_v23 = vadd.f32 1.1920929e-07, %v1397_v25  ;;  %v4467_v58 = vpack.c.bf16 %v4461_v8, %v4459_v22  ;;  %v4469_v57 = vmul.f32 %v3396_v34, %v1305_v47  ;;  %v1311_v34 = vmul.f32 %v4390_v40, %v4103_v12 }
 0x91e   :  { %v3398_v14 = vpop.eup %3397  ;;  %v4471_v18 = vpop.f32.mrf.mxu1 }
 0x91f   :  { %3407 = vrcp.f32 %v1398_v23  ;;  %1607 = vmatprep.mubr.bf16.mxu1 %v4467_v58  ;;  %v4476_v11 = vmul.f32 %v3398_v14, %v1306_v55  ;;  %v1313_v14 = vmul.f32 %v4394_v1, %v4109_v63 }
 0x920   :  { %v3400_v37 = vpop.eup %3399  ;;  %v1401_v21 = vpop.f32.mrf.mxu1 }
 0x921   :  { %v1402_v60 = vadd.f32 1.1920929e-07, %v1401_v21  ;;  %v4478_v16 = vmul.f32 %v3400_v37, %v1307_v26  ;;  %v1315_v21 = vmul.f32 %v4398_v39, %v4115_v35 }
 0x922   :  { %v4480_v2 = vpop.f32.mrf.mxu1 }
 0x923   :  { %3409 = vrcp.f32 %v1402_v60 }
 0x924   :  { %v3402_v54 = vpop.eup %3401  ;;  %v4484_v10 = vpop.f32.mrf.mxu1 }
 0x925   :  { %v4488_v31 = vmul.f32 %v3402_v54, %v1309_v52 }
 0x926   :  { %v3404_v56 = vpop.eup %3403  ;;  %v1409_v47 = vpop.f32.mrf.mxu1 }
 0x927   :  { %v4492_v25 = vmul.f32 %v3404_v56, %v1310_v28 }
 0x928   :  { %v3406_v55 = vpop.eup %3405  ;;  %v4494_v23 = vpop.f32.mrf.mxu1 }
 0x929   :  { %v4496_v44 = vmul.f32 %v3406_v55, %v1311_v34 }
 0x92a   :  { %v1413_v20 = vpop.f32.mrf.mxu1 }
 0x92c   :  { %v3408_v26 = vpop.eup %3407  ;;  %v1417_v15 = vpop.f32.mrf.mxu1 }
 0x92d   :  { %v4500_v36 = vmul.f32 %v3408_v26, %v1313_v14 }
 0x92e   :  { %v1419_v37 = vpop.f32.mrf.mxu1 }
 0x92f   :  { %v1420_v13 = vadd.f32 1.1920929e-07, %v1419_v37  ;;  %v1330_v37 = vmul.f32 %v4428_v29, %v4130_v4 }
 0x930   :  { %v3410_v12 = vpop.eup %3409  ;;  %v1421_v40 = vpop.f32.mrf.mxu1 }
 0x931   :  { %v4504_v60 = vmul.f32 %v3410_v12, %v1315_v21 }
 0x932   :  { %v1423_v52 = vpop.f32.mrf.mxu1 }
 0x933   :  { %v1424_v12 = vadd.f32 1.1920929e-07, %v1423_v52  ;;  %v1328_v52 = vmul.f32 %v4424_v62, %v4134_v6 }
 0x934   :  { %v1427_v54 = vpop.f32.mrf.mxu1 }
 0x935   :  { %v1428_v53 = vadd.f32 1.1920929e-07, %v1427_v54 }
 0x936   :  { %v1429_v28 = vpop.f32.mrf.mxu1 }
 0x937   :  { %v1430_v55 = vadd.f32 1.1920929e-07, %v1429_v28 }
 0x938   :  { %v1431_v56 = vpop.f32.mrf.mxu1 }
 0x939   :  { %3411 = vrcp.f32 %v1430_v55  ;;  %v1432_v21 = vadd.f32 1.1920929e-07, %v1431_v56 }
 0x93a   :  { %v1433_v34 = vpop.f32.mrf.mxu1 }
 0x93b   :  { %v1434_v63 = vadd.f32 1.1920929e-07, %v1433_v34 }
 0x93c   :  { %v1437_v8 = vpop.f32.mrf.mxu1 }
 0x93d   :  { %v1438_v14 = vadd.f32 1.1920929e-07, %v1437_v8  ;;  %3413 = vrcp.f32 %v1434_v63  ;;  %v1422_v8 = vadd.f32 1.1920929e-07, %v1421_v40  ;;  %v1414_v63 = vadd.f32 1.1920929e-07, %v1413_v20 }
 0x93e   :  { %v1439_v1 = vpop.f32.mrf.mxu1  ;;  %v1326_v20 = vmul.f32 %v4420_v51, %v4142_v5  ;;  %v1329_v40 = vmul.f32 %v4426_v30, %v4136_v0  ;;  %v1412_v0 = vadd.f32 1.1920929e-07, %v4494_v23  ;;  %v1404_v30 = vadd.f32 1.1920929e-07, %v4480_v2 }
 0x93f   :  { %v1440_v22 = vadd.f32 1.1920929e-07, %v1439_v1  ;;  %v1408_v23 = vadd.f32 1.1920929e-07, %v4484_v10  ;;  %v1324_v2 = vmul.f32 %v4416_v17, %v4172_v19  ;;  %v1322_v10 = vmul.f32 %v4412_v3, %v4176_v42 }
 0x940   :  { %v1441_v26 = vpop.f32.mrf.mxu1  ;;  %v1323_v3 = vmul.f32 %v4414_v61, %v4197_v46  ;;  %v5531_v46 = vld [vmem:[#allocation35_spill] sm:$0xff] }
 0x941   :  { %v1442_v49 = vadd.f32 1.1920929e-07, %v1441_v26  ;;  %3415 = vrcp.f32 %v1440_v22  ;;  %v1418_v22 = vadd.f32 1.1920929e-07, %v1417_v15  ;;  %v1327_v15 = vmul.f32 %v4422_v48, %v4168_v43 }
 0x942   :  { %v1443_v35 = vpop.f32.mrf.mxu1  ;;  %v1400_v26 = vadd.f32 1.1920929e-07, %v4471_v18  ;;  %v1325_v43 = vmul.f32 %v4418_v27, %v4174_v38  ;;  %v1394_v27 = vadd.f32 1.1920929e-07, %v4455_v59 }
 0x943   :  { %3417 = vrcp.f32 %v1442_v49  ;;  %v1444_v39 = vadd.f32 1.1920929e-07, %v1443_v35  ;;  %v1331_v49 = vmul.f32 %v4430_v45, %v4128_v32 }
 0x944   :  { %3419 = vrcp.f32 %v1438_v14 }
 0x945   :  { %3421 = vrcp.f32 %v1444_v39 }
 0x946   :  { %3423 = vrcp.f32 %v1432_v21  ;;  %v3412_v28 = vpop.eup %3411 }
 0x947   :  { %3425 = vrcp.f32 %v1424_v12 }
 0x948   :  { %3427 = vrcp.f32 %v1428_v53  ;;  %v1332_v53 = vmul.f32 %v4432_v9, %v4132_v50  ;;  %v4532_v9 = vmul.f32 %v3412_v28, %v1326_v20  ;;  %v1320_v28 = vmul.f32 %v4408_v24, %v4201_v33  ;;  %v5537_v20 = vld [vmem:[#allocation18_spill] sm:$0xff] }
 0x949   :  { %3429 = vrcp.f32 %v1420_v13  ;;  %v1410_v13 = vadd.f32 1.1920929e-07, %v1409_v47 }
 0x94a   :  { %v3414_v34 = vpop.eup %3413  ;;  %3431 = vrcp.f32 %v1422_v8 }
 0x94b   :  { %3433 = vrcp.f32 %v1414_v63  ;;  %v4524_v4 = vmul.f32 %v3414_v34, %v1328_v52  ;;  %v5528_v34 = vld [vmem:[#allocation40_spill] sm:$0xff]  ;;  %v5530_v63 = vld [vmem:[#allocation14_spill] sm:$0xff] }
 0x94c   :  { %3435 = vrcp.f32 %v1418_v22  ;;  %v1321_v8 = vmul.f32 %v5528_v34, %v4203_v7  ;;  %v1318_v61 = vmul.f32 %v5531_v46, %v5530_v63  ;;  %v5549_v63 = vld [vmem:[#allocation22_spill] sm:$0xff]  ;;  %v5550_v46 = vld [vmem:[#allocation36_spill] sm:$0xff] }
 0x94d   :  { %3437 = vrcp.f32 %v1410_v13  ;;  %v4544_v29 = vpack.c.bf16 %v4524_v4, %v4532_v9 }
 0x94e   :  { %v3416_v55 = vpop.eup %3415  ;;  %3439 = vrcp.f32 %v1412_v0 }
 0x94f   :  { %v4520_v45 = vmul.f32 %v3416_v55, %v1330_v37  ;;  %3441 = vrcp.f32 %v1404_v30  ;;  %v5535_v37 = vld [vmem:[#allocation16_spill] sm:$0xff]  ;;  %v5540_v30 = vld [vmem:[#allocation34_spill] sm:$0xff] }
 0x950   :  { %v3418_v1 = vpop.eup %3417  ;;  %3443 = vrcp.f32 %v1408_v23  ;;  %v5542_v23 = vld [vmem:[#allocation17_spill] sm:$0xff] }
 0x951   :  { %v3420_v14 = vpop.eup %3419  ;;  %v4518_v32 = vmul.f32 %v3418_v1, %v1331_v49  ;;  %3445 = vrcp.f32 %v1400_v26 }
 0x952   :  { %v3422_v54 = vpop.eup %3421  ;;  %v4526_v50 = vmul.f32 %v3420_v14, %v1329_v40  ;;  %3447 = vrcp.f32 %v1394_v27  ;;  %v1384_v14 = vadd.f32 1.1920929e-07, %v4441_v41  ;;  %v5538_v40 = vld [vmem:[#allocation32_spill] sm:$0xff] }
 0x953   :  { %v4522_v6 = vmul.f32 %v3422_v54, %v1332_v53  ;;  %v3424_v51 = vpop.eup %3423  ;;  %v5536_v53 = vld [vmem:[#allocation39_spill] sm:$0xff]  ;;  %v1316_v0 = vmul.f32 %v5538_v40, %v5537_v20  ;;  %v5554_v20 = vld [vmem:[#allocation26_spill] sm:$0xff] }
 0x954   :  { %5523 = vst [vmem:[#allocation43_spill] sm:$0xff] %v4526_v50  ;;  %v4537_v62 = vpack.c.bf16 %v4518_v32, %v4526_v50  ;;  %v3426_v47 = vpop.eup %3425  ;;  %v4558_v48 = vmul.f32 %v3424_v51, %v1327_v15  ;;  %v1319_v13 = vmul.f32 %v5536_v53, %v5535_v37  ;;  %v5539_v51 = vld [vmem:[#allocation15_spill] sm:$0xff]  ;;  %3449 = vrcp.f32 %v1384_v14  ;;  %v5552_v53 = vld [vmem:[#allocation41_spill] sm:$0xff] }
 0x955   :  { %v4530_v5 = vpack.c.bf16 %v4522_v6, %v4520_v45  ;;  %v3428_v56 = vpop.eup %3427  ;;  %v4562_v39 = vmul.f32 %v3426_v47, %v1324_v2  ;;  %v1317_v47 = vmul.f32 %v5540_v30, %v5539_v51  ;;  %v4660_v14 = vpack.c.bf16 %v4496_v44, %v4488_v31  ;;  %v5555_v40 = vld [vmem:[#allocation19_spill] sm:$0xff] }
 0x956   :  { %v3430_v35 = vpop.eup %3429  ;;  %5524 = vst [vmem:[#allocation44_spill] sm:$0xff] %v4558_v48  ;;  %v4564_v19 = vmul.f32 %v3428_v56, %v1325_v43  ;;  %v5543_v56 = vld [vmem:[#allocation31_spill] sm:$0xff]  ;;  %v4672_v37 = vpack.c.bf16 %v4478_v16, %v4469_v57 }
 0x957   :  { %1526 = vmatprep.subr.bf16.mxu0 %v4530_v5  ;;  %1575 = vmatprep.subr.bf16.mxu1 %v4530_v5  ;;  %5525 = vst [vmem:[#allocation45_spill] sm:$0xff] %v4562_v39  ;;  %v4566_v17 = vmul.f32 %v3430_v35, %v1322_v10  ;;  %v3432_v38 = vpop.eup %3431  ;;  %v1314_v2 = vmul.f32 %v5543_v56, %v5542_v23 }
 0x958   :  { %1527 = vmatpush1.bf16.xpose.msra.mxu0 %v4537_v62  ;;  %1576 = vmatpush1.bf16.xpose.msra.mxu1 %v4537_v62  ;;  %5526 = vst [vmem:[#allocation46_spill] sm:$0xff] %v4564_v19  ;;  %v4570_v18 = vpack.c.bf16 %v4558_v48, %v4564_v19  ;;  %v3434_v42 = vpop.eup %3433  ;;  %v4587_v55 = vmul.f32 %v3432_v38, %v1323_v3  ;;  %v5548_v3 = vld [vmem:[#allocation33_spill] sm:$0xff] }
 0x959   :  { %1528 = vmatprep.subr.bf16.mxu0 %v4544_v29  ;;  %1577 = vmatprep.subr.bf16.mxu1 %v4544_v29  ;;  %5527 = vst [vmem:[#allocation47_spill] sm:$0xff] %v4566_v17  ;;  %v4575_v21 = vpack.c.bf16 %v4562_v39, %v4566_v17  ;;  %v3436_v12 = vpop.eup %3435  ;;  %v4591_v1 = vmul.f32 %v3434_v42, %v1320_v28  ;;  %v5547_v42 = vld [vmem:[#allocation20_spill] sm:$0xff] }
 0x95a   :  { %v3438_v59 = vpop.eup %3437  ;;  %5529 = vst [vmem:[#allocation40_spill] sm:$0xff] %v4587_v55  ;;  %v4593_v49 = vmul.f32 %v3436_v12, %v1321_v8  ;;  %v1312_v12 = vmul.f32 %v5548_v3, %v5547_v42 }
 0x95b   :  { %5532 = vst [vmem:[#allocation14_spill] sm:$0xff] %v4591_v1  ;;  %v4595_v22 = vmul.f32 %v3438_v59, %v1318_v61  ;;  %v3440_v24 = vpop.eup %3439  ;;  %v4644_v59 = vpack.c.bf16 %v4504_v60, %v4500_v36  ;;  %v1308_v61 = vmul.f32 %v5550_v46, %v5549_v63 }
 0x95c   :  { %5533 = vst [vmem:[#allocation35_spill] sm:$0xff] %v4593_v49  ;;  %v4599_v33 = vpack.c.bf16 %v4587_v55, %v4593_v49  ;;  %v3442_v52 = vpop.eup %3441  ;;  %v4616_v15 = vmul.f32 %v3440_v24, %v1319_v13  ;;  %v5553_v13 = vld [vmem:[#allocation37_spill] sm:$0xff] }
 0x95d   :  { %5534 = vst [vmem:[#allocation48_spill] sm:$0xff] %v4595_v22  ;;  %v4604_v7 = vpack.c.bf16 %v4591_v1, %v4595_v22  ;;  %v3444_v54 = vpop.eup %3443  ;;  %v4620_v26 = vmul.f32 %v3442_v52, %v1316_v0  ;;  %v5556_v0 = vld [vmem:[#allocation21_spill] sm:$0xff] }
 0x95e   :  { %v3446_v41 = vpop.eup %3445  ;;  %5541 = vst [vmem:[#allocation16_spill] sm:$0xff] %v4616_v15  ;;  %v4622_v35 = vmul.f32 %v3444_v54, %v1317_v47  ;;  %v4680_v54 = vpack.c.bf16 %v5553_v13, %v5552_v53 }
 0x95f   :  { %5544 = vst [vmem:[#allocation39_spill] sm:$0xff] %v4620_v26  ;;  %v4624_v43 = vmul.f32 %v3446_v41, %v1314_v2  ;;  %v3448_v27 = vpop.eup %3447  ;;  %v5557_v41 = vld [vmem:[#allocation30_spill] sm:$0xff] }
 0x960   :  { %1529 = vmatpush1.bf16.xpose.msra.mxu0 %v4570_v18  ;;  %1578 = vmatpush1.bf16.xpose.msra.mxu1 %v4570_v18  ;;  %5545 = vst [vmem:[#allocation18_spill] sm:$0xff] %v4622_v35  ;;  %v4628_v10 = vpack.c.bf16 %v4616_v15, %v4622_v35  ;;  %v4640_v28 = vmul.f32 %v3448_v27, %v1312_v12 }
 0x961   :  { %1530 = vmatprep.subr.bf16.mxu0 %v4575_v21  ;;  %1579 = vmatprep.subr.bf16.mxu1 %v4575_v21  ;;  %5546 = vst [vmem:[#allocation32_spill] sm:$0xff] %v4624_v43  ;;  %v4632_v38 = vpack.c.bf16 %v4620_v26, %v4624_v43  ;;  %v3450_v8 = vpop.eup %3449 }
 0x962   :  { %v4648_v34 = vpack.c.bf16 %v4640_v28, %v4492_v25  ;;  %v4656_v24 = vmul.f32 %v3450_v8, %v1308_v61 }
 0x964   :  { %5551 = vst [vmem:[#allocation15_spill] sm:$0xff] %v4656_v24  ;;  %v4664_v52 = vpack.c.bf16 %v4656_v24, %v4476_v11 }
 0x968   :  { %1531 = vmatpush1.bf16.xpose.msra.mxu0 %v4599_v33  ;;  %1580 = vmatpush1.bf16.xpose.msra.mxu1 %v4599_v33 }
 0x969   :  { %1532 = vmatprep.subr.bf16.mxu0 %v4604_v7  ;;  %1581 = vmatprep.subr.bf16.mxu1 %v4604_v7 }
 0x970   :  { %1533 = vmatpush1.bf16.xpose.msra.mxu0 %v4628_v10  ;;  %1582 = vmatpush1.bf16.xpose.msra.mxu1 %v4628_v10 }
 0x971   :  { %1534 = vmatprep.subr.bf16.mxu0 %v4632_v38  ;;  %1583 = vmatprep.subr.bf16.mxu1 %v4632_v38 }
 0x978   :  { %1535 = vmatpush1.bf16.xpose.msra.mxu0 %v4644_v59  ;;  %1584 = vmatpush1.bf16.xpose.msra.mxu1 %v4644_v59 }
 0x979   :  { %1536 = vmatprep.subr.bf16.mxu0 %v4648_v34  ;;  %1585 = vmatprep.subr.bf16.mxu1 %v4648_v34 }
 0x980   :  { %1537 = vmatpush1.bf16.xpose.msra.mxu0 %v4660_v14  ;;  %1586 = vmatpush1.bf16.xpose.msra.mxu1 %v4660_v14 }
 0x981   :  { %1538 = vmatprep.subr.bf16.mxu0 %v4664_v52  ;;  %1587 = vmatprep.subr.bf16.mxu1 %v4664_v52 }
 0x988   :  { %1539 = vmatpush1.bf16.xpose.msra.mxu0 %v4672_v37  ;;  %1588 = vmatpush1.bf16.xpose.msra.mxu1 %v4672_v37 }
 0x989   :  { %1540 = vmatprep.subr.bf16.mxu0 %v4467_v58  ;;  %1589 = vmatprep.subr.bf16.mxu1 %v4467_v58 }
 0x990   :  { %1541 = vmatpush1.bf16.xpose.msra.mxu0 %v4680_v54  ;;  %1590 = vmatpush1.bf16.xpose.msra.mxu1 %v4680_v54 }
 0x997   :  { %1559 = vmatmul.mubr.bf16.vlgmr.msra.gmra.mxu0 %v5554_v20  ;;  %1608 = vmatmul.mubr.bf16.vlgmr.msra.gmra.mxu1 %v4680_v54 }
 0x998   :  { %1615 = vmatprep.mubr.bf16.mxu1 %v4664_v52  ;;  %1566 = vmatprep.mubr.bf16.mxu0 %v5555_v40 }
 0x99f   :  { %1567 = vmatmul.mubr.bf16.gmra.mxu0 %v5556_v0  ;;  %1616 = vmatmul.mubr.bf16.gmra.mxu1 %v4672_v37 }
 0x9a0   :  { %1623 = vmatprep.mubr.bf16.mxu1 %v4648_v34  ;;  %3224 = vmatprep.mubr.bf16.mxu0 %v5557_v41 }
 0x9a7   :  { %1624 = vmatmul.mubr.bf16.gmra.mxu1 %v4660_v14 }
 0x9a8   :  { %1631 = vmatprep.mubr.bf16.mxu1 %v4632_v38 }
 0x9af   :  { %1632 = vmatmul.mubr.bf16.gmra.mxu1 %v4644_v59 }
 0x9b0   :  { %1639 = vmatprep.mubr.bf16.mxu1 %v4604_v7 }
 0x9b7   :  { %1640 = vmatmul.mubr.bf16.gmra.mxu1 %v4628_v10 }
 0x9b8   :  { %1647 = vmatprep.mubr.bf16.mxu1 %v4575_v21 }
 0x9bf   :  { %1648 = vmatmul.mubr.bf16.gmra.mxu1 %v4599_v33 }
 0x9c0   :  { %1655 = vmatprep.mubr.bf16.mxu1 %v4544_v29 }
 0x9c7   :  { %1656 = vmatmul.mubr.bf16.gmra.mxu1 %v4570_v18 }
 0x9c8   :  { %1663 = vmatprep.mubr.bf16.mxu1 %v4530_v5 }
 0x9cf   :  { %1664 = vmatmul.mubr.bf16.gmra.mxu1 %v4537_v62 }
 0xa57   :  { %v4703_v51 = vpop.f32.mrf.mxu0  ;;  %v1609_v30 = vpop.f32.mrf.mxu1 }
 0xa59   :  { %v1562_v47 = vpop.f32.mrf.mxu0  ;;  %v1611_v23 = vpop.f32.mrf.mxu1 }
 0xa5b   :  { %v4705_v56 = vpop.f32.mrf.mxu0  ;;  %v1612_v2 = vpop.f32.mrf.mxu1 }
 0xa5c   :  { %v1672_v27 = vpack.c.bf16 %v1612_v2, %v1609_v30 }
 0xa5d   :  { %v1565_v42 = vpop.f32.mrf.mxu0  ;;  %v1614_v3 = vpop.f32.mrf.mxu1 }
 0xa5f   :  { %v4707_v12 = vpop.f32.mrf.mxu0  ;;  %v1617_v8 = vpop.f32.mrf.mxu1 }
 0xa61   :  { %v1570_v63 = vpop.f32.mrf.mxu0  ;;  %v1619_v46 = vpop.f32.mrf.mxu1 }
 0xa63   :  { %v4709_v61 = vpop.f32.mrf.mxu0  ;;  %v1620_v41 = vpop.f32.mrf.mxu1 }
 0xa64   :  { %v1673_v24 = vpack.c.bf16 %v1620_v41, %v1617_v8 }
 0xa65   :  { %v1622_v43 = vpop.f32.mrf.mxu1  ;;  %v1573_v35 = vpop.f32.mrf.mxu0 }
 0xa67   :  { %v1625_v26 = vpop.f32.mrf.mxu1 }
 0xa69   :  { %v1627_v47 = vpop.f32.mrf.mxu1 }
 0xa6b   :  { %v1628_v23 = vpop.f32.mrf.mxu1 }
 0xa6d   :  { %v1630_v15 = vpop.f32.mrf.mxu1 }
 0xa6f   :  { %v1633_v22 = vpop.f32.mrf.mxu1 }
 0xa71   :  { %v1635_v49 = vpop.f32.mrf.mxu1 }
 0xa73   :  { %v1636_v30 = vpop.f32.mrf.mxu1 }
 0xa75   :  { %v1638_v2 = vpop.f32.mrf.mxu1 }
 0xa77   :  { %v1641_v42 = vpop.f32.mrf.mxu1 }
 0xa79   :  { %v1643_v3 = vpop.f32.mrf.mxu1 }
 0xa7a   :  { %v1674_v3 = vpack.c.bf16 %v1628_v23, %v1625_v26 }
 0xa7b   :  { %v1644_v1 = vpop.f32.mrf.mxu1 }
 0xa7d   :  { %v1646_v55 = vpop.f32.mrf.mxu1 }
 0xa7e   :  { %v1676_v55 = vpack.c.bf16 %v1644_v1, %v1641_v42  ;;  %v5561_v42 = vld [vmem:[#allocation23_spill] sm:$0xff] }
 0xa7f   :  { %v1649_v63 = vpop.f32.mrf.mxu1 }
 0xa81   :  { %v1651_v46 = vpop.f32.mrf.mxu1 }
 0xa83   :  { %v1652_v17 = vpop.f32.mrf.mxu1 }
 0xa84   :  { %v1677_v2 = vpack.c.bf16 %v1652_v17, %v1649_v63  ;;  %v1682_v63 = vmul.f32 %v4707_v12, %v5561_v42 }
 0xa85   :  { %v1654_v19 = vpop.f32.mrf.mxu1 }
 0xa86   :  { %v1675_v19 = vpack.c.bf16 %v1636_v30, %v1633_v22 }
 0xa87   :  { %v1657_v39 = vpop.f32.mrf.mxu1 }
 0xa89   :  { %v1659_v8 = vpop.f32.mrf.mxu1 }
 0xa8a   :  { %v5563_v8 = vld [vmem:[#allocation28_spill] sm:$0xff] }
 0xa8b   :  { %v1660_v43 = vpop.f32.mrf.mxu1 }
 0xa8c   :  { %v1678_v49 = vpack.c.bf16 %v1660_v43, %v1657_v39  ;;  %v5560_v39 = vld [vmem:[#allocation24_spill] sm:$0xff]  ;;  %v1680_v43 = vmul.f32 %v4703_v51, %v5563_v8 }
 0xa8d   :  { %v1662_v35 = vpop.f32.mrf.mxu1 }
 0xa8e   :  { %v5564_v35 = vld [vmem:[#allocation29_spill] sm:$0xff] }
 0xa8f   :  { %v1665_v41 = vpop.f32.mrf.mxu1 }
 0xa91   :  { %v1667_v47 = vpop.f32.mrf.mxu1 }
 0xa93   :  { %v1668_v48 = vpop.f32.mrf.mxu1 }
 0xa94   :  { %v1679_v15 = vpack.c.bf16 %v1668_v48, %v1665_v41  ;;  %v5559_v48 = vmov 0   ;;  %v1681_v41 = vmul.f32 %v4705_v56, %v5564_v35 }
 0xa95   :  { %v1670_v50 = vpop.f32.mrf.mxu1 }
 0xa96   :  { %3208 = vmatprep.subr.bf16.mxu0 %v1679_v15  ;;  %v5558_v50 = vld [vmem:[#allocation27_spill] sm:$0xff] }
 0xa97   :  { %3209 = vmatpush3.bf16.msra.mxu0 %v1679_v15 }
 0xa98   :  { %3210 = vmatprep.subr.bf16.mxu0 %v1678_v49 }
 0xa9b   :  { %3211 = vmatpush3.bf16.msra.mxu0 %v1678_v49 }
 0xa9c   :  { %3212 = vmatprep.subr.bf16.mxu0 %v1677_v2 }
 0xa9f   :  { %3213 = vmatpush3.bf16.msra.mxu0 %v1677_v2 }
 0xaa0   :  { %3214 = vmatprep.subr.bf16.mxu0 %v1676_v55 }
 0xaa3   :  { %3215 = vmatpush3.bf16.msra.mxu0 %v1676_v55 }
 0xaa4   :  { %3216 = vmatprep.subr.bf16.mxu0 %v1675_v19 }
 0xaa7   :  { %3217 = vmatpush3.bf16.msra.mxu0 %v1675_v19 }
 0xaa8   :  { %3218 = vmatprep.subr.bf16.mxu0 %v1674_v3 }
 0xaab   :  { %3219 = vmatpush3.bf16.msra.mxu0 %v1674_v3 }
 0xaac   :  { %3220 = vmatprep.subr.bf16.mxu0 %v1673_v24 }
 0xaaf   :  { %3221 = vmatpush3.bf16.msra.mxu0 %v1673_v24 }
 0xab0   :  { %3222 = vmatprep.subr.bf16.mxu0 %v1672_v27 }
 0xab3   :  { %3223 = vmatpush3.bf16.msra.mxu0 %v1672_v27 }
 0xab4   :  { %1795 = vmatprep.subr.bf16.mxu0 %v5555_v40 }
 0xab6   :  { %3225 = vmatmul.mubr.bf16.vlgmr.msra.gmra.mxu0 %v5558_v50 }
 0xab7   :  { %1796 = vmatpush1.bf16.msra.mxu0 %v5556_v0  ;;  %1815 = vmatprep.mubr.bf16.mxu0 %v5559_v48 }
 0xab8   :  { %1797 = vmatprep.subr.bf16.mxu0 %v5560_v39 }
 0xabb   :  { %1798 = vmatpush1.bf16.msra.mxu0 %v5554_v20  ;;  %v5562_v20 = vld [vmem:[#allocation25_spill] sm:$0xff] }
 0xabc   :  { %2033 = vmatprep.subr.bf16.mxu0 %v4530_v5  ;;  %v1683_v5 = vmul.f32 %v4709_v61, %v5562_v20 }
 0xb76   :  { %v3226_v17 = vpop.f32.mrf.mxu0 }
 0xb77   :  { %v1727_v1 = vadd.f32 1.1920929e-07, %v3226_v17 }
 0xb78   :  { %v1718_v22 = vpop.f32.mrf.mxu0 }
 0xb79   :  { %v1719_v26 = vadd.f32 1.1920929e-07, %v1718_v22  ;;  %3451 = vrcp.f32 %v1727_v1 }
 0xb7a   :  { %v3227_v24 = vpop.f32.mrf.mxu0 }
 0xb7b   :  { %v1730_v27 = vadd.f32 1.1920929e-07, %v3227_v24  ;;  %3453 = vrcp.f32 %v1719_v26 }
 0xb7c   :  { %v1721_v40 = vpop.f32.mrf.mxu0 }
 0xb7d   :  { %3455 = vrcp.f32 %v1730_v27  ;;  %v1722_v23 = vadd.f32 1.1920929e-07, %v1721_v40 }
 0xb7f   :  { %3457 = vrcp.f32 %v1722_v23 }
 0xb86   :  { %v3452_v0 = vpop.eup %3451 }
 0xb87   :  { %v4726_v47 = vmul.f32 %v3452_v0, %v1682_v63 }
 0xb88   :  { %v3454_v30 = vpop.eup %3453 }
 0xb89   :  { %5565 = vst [vmem:[#allocation34_spill] sm:$0xff] %v4726_v47  ;;  %v4734_v12 = vmul.f32 %v3454_v30, %v1680_v43 }
 0xb8a   :  { %v3456_v46 = vpop.eup %3455 }
 0xb8b   :  { %v4728_v15 = vmul.f32 %v3456_v46, %v1683_v5  ;;  %5568 = vst [vmem:[#allocation20_spill] sm:$0xff] %v4734_v12 }
 0xb8c   :  { %v3458_v49 = vpop.eup %3457 }
 0xb8d   :  { %5566 = vst [vmem:[#allocation17_spill] sm:$0xff] %v4728_v15  ;;  %v4732_v2 = vpack.c.bf16 %v4728_v15, %v4726_v47  ;;  %v4736_v55 = vmul.f32 %v3458_v49, %v1681_v41 }
 0xb8f   :  { %5567 = vst [vmem:[#allocation31_spill] sm:$0xff] %v4732_v2  ;;  %5569 = vst [vmem:[#allocation33_spill] sm:$0xff] %v4736_v55  ;;  %3228 = vmatprep.subr.bf16.mxu1 %v4732_v2  ;;  %v4741_v51 = vpack.c.bf16 %v4736_v55, %v4734_v12 }
 0xb90   :  { %3229 = vmatpush3.bf16.msra.mxu1 %v4732_v2 }
 0xb91   :  { %5570 = vst [vmem:[#allocation22_spill] sm:$0xff] %v4741_v51  ;;  %1743 = vxpose.xlu0.c.b16.start [1/2] (short) %v4741_v51, 128  ;;  %3230 = vmatprep.subr.bf16.mxu1 %v4741_v51 }
 0xb94   :  { %3231 = vmatpush3.bf16.msra.mxu1 %v4741_v51 }
 0xb95   :  { %1744 = vxpose.xlu0.c.b16.end [2/2] (short) %v4732_v2, 128 }
 0xbf3   :  { %v1751_v56 = vpop.trf.xlu0 }
 0xbf4   :  { %3016 = vmatmul.mubr.msk.bf16.vlgmr.msra.gmra.mxu0 %vm358_vm0, %v1751_v56  ;;  %3232 = vmatprep.mubr.msk.bf16.mxu1 %vm358_vm0, %v1751_v56 }
 0xbf5   :  { %2034 = vmatpush1.bf16.msra.mxu0 %v4537_v62  ;;  %1825 = vmatprep.mubr.bf16.mxu0 %v5559_v48 }
 0xbf6   :  { %2035 = vmatprep.subr.bf16.mxu0 %v4544_v29 }
 0xbf7   :  { %v1752_v61 = vpop.trf.xlu0 }
 0xbf8   :  { %3233 = vmatmul.mubr.msk.bf16.vlgmr.msra.gmra.mxu1 %vm358_vm0, %v1752_v61 }
 0xbf9   :  { %2036 = vmatpush1.bf16.msra.mxu0 %v4570_v18 }
 0xbfa   :  { %2037 = vmatprep.subr.bf16.mxu0 %v4575_v21 }
 0xbfb   :  { %v1753_v19 = vpop.trf.xlu0 }
 0xbfc   :  { %3017 = vmatmul.mubr.msk.bf16.gmra.mxu0 %vm358_vm0, %v1752_v61  ;;  %3236 = vmatprep.mubr.msk.bf16.mxu1 %vm358_vm0, %v1753_v19 }
 0xbfd   :  { %2038 = vmatpush1.bf16.msra.mxu0 %v4599_v33  ;;  %1835 = vmatprep.mubr.bf16.mxu0 %v5559_v48 }
 0xbfe   :  { %2039 = vmatprep.subr.bf16.mxu0 %v4604_v7  ;;  %v4782_v7 = vld [vmem:[%s5345_s0 + $0x4] ss:$8 sps:$4 sm:$0xff]  }
 0xbff   :  { %v1754_v62 = vpop.trf.xlu0  ;;  %5571 = vst [vmem:[#allocation36_spill] sm:$0xff] %v4782_v7 }
 0xc00   :  { %3237 = vmatmul.mubr.msk.bf16.gmra.mxu1 %vm358_vm0, %v1754_v62 }
 0xc01   :  { %2040 = vmatpush1.bf16.msra.mxu0 %v4628_v10 }
 0xc02   :  { %2041 = vmatprep.subr.bf16.mxu0 %v4632_v38 }
 0xc03   :  { %v1755_v29 = vpop.trf.xlu0 }
 0xc04   :  { %3018 = vmatmul.mubr.msk.bf16.gmra.mxu0 %vm358_vm0, %v1753_v19  ;;  %3240 = vmatprep.mubr.msk.bf16.mxu1 %vm358_vm0, %v1755_v29 }
 0xc05   :  { %2042 = vmatpush1.bf16.msra.mxu0 %v4644_v59  ;;  %1845 = vmatprep.mubr.bf16.mxu0 %v5559_v48 }
 0xc06   :  { %2043 = vmatprep.subr.bf16.mxu0 %v4648_v34 }
 0xc07   :  { %v1756_v18 = vpop.trf.xlu0 }
 0xc08   :  { %3241 = vmatmul.mubr.msk.bf16.gmra.mxu1 %vm358_vm0, %v1756_v18 }
 0xc09   :  { %2044 = vmatpush1.bf16.msra.mxu0 %v4660_v14 }
 0xc0a   :  { %2045 = vmatprep.subr.bf16.mxu0 %v4664_v52 }
 0xc0b   :  { %v1757_v21 = vpop.trf.xlu0 }
 0xc0c   :  { %3019 = vmatmul.mubr.msk.bf16.gmra.mxu0 %vm358_vm0, %v1754_v62  ;;  %3244 = vmatprep.mubr.msk.bf16.mxu1 %vm358_vm0, %v1757_v21 }
 0xc0d   :  { %2046 = vmatpush1.bf16.msra.mxu0 %v4672_v37  ;;  %1855 = vmatprep.mubr.bf16.mxu0 %v5559_v48 }
 0xc0e   :  { %2047 = vmatprep.subr.bf16.mxu0 %v4467_v58 }
 0xc0f   :  { %v1758_v33 = vpop.trf.xlu0 }
 0xc10   :  { %3245 = vmatmul.mubr.msk.bf16.gmra.mxu1 %vm358_vm0, %v1758_v33 }
 0xc11   :  { %2048 = vmatpush1.bf16.msra.mxu0 %v4680_v54  ;;  %2258 = vmatprep.mubr.bf16.mxu1 %v4782_v7  ;;  %v5573_v7 = vld [vmem:[#allocation42_spill] sm:$0xff] }
 0xc14   :  { %3020 = vmatmul.mubr.msk.bf16.gmra.mxu0 %vm358_vm0, %v1755_v29 }
 0xc15   :  { %1865 = vmatprep.mubr.bf16.mxu0 %v5559_v48 }
 0xc1c   :  { %3021 = vmatmul.mubr.msk.bf16.gmra.mxu0 %vm358_vm0, %v1756_v18 }
 0xc1d   :  { %1875 = vmatprep.mubr.bf16.mxu0 %v5559_v48 }
 0xc24   :  { %3022 = vmatmul.mubr.msk.bf16.gmra.mxu0 %vm358_vm0, %v1757_v21 }
 0xc25   :  { %1885 = vmatprep.mubr.bf16.mxu0 %v5559_v48 }
 0xc2c   :  { %3023 = vmatmul.mubr.msk.bf16.gmra.mxu0 %vm358_vm0, %v1758_v33 }
 0xc2d   :  { %2065 = vmatprep.mubr.bf16.mxu0 %v5559_v48 }
 0xcb4   :  { %v1817_v20 = vpop.f32.mrf.mxu0 }
 0xcb6   :  { %v4800_v5 = vpop.f32.mrf.mxu0 }
 0xcb8   :  { %v3234_v58 = vpop.f32.mrf.mxu1  ;;  %v1821_v46 = vpop.f32.mrf.mxu0 }
 0xcba   :  { %v1930_v10 = vpop.f32.mrf.mxu1  ;;  %v4802_v8 = vpop.f32.mrf.mxu0 }
 0xcbc   :  { %v3235_v38 = vpop.f32.mrf.mxu1  ;;  %v4804_v43 = vpop.f32.mrf.mxu0 }
 0xcbd   :  { %v1994_v37 = vpack.c.bf16 %v3235_v38, %v3234_v58 }
 0xcbe   :  { %v1933_v59 = vpop.f32.mrf.mxu1  ;;  %v4806_v35 = vpop.f32.mrf.mxu0 }
 0xcbf   :  { %v1993_v34 = vpack.c.bf16 %v1933_v59, %v1930_v10 }
 0xcc0   :  { %v3238_v14 = vpop.f32.mrf.mxu1  ;;  %v4808_v41 = vpop.f32.mrf.mxu0 }
 0xcc1   :  { %2066 = vmatmul.mubr.bf16.vlgmr.msra.gmra.mxu0 %v1993_v34 }
 0xcc2   :  { %2075 = vmatprep.mubr.bf16.mxu0 %v5559_v48  ;;  %v1946_v52 = vpop.f32.mrf.mxu1  ;;  %v4810_v49 = vpop.f32.mrf.mxu0 }
 0xcc4   :  { %v3239_v54 = vpop.f32.mrf.mxu1  ;;  %v4812_v56 = vpop.f32.mrf.mxu0 }
 0xcc5   :  { %v1996_v1 = vpack.c.bf16 %v3239_v54, %v3238_v14 }
 0xcc6   :  { %v1949_v3 = vpop.f32.mrf.mxu1  ;;  %v4814_v61 = vpop.f32.mrf.mxu0 }
 0xcc7   :  { %v1995_v50 = vpack.c.bf16 %v1949_v3, %v1946_v52 }
 0xcc8   :  { %v3242_v39 = vpop.f32.mrf.mxu1  ;;  %v4816_v19 = vpop.f32.mrf.mxu0 }
 0xcc9   :  { %2076 = vmatmul.mubr.bf16.gmra.mxu0 %v1994_v37 }
 0xcca   :  { %2085 = vmatprep.mubr.bf16.mxu0 %v5559_v48  ;;  %v1962_v17 = vpop.f32.mrf.mxu1  ;;  %v4818_v62 = vpop.f32.mrf.mxu0 }
 0xccc   :  { %v3243_v22 = vpop.f32.mrf.mxu1  ;;  %v4820_v29 = vpop.f32.mrf.mxu0 }
 0xccd   :  { %v1998_v23 = vpack.c.bf16 %v3243_v22, %v3242_v39 }
 0xcce   :  { %v1965_v26 = vpop.f32.mrf.mxu1  ;;  %v4822_v18 = vpop.f32.mrf.mxu0 }
 0xccf   :  { %v1997_v24 = vpack.c.bf16 %v1965_v26, %v1962_v17 }
 0xcd0   :  { %v3246_v27 = vpop.f32.mrf.mxu1  ;;  %v4824_v21 = vpop.f32.mrf.mxu0 }
 0xcd1   :  { %2086 = vmatmul.mubr.bf16.gmra.mxu0 %v1995_v50 }
 0xcd2   :  { %2095 = vmatprep.mubr.bf16.mxu0 %v5559_v48  ;;  %v1978_v40 = vpop.f32.mrf.mxu1  ;;  %v4826_v33 = vpop.f32.mrf.mxu0 }
 0xcd4   :  { %v3247_v0 = vpop.f32.mrf.mxu1  ;;  %v4828_v58 = vpop.f32.mrf.mxu0 }
 0xcd5   :  { %v2000_v63 = vpack.c.bf16 %v3247_v0, %v3246_v27 }
 0xcd6   :  { %v1981_v30 = vpop.f32.mrf.mxu1  ;;  %v4830_v10 = vpop.f32.mrf.mxu0 }
 0xcd7   :  { %v1999_v42 = vpack.c.bf16 %v1981_v30, %v1978_v40 }
 0xcd8   :  { %v4832_v38 = vpop.f32.mrf.mxu0 }
 0xcd9   :  { %2096 = vmatmul.mubr.bf16.gmra.mxu0 %v1996_v1 }
 0xcda   :  { %2105 = vmatprep.mubr.bf16.mxu0 %v5559_v48  ;;  %v4834_v59 = vpop.f32.mrf.mxu0 }
 0xcdc   :  { %v4836_v34 = vpop.f32.mrf.mxu0 }
 0xcde   :  { %v4838_v14 = vpop.f32.mrf.mxu0 }
 0xce0   :  { %v4840_v52 = vpop.f32.mrf.mxu0 }
 0xce1   :  { %2106 = vmatmul.mubr.bf16.gmra.mxu0 %v1997_v24 }
 0xce2   :  { %2115 = vmatprep.mubr.bf16.mxu0 %v5559_v48  ;;  %v4842_v37 = vpop.f32.mrf.mxu0 }
 0xce4   :  { %v4844_v54 = vpop.f32.mrf.mxu0 }
 0xce6   :  { %v4846_v3 = vpop.f32.mrf.mxu0 }
 0xce8   :  { %v4848_v50 = vpop.f32.mrf.mxu0 }
 0xce9   :  { %2116 = vmatmul.mubr.bf16.gmra.mxu0 %v1998_v23 }
 0xcea   :  { %2125 = vmatprep.mubr.bf16.mxu0 %v5559_v48  ;;  %v4850_v39 = vpop.f32.mrf.mxu0 }
 0xcec   :  { %v4852_v17 = vpop.f32.mrf.mxu0 }
 0xcee   :  { %v4854_v1 = vpop.f32.mrf.mxu0 }
 0xcf0   :  { %v4856_v22 = vpop.f32.mrf.mxu0 }
 0xcf1   :  { %2126 = vmatmul.mubr.bf16.gmra.mxu0 %v1999_v42 }
 0xcf2   :  { %2135 = vmatprep.mubr.bf16.mxu0 %v5559_v48  ;;  %v4858_v26 = vpop.f32.mrf.mxu0 }
 0xcf9   :  { %2136 = vmatmul.mubr.bf16.gmra.mxu0 %v2000_v63 }
 0xd81   :  { %v2067_v24 = vpop.f32.mrf.mxu0 }
 0xd82   :  { %v2068_v27 = vadd.f32 1.1920929e-07, %v2067_v24  ;;  %v2001_v24 = vmul.f32 %v1817_v20, %v5552_v53  ;;  %v2004_v53 = vmul.f32 %v4802_v8, %v5573_v7 }
 0xd83   :  { %v2069_v40 = vpop.f32.mrf.mxu0 }
 0xd84   :  { %3459 = vrcp.f32 %v2068_v27  ;;  %v2070_v23 = vadd.f32 1.1920929e-07, %v2069_v40 }
 0xd85   :  { %v2071_v0 = vpop.f32.mrf.mxu0 }
 0xd86   :  { %v2072_v30 = vadd.f32 1.1920929e-07, %v2071_v0  ;;  %3461 = vrcp.f32 %v2070_v23 }
 0xd87   :  { %v2073_v42 = vpop.f32.mrf.mxu0 }
 0xd88   :  { %3463 = vrcp.f32 %v2072_v30  ;;  %v2074_v63 = vadd.f32 1.1920929e-07, %v2073_v42 }
 0xd89   :  { %v2077_v55 = vpop.f32.mrf.mxu0 }
 0xd8a   :  { %3465 = vrcp.f32 %v2074_v63  ;;  %v2078_v15 = vadd.f32 1.1920929e-07, %v2077_v55  ;;  %v2003_v55 = vmul.f32 %v1821_v46, %v5553_v13  ;;  %v5572_v63 = vld [vmem:[#allocation38_spill] sm:$0xff] }
 0xd8b   :  { %v2079_v12 = vpop.f32.mrf.mxu0 }
 0xd8c   :  { %3467 = vrcp.f32 %v2078_v15  ;;  %v2080_v47 = vadd.f32 1.1920929e-07, %v2079_v12 }
 0xd8d   :  { %v2081_v2 = vpop.f32.mrf.mxu0 }
 0xd8e   :  { %3469 = vrcp.f32 %v2080_v47  ;;  %v2082_v51 = vadd.f32 1.1920929e-07, %v2081_v2  ;;  %v2002_v47 = vmul.f32 %v4800_v5, %v5572_v63 }
 0xd8f   :  { %v4860_v48 = vpop.f32.mrf.mxu0 }
 0xd90   :  { %3471 = vrcp.f32 %v2082_v51 }
 0xd91   :  { %v3460_v27 = vpop.eup %3459  ;;  %v2087_v40 = vpop.f32.mrf.mxu0 }
 0xd92   :  { %v2088_v23 = vadd.f32 1.1920929e-07, %v2087_v40  ;;  %v4863_v0 = vmul.f32 %v3460_v27, %v2001_v24  ;;  %v2005_v27 = vmul.f32 %v4804_v43, %v4469_v57 }
 0xd93   :  { %v2089_v30 = vpop.f32.mrf.mxu0  ;;  %v3462_v42 = vpop.eup %3461 }
 0xd94   :  { %3473 = vrcp.f32 %v2088_v23  ;;  %v2090_v15 = vadd.f32 1.1920929e-07, %v2089_v30  ;;  %v4874_v46 = vmul.f32 %v3462_v42, %v2002_v47  ;;  %v2006_v30 = vmul.f32 %v4806_v35, %v4476_v11 }
 0xd95   :  { %v3464_v12 = vpop.eup %3463  ;;  %v2091_v2 = vpop.f32.mrf.mxu0  ;;  %v2007_v42 = vmul.f32 %v4808_v41, %v4478_v16  ;;  %v2010_v16 = vmul.f32 %v4814_v61, %v4492_v25  ;;  %v2013_v25 = vmul.f32 %v4820_v29, %v4500_v36 }
 0xd96   :  { %3475 = vrcp.f32 %v2090_v15  ;;  %v2092_v51 = vadd.f32 1.1920929e-07, %v2091_v2  ;;  %v4870_v20 = vmul.f32 %v3464_v12, %v2003_v55  ;;  %5575 = vst [vmem:[#allocation37_spill] sm:$0xff] %v4874_v46 }
 0xd97   :  { %v3466_v24 = vpop.eup %3465  ;;  %v2093_v40 = vpop.f32.mrf.mxu0 }
 0xd98   :  { %5574 = vst [vmem:[#allocation41_spill] sm:$0xff] %v4870_v20  ;;  %3477 = vrcp.f32 %v2092_v51  ;;  %v2094_v13 = vadd.f32 1.1920929e-07, %v2093_v40  ;;  %v4876_v23 = vmul.f32 %v3466_v24, %v2004_v53  ;;  %v2009_v53 = vmul.f32 %v4812_v56, %v4488_v31 }
 0xd99   :  { %v3468_v5 = vpop.eup %3467  ;;  %v2097_v7 = vpop.f32.mrf.mxu0  ;;  %v2012_v31 = vmul.f32 %v4818_v62, %v4640_v28 }
 0xd9a   :  { %5576 = vst [vmem:[#allocation26_spill] sm:$0xff] %v4876_v23  ;;  %3479 = vrcp.f32 %v2094_v13  ;;  %v2098_v8 = vadd.f32 1.1920929e-07, %v2097_v7  ;;  %v4882_v55 = vpack.c.bf16 %v4876_v23, %v4874_v46  ;;  %v4884_v15 = vmul.f32 %v3468_v5, %v2005_v27 }
 0xd9b   :  { %v3470_v57 = vpop.eup %3469  ;;  %v4886_v43 = vpop.f32.mrf.mxu0  ;;  %v2011_v13 = vmul.f32 %v4816_v19, %v4496_v44 }
 0xd9c   :  { %3481 = vrcp.f32 %v2098_v8  ;;  %2307 = vmatprep.mubr.bf16.mxu0 %v4882_v55  ;;  %v4891_v12 = vmul.f32 %v3470_v57, %v2006_v30 }
 0xd9d   :  { %v3472_v11 = vpop.eup %3471  ;;  %v2101_v35 = vpop.f32.mrf.mxu0 }
 0xd9e   :  { %v2102_v63 = vadd.f32 1.1920929e-07, %v2101_v35  ;;  %v4893_v47 = vmul.f32 %v3472_v11, %v2007_v42  ;;  %v2015_v35 = vmul.f32 %v4824_v21, %v4504_v60 }
 0xd9f   :  { %v4895_v2 = vpop.f32.mrf.mxu0 }
 0xda0   :  { %3483 = vrcp.f32 %v2102_v63 }
 0xda1   :  { %v3474_v51 = vpop.eup %3473  ;;  %v4899_v24 = vpop.f32.mrf.mxu0 }
 0xda2   :  { %v4903_v41 = vmul.f32 %v3474_v51, %v2009_v53 }
 0xda3   :  { %v3476_v27 = vpop.eup %3475  ;;  %v2109_v40 = vpop.f32.mrf.mxu0 }
 0xda4   :  { %v4907_v5 = vmul.f32 %v3476_v27, %v2010_v16 }
 0xda5   :  { %v3478_v30 = vpop.eup %3477  ;;  %v4909_v7 = vpop.f32.mrf.mxu0 }
 0xda6   :  { %v4913_v56 = vmul.f32 %v3478_v30, %v2011_v13 }
 0xda7   :  { %v3480_v8 = vpop.eup %3479  ;;  %v2113_v57 = vpop.f32.mrf.mxu0 }
 0xda8   :  { %v4917_v61 = vmul.f32 %v3480_v8, %v2012_v31 }
 0xda9   :  { %v3482_v42 = vpop.eup %3481  ;;  %v2117_v11 = vpop.f32.mrf.mxu0 }
 0xdaa   :  { %v4919_v44 = vmul.f32 %v3482_v42, %v2013_v25 }
 0xdab   :  { %v2119_v19 = vpop.f32.mrf.mxu0 }
 0xdac   :  { %v2120_v20 = vadd.f32 1.1920929e-07, %v2119_v19  ;;  %v2030_v19 = vmul.f32 %v4854_v1, %v4520_v45 }
 0xdad   :  { %v3484_v63 = vpop.eup %3483  ;;  %v2121_v53 = vpop.f32.mrf.mxu0 }
 0xdae   :  { %v4923_v28 = vmul.f32 %v3484_v63, %v2015_v35 }
 0xdaf   :  { %v2123_v62 = vpop.f32.mrf.mxu0 }
 0xdb0   :  { %v2124_v63 = vadd.f32 1.1920929e-07, %v2123_v62  ;;  %v2028_v62 = vmul.f32 %v4850_v39, %v4524_v4  ;;  %v2112_v39 = vadd.f32 1.1920929e-07, %v4909_v7  ;;  %v2108_v7 = vadd.f32 1.1920929e-07, %v4899_v24 }
 0xdb1   :  { %v2127_v51 = vpop.f32.mrf.mxu0 }
 0xdb2   :  { %v2128_v46 = vadd.f32 1.1920929e-07, %v2127_v51 }
 0xdb3   :  { %v2129_v16 = vpop.f32.mrf.mxu0 }
 0xdb4   :  { %v2130_v36 = vadd.f32 1.1920929e-07, %v2129_v16 }
 0xdb5   :  { %v2131_v27 = vpop.f32.mrf.mxu0 }
 0xdb6   :  { %3485 = vrcp.f32 %v2130_v36  ;;  %v2132_v35 = vadd.f32 1.1920929e-07, %v2131_v27  ;;  %v2122_v36 = vadd.f32 1.1920929e-07, %v2121_v53  ;;  %v5577_v53 = vld [vmem:[#allocation43_spill] sm:$0xff] }
 0xdb7   :  { %v2133_v13 = vpop.f32.mrf.mxu0  ;;  %v2029_v27 = vmul.f32 %v4852_v17, %v5577_v53 }
 0xdb8   :  { %v2134_v30 = vadd.f32 1.1920929e-07, %v2133_v13 }
 0xdb9   :  { %v2137_v29 = vpop.f32.mrf.mxu0 }
 0xdba   :  { %v2138_v25 = vadd.f32 1.1920929e-07, %v2137_v29  ;;  %3487 = vrcp.f32 %v2134_v30  ;;  %v2114_v30 = vadd.f32 1.1920929e-07, %v2113_v57  ;;  %v2026_v57 = vmul.f32 %v4846_v3, %v4532_v9 }
 0xdbb   :  { %v2139_v31 = vpop.f32.mrf.mxu0 }
 0xdbc   :  { %v2140_v8 = vadd.f32 1.1920929e-07, %v2139_v31 }
 0xdbd   :  { %v2141_v42 = vpop.f32.mrf.mxu0 }
 0xdbe   :  { %v2142_v23 = vadd.f32 1.1920929e-07, %v2141_v42  ;;  %3489 = vrcp.f32 %v2140_v8  ;;  %v2118_v8 = vadd.f32 1.1920929e-07, %v2117_v11  ;;  %v5584_v42 = vld [vmem:[#allocation44_spill] sm:$0xff] }
 0xdbf   :  { %v2143_v60 = vpop.f32.mrf.mxu0 }
 0xdc0   :  { %3491 = vrcp.f32 %v2142_v23  ;;  %v2144_v21 = vadd.f32 1.1920929e-07, %v2143_v60  ;;  %v2031_v23 = vmul.f32 %v4856_v22, %v4518_v32  ;;  %v2027_v60 = vmul.f32 %v4848_v50, %v5584_v42 }
 0xdc1   :  { %3493 = vrcp.f32 %v2138_v25  ;;  %v2084_v42 = vadd.f32 1.1920929e-07, %v4860_v48 }
 0xdc2   :  { %3495 = vrcp.f32 %v2144_v21 }
 0xdc3   :  { %3497 = vrcp.f32 %v2132_v35  ;;  %v3486_v16 = vpop.eup %3485 }
 0xdc4   :  { %3499 = vrcp.f32 %v2124_v63  ;;  %v4951_v3 = vmul.f32 %v3486_v16, %v2026_v57  ;;  %v2100_v63 = vadd.f32 1.1920929e-07, %v4886_v43 }
 0xdc5   :  { %3501 = vrcp.f32 %v2128_v46  ;;  %v2032_v46 = vmul.f32 %v4858_v26, %v4522_v6  ;;  %v2104_v26 = vadd.f32 1.1920929e-07, %v4895_v2  ;;  %v5585_v2 = vld [vmem:[#allocation45_spill] sm:$0xff] }
 0xdc6   :  { %3503 = vrcp.f32 %v2120_v20  ;;  %v2110_v20 = vadd.f32 1.1920929e-07, %v2109_v40  ;;  %5583 = vst [vmem:[#allocation23_spill] sm:$0xff] %v4951_v3  ;;  %v2024_v35 = vmul.f32 %v4842_v37, %v5585_v2  ;;  %v5601_v2 = vld [vmem:[#allocation39_spill] sm:$0xff] }
 0xdc7   :  { %v3488_v13 = vpop.eup %3487  ;;  %3505 = vrcp.f32 %v2122_v36  ;;  %v5588_v36 = vld [vmem:[#allocation47_spill] sm:$0xff] }
 0xdc8   :  { %3507 = vrcp.f32 %v2114_v30  ;;  %v4943_v45 = vmul.f32 %v3488_v13, %v2028_v62  ;;  %v5586_v13 = vld [vmem:[#allocation46_spill] sm:$0xff] }
 0xdc9   :  { %3509 = vrcp.f32 %v2118_v8  ;;  %v2025_v50 = vmul.f32 %v4844_v54, %v5586_v13 }
 0xdca   :  { %5581 = vst [vmem:[#allocation27_spill] sm:$0xff] %v4943_v45  ;;  %3511 = vrcp.f32 %v2110_v20  ;;  %v4963_v40 = vpack.c.bf16 %v4943_v45, %v4951_v3 }
 0xdcb   :  { %v3490_v29 = vpop.eup %3489  ;;  %3513 = vrcp.f32 %v2112_v39 }
 0xdcc   :  { %v4939_v22 = vmul.f32 %v3490_v29, %v2030_v19  ;;  %v2022_v29 = vmul.f32 %v4838_v14, %v5588_v36  ;;  %3515 = vrcp.f32 %v2104_v26  ;;  %v5592_v14 = vld [vmem:[#allocation40_spill] sm:$0xff]  ;;  %v5593_v19 = vld [vmem:[#allocation14_spill] sm:$0xff] }
 0xdcd   :  { %v3492_v31 = vpop.eup %3491  ;;  %3517 = vrcp.f32 %v2108_v7  ;;  %v5600_v7 = vld [vmem:[#allocation16_spill] sm:$0xff] }
 0xdce   :  { %v3494_v25 = vpop.eup %3493  ;;  %v4937_v32 = vmul.f32 %v3492_v31, %v2031_v23  ;;  %5579 = vst [vmem:[#allocation21_spill] sm:$0xff] %v4939_v22  ;;  %3519 = vrcp.f32 %v2100_v63  ;;  %v5602_v63 = vld [vmem:[#allocation18_spill] sm:$0xff] }
 0xdcf   :  { %v3496_v51 = vpop.eup %3495  ;;  %v4945_v6 = vmul.f32 %v3494_v25, %v2029_v27  ;;  %v2023_v25 = vmul.f32 %v4840_v52, %v5592_v14  ;;  %v5596_v27 = vld [vmem:[#allocation48_spill] sm:$0xff]  ;;  %3521 = vrcp.f32 %v2084_v42 }
 0xdd0   :  { %5578 = vst [vmem:[#allocation19_spill] sm:$0xff] %v4937_v32  ;;  %v4941_v4 = vmul.f32 %v3496_v51, %v2032_v46  ;;  %v3498_v1 = vpop.eup %3497  ;;  %v2020_v46 = vmul.f32 %v4834_v59, %v5593_v19  ;;  %v5594_v51 = vld [vmem:[#allocation35_spill] sm:$0xff]  ;;  %v2018_v52 = vmul.f32 %v4830_v10, %v5596_v27  ;;  %v2019_v10 = vmul.f32 %v4832_v38, %v5600_v7  ;;  %v5101_v27 = vld [vmem:[%s5345_s0 + $0x14] ss:$8 sps:$4 sm:$0xff]   ;;  %v5609_v7 = vld [vmem:[#allocation22_spill] sm:$0xff] }
 0xdd1   :  { %5582 = vst [vmem:[#allocation24_spill] sm:$0xff] %v4945_v6  ;;  %v4956_v17 = vpack.c.bf16 %v4937_v32, %v4945_v6  ;;  %v3500_v11 = vpop.eup %3499  ;;  %v4977_v24 = vmul.f32 %v3498_v1, %v2027_v60  ;;  %v2021_v57 = vmul.f32 %v4836_v34, %v5594_v51  ;;  %v5606_v51 = vld [vmem:[#allocation41_spill] sm:$0xff]  ;;  %v5607_v42 = vld [vmem:[#allocation36_spill] sm:$0xff] }
 0xdd2   :  { %5580 = vst [vmem:[#allocation30_spill] sm:$0xff] %v4941_v4  ;;  %v4949_v9 = vpack.c.bf16 %v4941_v4, %v4939_v22  ;;  %v3502_v21 = vpop.eup %3501  ;;  %v4981_v30 = vmul.f32 %v3500_v11, %v2024_v35  ;;  %v2016_v35 = vmul.f32 %v4826_v33, %v5601_v2 }
 0xdd3   :  { %v3504_v16 = vpop.eup %3503  ;;  %5587 = vst [vmem:[#allocation25_spill] sm:$0xff] %v4977_v24  ;;  %v4983_v37 = vmul.f32 %v3502_v21, %v2025_v50  ;;  %v5604_v50 = vld [vmem:[#allocation32_spill] sm:$0xff] }
 0xdd4   :  { %2226 = vmatprep.subr.bf16.mxu1 %v4949_v9  ;;  %2275 = vmatprep.subr.bf16.mxu0 %v4949_v9  ;;  %5589 = vst [vmem:[#allocation28_spill] sm:$0xff] %v4981_v30  ;;  %v4985_v43 = vmul.f32 %v3504_v16, %v2022_v29  ;;  %v3506_v54 = vpop.eup %3505  ;;  %v2017_v16 = vmul.f32 %v4828_v58, %v5602_v63 }
 0xdd5   :  { %2227 = vmatpush1.bf16.xpose.msra.mxu1 %v4956_v17  ;;  %2276 = vmatpush1.bf16.xpose.msra.mxu0 %v4956_v17  ;;  %5590 = vst [vmem:[#allocation29_spill] sm:$0xff] %v4983_v37  ;;  %v4989_v31 = vpack.c.bf16 %v4977_v24, %v4983_v37  ;;  %v3508_v8 = vpop.eup %3507  ;;  %v5005_v53 = vmul.f32 %v3506_v54, %v2023_v25  ;;  %v5605_v25 = vld [vmem:[#allocation15_spill] sm:$0xff] }
 0xdd6   :  { %2228 = vmatprep.subr.bf16.mxu1 %v4963_v40  ;;  %2277 = vmatprep.subr.bf16.mxu0 %v4963_v40  ;;  %5591 = vst [vmem:[#allocation38_spill] sm:$0xff] %v4985_v43  ;;  %v4993_v23 = vpack.c.bf16 %v4981_v30, %v4985_v43  ;;  %v3510_v62 = vpop.eup %3509  ;;  %v5009_v39 = vmul.f32 %v3508_v8, %v2020_v46 }
 0xdd7   :  { %v3512_v20 = vpop.eup %3511  ;;  %5595 = vst [vmem:[#allocation42_spill] sm:$0xff] %v5005_v53  ;;  %v5011_v1 = vmul.f32 %v3510_v62, %v2021_v57  ;;  %v2014_v38 = vmul.f32 %v4822_v18, %v5604_v50  ;;  %v5058_v18 = vpack.c.bf16 %v4923_v28, %v4919_v44  ;;  %v5062_v58 = vpack.c.bf16 %v4917_v61, %v4907_v5 }
 0xdd8   :  { %5597 = vst [vmem:[#allocation43_spill] sm:$0xff] %v5009_v39  ;;  %v5013_v26 = vmul.f32 %v3512_v20, %v2018_v52  ;;  %v3514_v11 = vpop.eup %3513  ;;  %v2008_v62 = vmul.f32 %v4810_v49, %v5605_v25  ;;  %v5074_v46 = vpack.c.bf16 %v4913_v56, %v4903_v41  ;;  %v5086_v49 = vpack.c.bf16 %v4893_v47, %v4884_v15  ;;  %v5107_v52 = vld [vmem:[%s5345_s0] ss:$8 sps:$4 sm:$0xff]  }
 0xdd9   :  { %5598 = vst [vmem:[#allocation44_spill] sm:$0xff] %v5011_v1  ;;  %v5017_v59 = vpack.c.bf16 %v5005_v53, %v5011_v1  ;;  %v3516_v60 = vpop.eup %3515  ;;  %v5034_v13 = vmul.f32 %v3514_v11, %v2019_v10  ;;  %v5094_v57 = vpack.c.bf16 %v5606_v51, %v4863_v0  ;;  %v5115_v11 = vld [vmem:[%s5345_s0 + $0x10] ss:$8 sps:$4 sm:$0xff]   ;;  %s3698_s0 = smov [#allocation7]  }
 0xdda   :  { %5599 = vst [vmem:[#allocation45_spill] sm:$0xff] %v5013_v26  ;;  %v5022_v34 = vpack.c.bf16 %v5009_v39, %v5013_v26  ;;  %v3518_v21 = vpop.eup %3517  ;;  %v5038_v36 = vmul.f32 %v3516_v60, %v2016_v35  ;;  %v5608_v60 = vmov 0   ;;  %s2951_s1 = sshll.u32 %s3698_s0, 4  ;;  %s2952_s1 = int_to_ptr.vmem [resolvable:$true] %s2951_s1 }
 0xddb   :  { %v3520_v48 = vpop.eup %3519  ;;  %5603 = vst [vmem:[#allocation46_spill] sm:$0xff] %v5034_v13  ;;  %v5040_v29 = vmul.f32 %v3518_v21, %v2017_v16  ;;  %s3643_s2 = scalar_lea.vmem %s2952_s1, 512  ;;  %p3648_p11 = scmp.lt.s32.totalorder %s2952_s1, %s2952_s1 }
 0xddc   :  { %v5042_v54 = vmul.f32 %v3520_v48, %v2014_v38  ;;  %v3522_v14 = vpop.eup %3521  ;;  %p3644_p10 = scmp.ne.s32.totalorder %s2952_s1, %s3643_s2  ;;  %p3649_p12 = scmp.lt.s32.totalorder %s3643_s2, %s3643_s2 }
 0xddd   :  { %2229 = vmatpush1.bf16.xpose.msra.mxu1 %v4989_v31  ;;  %2278 = vmatpush1.bf16.xpose.msra.mxu0 %v4989_v31  ;;  %v5046_v33 = vpack.c.bf16 %v5034_v13, %v5040_v29  ;;  %v5070_v19 = vmul.f32 %v3522_v14, %v2008_v62 }
 0xdde   :  { %2230 = vmatprep.subr.bf16.mxu1 %v4993_v23  ;;  %2279 = vmatprep.subr.bf16.mxu0 %v4993_v23  ;;  %v5050_v8 = vpack.c.bf16 %v5038_v36, %v5042_v54  ;;  %p3650_p13 = por %p3649_p12, %p3648_p11 }
 0xddf   :  { %v5078_v20 = vpack.c.bf16 %v5070_v19, %v4891_v12 }
 0xde0   :  { %p3651_p0 = pnand %p3650_p13, %p3644_p10 }
 0xde5   :  { %2231 = vmatpush1.bf16.xpose.msra.mxu1 %v5017_v59  ;;  %2280 = vmatpush1.bf16.xpose.msra.mxu0 %v5017_v59 }
 0xde6   :  { %2232 = vmatprep.subr.bf16.mxu1 %v5022_v34  ;;  %2281 = vmatprep.subr.bf16.mxu0 %v5022_v34 }
 0xded   :  { %2233 = vmatpush1.bf16.xpose.msra.mxu1 %v5046_v33  ;;  %2282 = vmatpush1.bf16.xpose.msra.mxu0 %v5046_v33 }
 0xdee   :  { %2234 = vmatprep.subr.bf16.mxu1 %v5050_v8  ;;  %2283 = vmatprep.subr.bf16.mxu0 %v5050_v8 }
 0xdf5   :  { %2235 = vmatpush1.bf16.xpose.msra.mxu1 %v5058_v18  ;;  %2284 = vmatpush1.bf16.xpose.msra.mxu0 %v5058_v18 }
 0xdf6   :  { %2236 = vmatprep.subr.bf16.mxu1 %v5062_v58  ;;  %2285 = vmatprep.subr.bf16.mxu0 %v5062_v58 }
 0xdfd   :  { %2237 = vmatpush1.bf16.xpose.msra.mxu1 %v5074_v46  ;;  %2286 = vmatpush1.bf16.xpose.msra.mxu0 %v5074_v46 }
 0xdfe   :  { %2238 = vmatprep.subr.bf16.mxu1 %v5078_v20  ;;  %2287 = vmatprep.subr.bf16.mxu0 %v5078_v20 }
 0xe05   :  { %2239 = vmatpush1.bf16.xpose.msra.mxu1 %v5086_v49  ;;  %2288 = vmatpush1.bf16.xpose.msra.mxu0 %v5086_v49 }
 0xe06   :  { %2240 = vmatprep.subr.bf16.mxu1 %v4882_v55  ;;  %2289 = vmatprep.subr.bf16.mxu0 %v4882_v55 }
 0xe0d   :  { %2241 = vmatpush1.bf16.xpose.msra.mxu1 %v5094_v57  ;;  %2290 = vmatpush1.bf16.xpose.msra.mxu0 %v5094_v57 }
 0xe0e   :  { %3288 = vmatprep.subr.bf16.mxu1 %v5101_v27 }
 0xe14   :  { %2259 = vmatmul.mubr.bf16.vlgmr.msra.gmra.mxu1 %v5107_v52  ;;  %2308 = vmatmul.mubr.bf16.vlgmr.msra.gmra.mxu0 %v5094_v57 }
 0xe15   :  { %2315 = vmatprep.mubr.bf16.mxu0 %v5078_v20  ;;  %3290 = vmatpush1.bf16.msra.mxu1 %v5115_v11 }
 0xe16   :  { %3289 = vmatprep.subr.bf16.mxu1 %v5607_v42  ;;  %2266 = vmatprep.mubr.bf16.mxu1 %v5101_v27 }
 0xe19   :  { %3291 = vmatpush1.bf16.msra.mxu1 %v5107_v52 }
 0xe1a   :  { %2733 = vmatprep.subr.bf16.mxu1 %v4949_v9 }
 0xe1c   :  { %2267 = vmatmul.mubr.bf16.gmra.mxu1 %v5115_v11  ;;  %2316 = vmatmul.mubr.bf16.gmra.mxu0 %v5086_v49 }
 0xe1d   :  { %2323 = vmatprep.mubr.bf16.mxu0 %v5062_v58  ;;  %2525 = vmatprep.mubr.bf16.mxu1 %v5608_v60 }
 0xe24   :  { %2324 = vmatmul.mubr.bf16.gmra.mxu0 %v5074_v46 }
 0xe25   :  { %2331 = vmatprep.mubr.bf16.mxu0 %v5050_v8 }
 0xe2c   :  { %2332 = vmatmul.mubr.bf16.gmra.mxu0 %v5058_v18 }
 0xe2d   :  { %2339 = vmatprep.mubr.bf16.mxu0 %v5022_v34 }
 0xe34   :  { %2340 = vmatmul.mubr.bf16.gmra.mxu0 %v5046_v33 }
 0xe35   :  { %2347 = vmatprep.mubr.bf16.mxu0 %v4993_v23 }
 0xe3c   :  { %2348 = vmatmul.mubr.bf16.gmra.mxu0 %v5017_v59 }
 0xe3d   :  { %2355 = vmatprep.mubr.bf16.mxu0 %v4963_v40 }
 0xe44   :  { %2356 = vmatmul.mubr.bf16.gmra.mxu0 %v4989_v31 }
 0xe45   :  { %2363 = vmatprep.mubr.bf16.mxu0 %v4949_v9 }
 0xe4c   :  { %2364 = vmatmul.mubr.bf16.gmra.mxu0 %v4956_v17 }
 0xe4d   :  { %3264 = vmatprep.mubr.bf16.mxu0 %v5609_v7 }
 0xed4   :  { %v5138_v10 = vpop.f32.mrf.mxu1  ;;  %v2309_v21 = vpop.f32.mrf.mxu0 }
 0xed6   :  { %v2262_v2 = vpop.f32.mrf.mxu1  ;;  %v2311_v35 = vpop.f32.mrf.mxu0 }
 0xed8   :  { %v5140_v48 = vpop.f32.mrf.mxu1  ;;  %v2312_v63 = vpop.f32.mrf.mxu0 }
 0xed9   :  { %v2372_v16 = vpack.c.bf16 %v2312_v63, %v2309_v21 }
 0xeda   :  { %v2265_v50 = vpop.f32.mrf.mxu1  ;;  %v2314_v38 = vpop.f32.mrf.mxu0 }
 0xedc   :  { %v5142_v14 = vpop.f32.mrf.mxu1  ;;  %v2317_v25 = vpop.f32.mrf.mxu0 }
 0xede   :  { %v2270_v62 = vpop.f32.mrf.mxu1  ;;  %v2319_v9 = vpop.f32.mrf.mxu0 }
 0xee0   :  { %v5144_v4 = vpop.f32.mrf.mxu1  ;;  %v2320_v32 = vpop.f32.mrf.mxu0 }
 0xee1   :  { %v2373_v7 = vpack.c.bf16 %v2320_v32, %v2317_v25 }
 0xee2   :  { %v2322_v22 = vpop.f32.mrf.mxu0  ;;  %v2273_v6 = vpop.f32.mrf.mxu1 }
 0xee4   :  { %v2325_v45 = vpop.f32.mrf.mxu0 }
 0xee6   :  { %v2327_v2 = vpop.f32.mrf.mxu0 }
 0xee8   :  { %v2328_v35 = vpop.f32.mrf.mxu0 }
 0xeea   :  { %v2330_v24 = vpop.f32.mrf.mxu0 }
 0xeec   :  { %v2333_v3 = vpop.f32.mrf.mxu0 }
 0xeee   :  { %v2335_v37 = vpop.f32.mrf.mxu0 }
 0xef0   :  { %v2336_v21 = vpop.f32.mrf.mxu0 }
 0xef2   :  { %v2338_v63 = vpop.f32.mrf.mxu0 }
 0xef4   :  { %v2341_v50 = vpop.f32.mrf.mxu0 }
 0xef6   :  { %v2343_v38 = vpop.f32.mrf.mxu0 }
 0xef7   :  { %v2374_v38 = vpack.c.bf16 %v2328_v35, %v2325_v45 }
 0xef8   :  { %v2344_v30 = vpop.f32.mrf.mxu0 }
 0xefa   :  { %v2346_v53 = vpop.f32.mrf.mxu0 }
 0xefb   :  { %v2376_v53 = vpack.c.bf16 %v2344_v30, %v2341_v50 }
 0xefc   :  { %v2349_v62 = vpop.f32.mrf.mxu0 }
 0xefe   :  { %v2351_v9 = vpop.f32.mrf.mxu0 }
 0xf00   :  { %v2352_v43 = vpop.f32.mrf.mxu0 }
 0xf01   :  { %v2377_v63 = vpack.c.bf16 %v2352_v43, %v2349_v62  ;;  %v5613_v62 = vld [vmem:[#allocation17_spill] sm:$0xff] }
 0xf02   :  { %v2354_v1 = vpop.f32.mrf.mxu0  ;;  %v2383_v9 = vmul.f32 %v5144_v4, %v5613_v62 }
 0xf03   :  { %v2375_v1 = vpack.c.bf16 %v2336_v21, %v2333_v3  ;;  %v5612_v21 = vld [vmem:[#allocation20_spill] sm:$0xff] }
 0xf04   :  { %v2357_v39 = vpop.f32.mrf.mxu0 }
 0xf06   :  { %v2359_v32 = vpop.f32.mrf.mxu0 }
 0xf08   :  { %v2360_v22 = vpop.f32.mrf.mxu0 }
 0xf09   :  { %v2378_v37 = vpack.c.bf16 %v2360_v22, %v2357_v39  ;;  %v5610_v39 = vld [vmem:[#allocation31_spill] sm:$0xff] }
 0xf0a   :  { %v2362_v6 = vpop.f32.mrf.mxu0 }
 0xf0b   :  { %v5614_v6 = vld [vmem:[#allocation33_spill] sm:$0xff] }
 0xf0c   :  { %v2365_v25 = vpop.f32.mrf.mxu0 }
 0xf0e   :  { %v2367_v2 = vpop.f32.mrf.mxu0 }
 0xf10   :  { %v2368_v13 = vpop.f32.mrf.mxu0 }
 0xf11   :  { %v2379_v24 = vpack.c.bf16 %v2368_v13, %v2365_v25  ;;  %v2381_v25 = vmul.f32 %v5140_v48, %v5614_v6 }
 0xf12   :  { %v2370_v26 = vpop.f32.mrf.mxu0 }
 0xf13   :  { %3248 = vmatprep.subr.bf16.mxu0 %v2379_v24 }
 0xf14   :  { %3249 = vmatpush3.bf16.msra.mxu0 %v2379_v24 }
 0xf15   :  { %3250 = vmatprep.subr.bf16.mxu0 %v2378_v37 }
 0xf18   :  { %3251 = vmatpush3.bf16.msra.mxu0 %v2378_v37 }
 0xf19   :  { %3252 = vmatprep.subr.bf16.mxu0 %v2377_v63 }
 0xf1c   :  { %3253 = vmatpush3.bf16.msra.mxu0 %v2377_v63 }
 0xf1d   :  { %3254 = vmatprep.subr.bf16.mxu0 %v2376_v53 }
 0xf20   :  { %3255 = vmatpush3.bf16.msra.mxu0 %v2376_v53 }
 0xf21   :  { %3256 = vmatprep.subr.bf16.mxu0 %v2375_v1 }
 0xf24   :  { %3257 = vmatpush3.bf16.msra.mxu0 %v2375_v1 }
 0xf25   :  { %3258 = vmatprep.subr.bf16.mxu0 %v2374_v38 }
 0xf28   :  { %3259 = vmatpush3.bf16.msra.mxu0 %v2374_v38 }
 0xf29   :  { %3260 = vmatprep.subr.bf16.mxu0 %v2373_v7 }
 0xf2c   :  { %3261 = vmatpush3.bf16.msra.mxu0 %v2373_v7  ;;  %v5611_v7 = vld [vmem:[#allocation34_spill] sm:$0xff] }
 0xf2d   :  { %3262 = vmatprep.subr.bf16.mxu0 %v2372_v16 }
 0xf30   :  { %3263 = vmatpush3.bf16.msra.mxu0 %v2372_v16 }
 0xf31   :  { %2495 = vmatprep.subr.bf16.mxu0 %v5101_v27 }
 0xf33   :  { %3265 = vmatmul.mubr.bf16.vlgmr.msra.gmra.mxu0 %v5610_v39 }
 0xf34   :  { %2496 = vmatpush1.bf16.msra.mxu0 %v5115_v11  ;;  %2515 = vmatprep.mubr.bf16.mxu0 %v5608_v60  ;;  %v2382_v11 = vmul.f32 %v5142_v14, %v5611_v7 }
 0xf35   :  { %2497 = vmatprep.subr.bf16.mxu0 %v5607_v42  ;;  %v2380_v42 = vmul.f32 %v5138_v10, %v5612_v21 }
 0xf38   :  { %2498 = vmatpush1.bf16.msra.mxu0 %v5107_v52 }
 0xff3   :  { %v3266_v45 = vpop.f32.mrf.mxu0 }
 0xff4   :  { %v2427_v3 = vadd.f32 1.1920929e-07, %v3266_v45 }
 0xff5   :  { %v2418_v30 = vpop.f32.mrf.mxu0 }
 0xff6   :  { %3523 = vrcp.f32 %v2427_v3  ;;  %v2419_v43 = vadd.f32 1.1920929e-07, %v2418_v30 }
 0xff7   :  { %v3267_v26 = vpop.f32.mrf.mxu0 }
 0xff8   :  { %3525 = vrcp.f32 %v2419_v43  ;;  %v2430_v13 = vadd.f32 1.1920929e-07, %v3267_v26 }
 0xff9   :  { %v2421_v16 = vpop.f32.mrf.mxu0 }
 0xffa   :  { %3527 = vrcp.f32 %v2430_v13  ;;  %v2422_v27 = vadd.f32 1.1920929e-07, %v2421_v16 }
 0xffc   :  { %3529 = vrcp.f32 %v2422_v27 }
0x1003   :  { %v3524_v35 = vpop.eup %3523 }
0x1004   :  { %v2439_v52 = vmul.f32 %v3524_v35, %v2382_v11 }
0x1005   :  { %v3526_v50 = vpop.eup %3525 }
0x1006   :  { %2912 = vst [vmem:[#allocation7 + $0x10] sm:$0xff] %v2439_v52  ;;  %v2437_v32 = vmul.f32 %v3526_v50, %v2380_v42 }
0x1007   :  { %v3528_v22 = vpop.eup %3527 }
0x1008   :  { %v2440_v2 = vmul.f32 %v3528_v22, %v2383_v9  ;;  %2910 = vst [vmem:[#allocation7] sm:$0xff] %v2437_v32 }
0x1009   :  { %v3530_v24 = vpop.eup %3529 }
0x100a   :  { %v2442_v37 = vpack.c.bf16 %v2440_v2, %v2439_v52  ;;  %2913 = vst [vmem:[#allocation7 + $0x18] sm:$0xff] %v2440_v2  ;;  %v2438_v14 = vmul.f32 %v3530_v24, %v2381_v25 }
0x100c   :  { %3268 = vmatprep.subr.bf16.mxu0 %v2442_v37  ;;  %v2441_v63 = vpack.c.bf16 %v2438_v14, %v2437_v32  ;;  %2911 = vst [vmem:[#allocation7 + $0x8] sm:$0xff] %v2438_v14 }
0x100e   :  { %2443 = vxpose.xlu1.c.b16.start [1/2] (short) %v2441_v63, 128 }
0x1012   :  { %2444 = vxpose.xlu1.c.b16.end [2/2] (short) %v2442_v37, 128 }
0x1070   :  { %v2451_v10 = vpop.trf.xlu1 }
0x1071   :  { %3032 = vmatmul.mubr.msk.bf16.vlgmr.msra.gmra.mxu0 %vm358_vm0, %v2451_v10 }
0x1072   :  { %3269 = vmatpush3.bf16.msra.mxu0 %v2442_v37  ;;  %3272 = vmatprep.mubr.msk.bf16.mxu0 %vm358_vm0, %v2451_v10 }
0x1073   :  { %3270 = vmatprep.subr.bf16.mxu0 %v2441_v63 }
0x1074   :  { %v2452_v4 = vpop.trf.xlu1 }
0x1075   :  { %3033 = vmatmul.mubr.msk.bf16.vlgmr.msra.gmra.mxu1 %vm358_vm0, %v2452_v4 }
0x1076   :  { %3271 = vmatpush3.bf16.msra.mxu0 %v2441_v63  ;;  %2734 = vmatpush1.bf16.msra.mxu1 %v4956_v17 }
0x1077   :  { %2735 = vmatprep.subr.bf16.mxu1 %v4963_v40  ;;  %2535 = vmatprep.mubr.bf16.mxu1 %v5608_v60 }
0x1078   :  { %v2453_v48 = vpop.trf.xlu1 }
0x1079   :  { %3273 = vmatmul.mubr.msk.bf16.vlgmr.msra.gmra.mxu0 %vm358_vm0, %v2452_v4 }
0x107a   :  { %2736 = vmatpush1.bf16.msra.mxu1 %v4989_v31  ;;  %3276 = vmatprep.mubr.msk.bf16.mxu0 %vm358_vm0, %v2453_v48 }
0x107b   :  { %2737 = vmatprep.subr.bf16.mxu1 %v4993_v23 }
0x107c   :  { %v2454_v53 = vpop.trf.xlu1 }
0x107d   :  { %3034 = vmatmul.mubr.msk.bf16.gmra.mxu1 %vm358_vm0, %v2453_v48 }
0x107e   :  { %2738 = vmatpush1.bf16.msra.mxu1 %v5017_v59  ;;  %2545 = vmatprep.mubr.bf16.mxu1 %v5608_v60 }
0x107f   :  { %2739 = vmatprep.subr.bf16.mxu1 %v5022_v34 }
0x1080   :  { %v2455_v17 = vpop.trf.xlu1 }
0x1081   :  { %3277 = vmatmul.mubr.msk.bf16.gmra.mxu0 %vm358_vm0, %v2454_v53 }
0x1082   :  { %2740 = vmatpush1.bf16.msra.mxu1 %v5046_v33  ;;  %3280 = vmatprep.mubr.msk.bf16.mxu0 %vm358_vm0, %v2455_v17 }
0x1083   :  { %2741 = vmatprep.subr.bf16.mxu1 %v5050_v8 }
0x1084   :  { %v2456_v40 = vpop.trf.xlu1 }
0x1085   :  { %3035 = vmatmul.mubr.msk.bf16.gmra.mxu1 %vm358_vm0, %v2454_v53 }
0x1086   :  { %2742 = vmatpush1.bf16.msra.mxu1 %v5058_v18  ;;  %2555 = vmatprep.mubr.bf16.mxu1 %v5608_v60 }
0x1087   :  { %2743 = vmatprep.subr.bf16.mxu1 %v5062_v58 }
0x1088   :  { %v2457_v31 = vpop.trf.xlu1 }
0x1089   :  { %3281 = vmatmul.mubr.msk.bf16.gmra.mxu0 %vm358_vm0, %v2456_v40 }
0x108a   :  { %2744 = vmatpush1.bf16.msra.mxu1 %v5074_v46  ;;  %3284 = vmatprep.mubr.msk.bf16.mxu0 %vm358_vm0, %v2457_v31 }
0x108b   :  { %2745 = vmatprep.subr.bf16.mxu1 %v5078_v20 }
0x108c   :  { %v2458_v23 = vpop.trf.xlu1 }
0x108d   :  { %3036 = vmatmul.mubr.msk.bf16.gmra.mxu1 %vm358_vm0, %v2455_v17 }
0x108e   :  { %2746 = vmatpush1.bf16.msra.mxu1 %v5086_v49  ;;  %2565 = vmatprep.mubr.bf16.mxu1 %v5608_v60 }
0x108f   :  { %2747 = vmatprep.subr.bf16.mxu1 %v4882_v55 }
0x1091   :  { %3285 = vmatmul.mubr.msk.bf16.gmra.mxu0 %vm358_vm0, %v2458_v23 }
0x1092   :  { %2748 = vmatpush1.bf16.msra.mxu1 %v5094_v57 }
0x1095   :  { %3037 = vmatmul.mubr.msk.bf16.gmra.mxu1 %vm358_vm0, %v2456_v40 }
0x1096   :  { %2575 = vmatprep.mubr.bf16.mxu1 %v5608_v60 }
0x109d   :  { %3038 = vmatmul.mubr.msk.bf16.gmra.mxu1 %vm358_vm0, %v2457_v31 }
0x109e   :  { %2585 = vmatprep.mubr.bf16.mxu1 %v5608_v60 }
0x10a5   :  { %3039 = vmatmul.mubr.msk.bf16.gmra.mxu1 %vm358_vm0, %v2458_v23 }
0x10a6   :  { %2765 = vmatprep.mubr.bf16.mxu1 %v5608_v60 }
0x1131   :  { %v5198_v59 = vpop.f32.mrf.mxu0 }
0x1133   :  { %v5200_v34 = vpop.f32.mrf.mxu0 }
0x1135   :  { %v5202_v55 = vpop.f32.mrf.mxu0  ;;  %v5213_v50 = vpop.f32.mrf.mxu1 }
0x1137   :  { %v5204_v33 = vpop.f32.mrf.mxu0  ;;  %v5215_v62 = vpop.f32.mrf.mxu1 }
0x1139   :  { %v3274_v8 = vpop.f32.mrf.mxu0  ;;  %v5217_v9 = vpop.f32.mrf.mxu1 }
0x113b   :  { %v2630_v18 = vpop.f32.mrf.mxu0  ;;  %v5219_v32 = vpop.f32.mrf.mxu1 }
0x113d   :  { %v3275_v58 = vpop.f32.mrf.mxu0  ;;  %v5221_v22 = vpop.f32.mrf.mxu1 }
0x113e   :  { %v2694_v1 = vpack.c.bf16 %v3275_v58, %v3274_v8 }
0x113f   :  { %v2633_v46 = vpop.f32.mrf.mxu0  ;;  %v5223_v6 = vpop.f32.mrf.mxu1 }
0x1140   :  { %v2693_v20 = vpack.c.bf16 %v2633_v46, %v2630_v18 }
0x1141   :  { %v3278_v49 = vpop.f32.mrf.mxu0  ;;  %v5225_v25 = vpop.f32.mrf.mxu1 }
0x1142   :  { %2766 = vmatmul.mubr.bf16.vlgmr.msra.gmra.mxu1 %v2693_v20 }
0x1143   :  { %2775 = vmatprep.mubr.bf16.mxu1 %v5608_v60  ;;  %v2646_v57 = vpop.f32.mrf.mxu0  ;;  %v5227_v2 = vpop.f32.mrf.mxu1 }
0x1145   :  { %v3279_v38 = vpop.f32.mrf.mxu0  ;;  %v5229_v24 = vpop.f32.mrf.mxu1 }
0x1146   :  { %v2696_v43 = vpack.c.bf16 %v3279_v38, %v3278_v49 }
0x1147   :  { %v2649_v39 = vpop.f32.mrf.mxu0 }
0x1148   :  { %v2695_v45 = vpack.c.bf16 %v2649_v39, %v2646_v57 }
0x1149   :  { %v3282_v3 = vpop.f32.mrf.mxu0 }
0x114a   :  { %2776 = vmatmul.mubr.bf16.gmra.mxu1 %v2694_v1 }
0x114b   :  { %2785 = vmatprep.mubr.bf16.mxu1 %v5608_v60  ;;  %v2662_v30 = vpop.f32.mrf.mxu0 }
0x114d   :  { %v3283_v26 = vpop.f32.mrf.mxu0 }
0x114e   :  { %v2698_v11 = vpack.c.bf16 %v3283_v26, %v3282_v3 }
0x114f   :  { %v2665_v13 = vpop.f32.mrf.mxu0 }
0x1150   :  { %v2697_v16 = vpack.c.bf16 %v2665_v13, %v2662_v30 }
0x1151   :  { %v3286_v27 = vpop.f32.mrf.mxu0 }
0x1152   :  { %2786 = vmatmul.mubr.bf16.gmra.mxu1 %v2695_v45 }
0x1153   :  { %2795 = vmatprep.mubr.bf16.mxu1 %v5608_v60  ;;  %v2678_v7 = vpop.f32.mrf.mxu0 }
0x1155   :  { %v3287_v35 = vpop.f32.mrf.mxu0 }
0x1156   :  { %v2700_v52 = vpack.c.bf16 %v3287_v35, %v3286_v27 }
0x1157   :  { %v2681_v21 = vpop.f32.mrf.mxu0 }
0x1158   :  { %v2699_v42 = vpack.c.bf16 %v2681_v21, %v2678_v7 }
0x115a   :  { %2796 = vmatmul.mubr.bf16.gmra.mxu1 %v2696_v43 }
0x115b   :  { %2805 = vmatprep.mubr.bf16.mxu1 %v5608_v60 }
0x1162   :  { %2806 = vmatmul.mubr.bf16.gmra.mxu1 %v2697_v16 }
0x1163   :  { %2815 = vmatprep.mubr.bf16.mxu1 %v5608_v60 }
0x116a   :  { %2816 = vmatmul.mubr.bf16.gmra.mxu1 %v2698_v11 }
0x116b   :  { %2825 = vmatprep.mubr.bf16.mxu1 %v5608_v60 }
0x1172   :  { %2826 = vmatmul.mubr.bf16.gmra.mxu1 %v2699_v42 }
0x1173   :  { %2835 = vmatprep.mubr.bf16.mxu1 %v5608_v60  ;;  %v5231_v60 = vpop.f32.mrf.mxu1 }
0x1175   :  { %v5233_v37 = vpop.f32.mrf.mxu1 }
0x1177   :  { %v5235_v14 = vpop.f32.mrf.mxu1 }
0x1179   :  { %v5237_v63 = vpop.f32.mrf.mxu1 }
0x117a   :  { %2836 = vmatmul.mubr.bf16.gmra.mxu1 %v2700_v52 }
0x117b   :  { %v5239_v10 = vpop.f32.mrf.mxu1 }
0x117d   :  { %v5241_v4 = vpop.f32.mrf.mxu1 }
0x117f   :  { %v5243_v48 = vpop.f32.mrf.mxu1 }
0x1181   :  { %v5245_v53 = vpop.f32.mrf.mxu1 }
0x1182   :  { %3654 = shalt.err (!%p3651_p0)
}
0x1183   :  { %2957 = dma.vmem_to_hbm [thread:$0]  %s2952_s1, 512, %s5348_s3, [#allocation4], %s3692_s18, %s3692_s18, %s3693_s19   ;;  %v5253_v17 = vpop.f32.mrf.mxu1  ;;  %v2701_v42 = vmul.f32 %v5198_v59, %v4863_v0 }
0x1184   :  { %s3699_s3 = smov [#allocation8]  }
0x1185   :  { %v5255_v40 = vpop.f32.mrf.mxu1  ;;  %s2963_s18 = sshll.u32 %s3699_s3, 4  ;;  %s2964_s18 = int_to_ptr.vmem [resolvable:$true] %s2963_s18 }
0x1186   :  { %s3663_s19 = scalar_lea.vmem %s2964_s18, 4096  ;;  %p3668_p2 = scmp.lt.s32.totalorder %s2964_s18, %s2964_s18 }
0x1187   :  { %v5257_v31 = vpop.f32.mrf.mxu1  ;;  %p3664_p1 = scmp.ne.s32.totalorder %s2964_s18, %s3663_s19  ;;  %p3669_p3 = scmp.lt.s32.totalorder %s3663_s19, %s3663_s19 }
0x1189   :  { %v5259_v23 = vpop.f32.mrf.mxu1  ;;  %p3670_p4 = por %p3669_p3, %p3668_p2 }
0x118b   :  { %v5261_v8 = vpop.f32.mrf.mxu1  ;;  %p3671_p5 = pnand %p3670_p4, %p3664_p1 }
0x118d   :  { %v5263_v18 = vpop.f32.mrf.mxu1 }
0x118f   :  { %v5265_v58 = vpop.f32.mrf.mxu1 }
0x1191   :  { %v5267_v46 = vpop.f32.mrf.mxu1 }
0x1193   :  { %v5269_v20 = vpop.f32.mrf.mxu1 }
0x1195   :  { %v5271_v49 = vpop.f32.mrf.mxu1 }
0x1197   :  { %v5273_v57 = vpop.f32.mrf.mxu1 }
0x1202   :  { %v2767_v1 = vpop.f32.mrf.mxu1 }
0x1203   :  { %v2768_v38 = vadd.f32 1.1920929e-07, %v2767_v1 }
0x1204   :  { %v2769_v39 = vpop.f32.mrf.mxu1 }
0x1205   :  { %3531 = vrcp.f32 %v2768_v38  ;;  %v2770_v45 = vadd.f32 1.1920929e-07, %v2769_v39  ;;  %v5615_v39 = vld [vmem:[#allocation37_spill] sm:$0xff] }
0x1206   :  { %v2771_v3 = vpop.f32.mrf.mxu1 }
0x1207   :  { %3533 = vrcp.f32 %v2770_v45  ;;  %v2772_v30 = vadd.f32 1.1920929e-07, %v2771_v3  ;;  %v2702_v45 = vmul.f32 %v5200_v34, %v5615_v39  ;;  %v2706_v39 = vmul.f32 %v5215_v62, %v4891_v12 }
0x1208   :  { %v2773_v43 = vpop.f32.mrf.mxu1 }
0x1209   :  { %3535 = vrcp.f32 %v2772_v30  ;;  %v2774_v26 = vadd.f32 1.1920929e-07, %v2773_v43 }
0x120a   :  { %v2777_v13 = vpop.f32.mrf.mxu1 }
0x120b   :  { %3537 = vrcp.f32 %v2774_v26  ;;  %v2778_v16 = vadd.f32 1.1920929e-07, %v2777_v13  ;;  %v2703_v13 = vmul.f32 %v5202_v55, %v5606_v51 }
0x120c   :  { %v2779_v27 = vpop.f32.mrf.mxu1 }
0x120d   :  { %3539 = vrcp.f32 %v2778_v16  ;;  %v2780_v7 = vadd.f32 1.1920929e-07, %v2779_v27 }
0x120e   :  { %v2781_v11 = vpop.f32.mrf.mxu1 }
0x120f   :  { %3541 = vrcp.f32 %v2780_v7  ;;  %v2782_v35 = vadd.f32 1.1920929e-07, %v2781_v11  ;;  %v5616_v7 = vld [vmem:[#allocation26_spill] sm:$0xff] }
0x1210   :  { %v2783_v21 = vpop.f32.mrf.mxu1  ;;  %v2704_v11 = vmul.f32 %v5204_v33, %v5616_v7 }
0x1211   :  { %3543 = vrcp.f32 %v2782_v35  ;;  %v2784_v52 = vadd.f32 1.1920929e-07, %v2783_v21 }
0x1212   :  { %v3532_v1 = vpop.eup %3531  ;;  %v2787_v38 = vpop.f32.mrf.mxu1 }
0x1213   :  { %v2878_v3 = vmul.f32 %v3532_v1, %v2701_v42  ;;  %3545 = vrcp.f32 %v2784_v52  ;;  %v2788_v30 = vadd.f32 1.1920929e-07, %v2787_v38  ;;  %v2705_v52 = vmul.f32 %v5213_v50, %v4884_v15 }
0x1214   :  { %v3534_v43 = vpop.eup %3533  ;;  %v2789_v26 = vpop.f32.mrf.mxu1 }
0x1215   :  { %2914 = vst [vmem:[#allocation8] sm:$0xff] %v2878_v3  ;;  %v2879_v16 = vmul.f32 %v3534_v43, %v2702_v45  ;;  %3547 = vrcp.f32 %v2788_v30  ;;  %v2790_v27 = vadd.f32 1.1920929e-07, %v2789_v26  ;;  %v2707_v43 = vmul.f32 %v5217_v9, %v4893_v47 }
0x1216   :  { %v3536_v0 = vpop.eup %3535  ;;  %v2791_v59 = vpop.f32.mrf.mxu1 }
0x1217   :  { %2915 = vst [vmem:[#allocation8 + $0x8] sm:$0xff] %v2879_v16  ;;  %v2880_v35 = vmul.f32 %v3536_v0, %v2703_v13  ;;  %3549 = vrcp.f32 %v2790_v27  ;;  %v2792_v34 = vadd.f32 1.1920929e-07, %v2791_v59  ;;  %v2708_v16 = vmul.f32 %v5219_v32, %v5070_v19 }
0x1218   :  { %v3538_v21 = vpop.eup %3537  ;;  %v2793_v42 = vpop.f32.mrf.mxu1  ;;  %v2709_v59 = vmul.f32 %v5221_v22, %v4903_v41 }
0x1219   :  { %2916 = vst [vmem:[#allocation8 + $0x10] sm:$0xff] %v2880_v35  ;;  %v2881_v51 = vmul.f32 %v3538_v21, %v2704_v11  ;;  %3551 = vrcp.f32 %v2792_v34  ;;  %v2794_v55 = vadd.f32 1.1920929e-07, %v2793_v42  ;;  %v2710_v35 = vmul.f32 %v5223_v6, %v4907_v5 }
0x121a   :  { %v3540_v1 = vpop.eup %3539  ;;  %v2797_v38 = vpop.f32.mrf.mxu1  ;;  %v2711_v42 = vmul.f32 %v5225_v25, %v4913_v56 }
0x121b   :  { %2917 = vst [vmem:[#allocation8 + $0x18] sm:$0xff] %v2881_v51  ;;  %v2882_v33 = vmul.f32 %v3540_v1, %v2705_v52  ;;  %3553 = vrcp.f32 %v2794_v55  ;;  %v2798_v45 = vadd.f32 1.1920929e-07, %v2797_v38  ;;  %v2712_v55 = vmul.f32 %v5227_v2, %v4917_v61 }
0x121c   :  { %v3542_v3 = vpop.eup %3541  ;;  %v2799_v30 = vpop.f32.mrf.mxu1 }
0x121d   :  { %2918 = vst [vmem:[#allocation8 + $0x20] sm:$0xff] %v2882_v33  ;;  %v2883_v15 = vmul.f32 %v3542_v3, %v2706_v39  ;;  %3555 = vrcp.f32 %v2798_v45  ;;  %v2800_v50 = vadd.f32 1.1920929e-07, %v2799_v30  ;;  %v2713_v39 = vmul.f32 %v5229_v24, %v4919_v44 }
0x121e   :  { %v3544_v26 = vpop.eup %3543  ;;  %v2801_v13 = vpop.f32.mrf.mxu1  ;;  %v2714_v3 = vmul.f32 %v5231_v60, %v5042_v54 }
0x121f   :  { %2919 = vst [vmem:[#allocation8 + $0x28] sm:$0xff] %v2883_v15  ;;  %v2884_v12 = vmul.f32 %v3544_v26, %v2707_v43  ;;  %3557 = vrcp.f32 %v2800_v50  ;;  %v2802_v62 = vadd.f32 1.1920929e-07, %v2801_v13  ;;  %v2715_v15 = vmul.f32 %v5233_v37, %v4923_v28 }
0x1220   :  { %v3546_v27 = vpop.eup %3545  ;;  %v2803_v0 = vpop.f32.mrf.mxu1  ;;  %v2716_v13 = vmul.f32 %v5235_v14, %v5038_v36 }
0x1221   :  { %2920 = vst [vmem:[#allocation8 + $0x30] sm:$0xff] %v2884_v12  ;;  %v2885_v47 = vmul.f32 %v3546_v27, %v2708_v16  ;;  %3559 = vrcp.f32 %v2802_v62  ;;  %v2804_v9 = vadd.f32 1.1920929e-07, %v2803_v0  ;;  %v2717_v62 = vmul.f32 %v5237_v63, %v5040_v29 }
0x1222   :  { %v3548_v7 = vpop.eup %3547  ;;  %v2807_v11 = vpop.f32.mrf.mxu1 }
0x1223   :  { %2921 = vst [vmem:[#allocation8 + $0x38] sm:$0xff] %v2885_v47  ;;  %v2886_v19 = vmul.f32 %v3548_v7, %v2709_v59  ;;  %3561 = vrcp.f32 %v2804_v9  ;;  %v2808_v32 = vadd.f32 1.1920929e-07, %v2807_v11  ;;  %v5617_v59 = vld [vmem:[#allocation45_spill] sm:$0xff]  ;;  %v5618_v11 = vld [vmem:[#allocation46_spill] sm:$0xff] }
0x1224   :  { %v3550_v34 = vpop.eup %3549  ;;  %v2809_v21 = vpop.f32.mrf.mxu1  ;;  %v2718_v47 = vmul.f32 %v5239_v10, %v5617_v59 }
0x1225   :  { %2922 = vst [vmem:[#allocation8 + $0x40] sm:$0xff] %v2886_v19  ;;  %v2887_v41 = vmul.f32 %v3550_v34, %v2710_v35  ;;  %3563 = vrcp.f32 %v2808_v32  ;;  %v2810_v22 = vadd.f32 1.1920929e-07, %v2809_v21  ;;  %v2719_v35 = vmul.f32 %v5241_v4, %v5618_v11  ;;  %v5619_v34 = vld [vmem:[#allocation43_spill] sm:$0xff] }
0x1226   :  { %v3552_v52 = vpop.eup %3551  ;;  %v2811_v51 = vpop.f32.mrf.mxu1  ;;  %v2720_v21 = vmul.f32 %v5243_v48, %v5619_v34 }
0x1227   :  { %2923 = vst [vmem:[#allocation8 + $0x48] sm:$0xff] %v2887_v41  ;;  %v2888_v5 = vmul.f32 %v3552_v52, %v2711_v42  ;;  %3565 = vrcp.f32 %v2810_v22  ;;  %v2812_v6 = vadd.f32 1.1920929e-07, %v2811_v51  ;;  %v5620_v52 = vld [vmem:[#allocation44_spill] sm:$0xff] }
0x1228   :  { %v3554_v1 = vpop.eup %3553  ;;  %v2813_v38 = vpop.f32.mrf.mxu1  ;;  %v2721_v51 = vmul.f32 %v5245_v53, %v5620_v52 }
0x1229   :  { %2924 = vst [vmem:[#allocation8 + $0x50] sm:$0xff] %v2888_v5  ;;  %v2889_v56 = vmul.f32 %v3554_v1, %v2712_v55  ;;  %3567 = vrcp.f32 %v2812_v6  ;;  %v2814_v25 = vadd.f32 1.1920929e-07, %v2813_v38  ;;  %v5621_v1 = vld [vmem:[#allocation38_spill] sm:$0xff] }
0x122a   :  { %v3556_v33 = vpop.eup %3555  ;;  %v2817_v45 = vpop.f32.mrf.mxu1  ;;  %v2722_v38 = vmul.f32 %v5253_v17, %v5621_v1 }
0x122b   :  { %2925 = vst [vmem:[#allocation8 + $0x58] sm:$0xff] %v2889_v56  ;;  %v2890_v61 = vmul.f32 %v3556_v33, %v2713_v39  ;;  %3569 = vrcp.f32 %v2814_v25  ;;  %v2818_v2 = vadd.f32 1.1920929e-07, %v2817_v45  ;;  %v5622_v33 = vld [vmem:[#allocation42_spill] sm:$0xff] }
0x122c   :  { %v3558_v30 = vpop.eup %3557  ;;  %v2819_v43 = vpop.f32.mrf.mxu1  ;;  %v2723_v45 = vmul.f32 %v5255_v40, %v5622_v33 }
0x122d   :  { %2926 = vst [vmem:[#allocation8 + $0x60] sm:$0xff] %v2890_v61  ;;  %v2891_v44 = vmul.f32 %v3558_v30, %v2714_v3  ;;  %3571 = vrcp.f32 %v2818_v2  ;;  %v2820_v24 = vadd.f32 1.1920929e-07, %v2819_v43  ;;  %v5623_v30 = vld [vmem:[#allocation28_spill] sm:$0xff] }
0x122e   :  { %v3560_v50 = vpop.eup %3559  ;;  %v2821_v26 = vpop.f32.mrf.mxu1  ;;  %v2724_v43 = vmul.f32 %v5257_v31, %v5623_v30 }
0x122f   :  { %2927 = vst [vmem:[#allocation8 + $0x68] sm:$0xff] %v2891_v44  ;;  %v2892_v54 = vmul.f32 %v3560_v50, %v2715_v15  ;;  %3573 = vrcp.f32 %v2820_v24  ;;  %v2822_v60 = vadd.f32 1.1920929e-07, %v2821_v26  ;;  %v5624_v50 = vld [vmem:[#allocation29_spill] sm:$0xff] }
0x1230   :  { %v3562_v16 = vpop.eup %3561  ;;  %v2823_v12 = vpop.f32.mrf.mxu1  ;;  %v2725_v26 = vmul.f32 %v5259_v23, %v5624_v50 }
0x1231   :  { %2928 = vst [vmem:[#allocation8 + $0x70] sm:$0xff] %v2892_v54  ;;  %v2893_v28 = vmul.f32 %v3562_v16, %v2716_v13  ;;  %3575 = vrcp.f32 %v2822_v60  ;;  %v2824_v37 = vadd.f32 1.1920929e-07, %v2823_v12  ;;  %v5625_v60 = vld [vmem:[#allocation23_spill] sm:$0xff] }
0x1232   :  { %v3564_v27 = vpop.eup %3563  ;;  %v2827_v0 = vpop.f32.mrf.mxu1  ;;  %v2726_v16 = vmul.f32 %v5261_v8, %v5625_v60 }
0x1233   :  { %2929 = vst [vmem:[#allocation8 + $0x78] sm:$0xff] %v2893_v28  ;;  %v2894_v36 = vmul.f32 %v3564_v27, %v2717_v62  ;;  %3577 = vrcp.f32 %v2824_v37  ;;  %v2828_v14 = vadd.f32 1.1920929e-07, %v2827_v0  ;;  %v5626_v62 = vld [vmem:[#allocation25_spill] sm:$0xff]  ;;  %v5627_v0 = vld [vmem:[#allocation27_spill] sm:$0xff] }
0x1234   :  { %v3566_v9 = vpop.eup %3565  ;;  %v2829_v7 = vpop.f32.mrf.mxu1  ;;  %v2727_v28 = vmul.f32 %v5263_v18, %v5626_v62  ;;  %v2728_v23 = vmul.f32 %v5265_v58, %v5627_v0 }
0x1235   :  { %2930 = vst [vmem:[#allocation8 + $0x80] sm:$0xff] %v2894_v36  ;;  %v2895_v29 = vmul.f32 %v3566_v9, %v2718_v47  ;;  %3579 = vrcp.f32 %v2828_v14  ;;  %v2830_v63 = vadd.f32 1.1920929e-07, %v2829_v7  ;;  %v5628_v36 = vld [vmem:[#allocation24_spill] sm:$0xff]  ;;  %v5629_v7 = vld [vmem:[#allocation21_spill] sm:$0xff] }
0x1236   :  { %v3568_v19 = vpop.eup %3567  ;;  %v2831_v32 = vpop.f32.mrf.mxu1  ;;  %v2729_v14 = vmul.f32 %v5267_v46, %v5628_v36  ;;  %v2730_v11 = vmul.f32 %v5269_v20, %v5629_v7 }
0x1237   :  { %2931 = vst [vmem:[#allocation8 + $0x88] sm:$0xff] %v2895_v29  ;;  %v2896_v10 = vmul.f32 %v3568_v19, %v2719_v35  ;;  %3581 = vrcp.f32 %v2830_v63  ;;  %v2832_v42 = vadd.f32 1.1920929e-07, %v2831_v32  ;;  %v5630_v29 = vld [vmem:[#allocation19_spill] sm:$0xff]  ;;  %v5631_v32 = vld [vmem:[#allocation30_spill] sm:$0xff] }
0x1238   :  { %v3570_v41 = vpop.eup %3569  ;;  %v2833_v22 = vpop.f32.mrf.mxu1  ;;  %v2731_v63 = vmul.f32 %v5271_v49, %v5630_v29  ;;  %v2732_v46 = vmul.f32 %v5273_v57, %v5631_v32 }
0x1239   :  { %2932 = vst [vmem:[#allocation8 + $0x90] sm:$0xff] %v2896_v10  ;;  %v2897_v4 = vmul.f32 %v3570_v41, %v2720_v21  ;;  %3583 = vrcp.f32 %v2832_v42  ;;  %v2834_v55 = vadd.f32 1.1920929e-07, %v2833_v22 }
0x123a   :  { %v3572_v5 = vpop.eup %3571  ;;  %v2837_v6 = vpop.f32.mrf.mxu1 }
0x123b   :  { %2933 = vst [vmem:[#allocation8 + $0x98] sm:$0xff] %v2897_v4  ;;  %v2898_v48 = vmul.f32 %v3572_v5, %v2721_v51  ;;  %3585 = vrcp.f32 %v2834_v55  ;;  %v2838_v39 = vadd.f32 1.1920929e-07, %v2837_v6 }
0x123c   :  { %v3574_v56 = vpop.eup %3573  ;;  %v2839_v25 = vpop.f32.mrf.mxu1 }
0x123d   :  { %2934 = vst [vmem:[#allocation8 + $0xa0] sm:$0xff] %v2898_v48  ;;  %v2899_v53 = vmul.f32 %v3574_v56, %v2722_v38  ;;  %3587 = vrcp.f32 %v2838_v39  ;;  %v2840_v3 = vadd.f32 1.1920929e-07, %v2839_v25 }
0x123e   :  { %v3576_v61 = vpop.eup %3575  ;;  %v2841_v2 = vpop.f32.mrf.mxu1 }
0x123f   :  { %2935 = vst [vmem:[#allocation8 + $0xa8] sm:$0xff] %v2899_v53  ;;  %v2900_v17 = vmul.f32 %v3576_v61, %v2723_v45  ;;  %3589 = vrcp.f32 %v2840_v3  ;;  %v2842_v15 = vadd.f32 1.1920929e-07, %v2841_v2 }
0x1240   :  { %v3578_v44 = vpop.eup %3577  ;;  %v2843_v24 = vpop.f32.mrf.mxu1 }
0x1241   :  { %2936 = vst [vmem:[#allocation8 + $0xb0] sm:$0xff] %v2900_v17  ;;  %v2901_v40 = vmul.f32 %v3578_v44, %v2724_v43  ;;  %3591 = vrcp.f32 %v2842_v15  ;;  %v2844_v13 = vadd.f32 1.1920929e-07, %v2843_v24 }
0x1242   :  { %v3580_v54 = vpop.eup %3579 }
0x1243   :  { %2937 = vst [vmem:[#allocation8 + $0xb8] sm:$0xff] %v2901_v40  ;;  %v2902_v12 = vmul.f32 %v3580_v54, %v2725_v26  ;;  %3593 = vrcp.f32 %v2844_v13 }
0x1244   :  { %v3582_v31 = vpop.eup %3581 }
0x1245   :  { %2938 = vst [vmem:[#allocation8 + $0xc0] sm:$0xff] %v2902_v12  ;;  %v2903_v37 = vmul.f32 %v3582_v31, %v2726_v16 }
0x1246   :  { %v3584_v27 = vpop.eup %3583 }
0x1247   :  { %2939 = vst [vmem:[#allocation8 + $0xc8] sm:$0xff] %v2903_v37  ;;  %v2904_v59 = vmul.f32 %v3584_v27, %v2727_v28 }
0x1248   :  { %v3586_v47 = vpop.eup %3585 }
0x1249   :  { %2940 = vst [vmem:[#allocation8 + $0xd0] sm:$0xff] %v2904_v59  ;;  %v2905_v8 = vmul.f32 %v3586_v47, %v2728_v23 }
0x124a   :  { %v3588_v9 = vpop.eup %3587 }
0x124b   :  { %2941 = vst [vmem:[#allocation8 + $0xd8] sm:$0xff] %v2905_v8  ;;  %v2906_v18 = vmul.f32 %v3588_v9, %v2729_v14 }
0x124c   :  { %v3590_v35 = vpop.eup %3589 }
0x124d   :  { %2942 = vst [vmem:[#allocation8 + $0xe0] sm:$0xff] %v2906_v18  ;;  %v2907_v58 = vmul.f32 %v3590_v35, %v2730_v11 }
0x124e   :  { %v3592_v19 = vpop.eup %3591 }
0x124f   :  { %2943 = vst [vmem:[#allocation8 + $0xe8] sm:$0xff] %v2907_v58  ;;  %v2908_v34 = vmul.f32 %v3592_v19, %v2731_v63 }
0x1250   :  { %v3594_v21 = vpop.eup %3593 }
0x1251   :  { %2944 = vst [vmem:[#allocation8 + $0xf0] sm:$0xff] %v2908_v34  ;;  %v2909_v10 = vmul.f32 %v3594_v21, %v2732_v46 }
0x1253   :  { %2945 = vst [vmem:[#allocation8 + $0xf8] sm:$0xff] %v2909_v10 }
0x1254   :  { %3674 = shalt.err (!%p3671_p5)
}
0x1255   :  { %2969 = dma.vmem_to_hbm [thread:$0]  %s2964_s18, 4096, %s5349_s4, [#allocation9], %s3695_s25, %s3695_s25, %s3696_s26  }
0x1256   :  { %3687 = dma.done.wait [#allocation4], 512  }
0x1257   :  { %3688 = vsyncadd [#allocation4], 4294966784 }
0x1258   :  { %3689 = dma.done.wait [#allocation9], 4096  }
0x1259   :  { %3690 = vsyncadd [#allocation9], 4294963200 }
0x125a   :  { %2976 = vsyncpa [#allocation3], 1 }
0x125b   :  { %2977 = vsyncpa [#allocation6], 1 }
0x125c   :  { %2978 = vsyncpa [#allocation4], 1 }
0x125d   :  { %2979 = vsyncpa [#allocation9], 1 }

</bundles_post_ra>
